<compile_context>
chip_gen: v6e
topology: v6e:2x2x1
jax: 0.10.0
libtpu: 0.0.40
codegen_flags: <defaults>
</compile_context>

<pallas_src>
import functools

import jax
import jax.numpy as jnp
from jax import lax
from jax.experimental import pallas as pl
from jax.experimental.pallas import tpu as pltpu


# ----------------------------------------------------------------------------
# Fused VQ kernel: one M-tile per grid step.
#   inputs : x (TM, D), codebook (K, D), (-2*codebook)^T (D, K), ||e||^2 (1, K)
#   outputs: quantized (TM, D), one-hot encodings (TM, K),
#            per-tile squared-error (8, 128), per-tile code counts (8, K)
# ----------------------------------------------------------------------------
def _vq_kernel(x_ref, emb_ref, embt2_ref, esq_ref,
               q_ref, enc_ref, err_ref, cnt_ref,
               *, tm, m_valid, needs_mask):
    x = x_ref[...]                         # (TM, D) f32
    e = emb_ref[...]                       # (K, D)  f32
    e_t2 = embt2_ref[...]                  # (D, K)  f32  == -2 * e^T
    e_sq = esq_ref[...]                    # (1, K)  f32

    # distances (up to a row-constant ||x||^2): ||e_k||^2 - 2 * x . e_k   -> (TM, K)
    dist = e_sq + jnp.dot(x, e_t2, preferred_element_type=jnp.float32)

    k = dist.shape[1]
    min_d = jnp.min(dist, axis=1, keepdims=True)                      # (TM, 1)
    k_iota = lax.broadcasted_iota(jnp.int32, dist.shape, 1)           # (TM, K)
    # first index attaining the minimum (matches torch.argmin tie-breaking)
    idx = jnp.min(jnp.where(dist == min_d, k_iota, k), axis=1, keepdims=True)
    enc = (k_iota == idx).astype(jnp.float32)                         # (TM, K) one-hot

    # quantized = one_hot @ codebook  (MXU "gather")
    q = jnp.dot(enc, e, preferred_element_type=jnp.float32)           # (TM, D)

    q_ref[...] = q
    enc_ref[...] = enc

    diff = q - x
    enc_stat = enc
    if needs_mask:
        # mask out padded rows (only compiled in when M is not a tile multiple)
        row = pl.program_id(0) * tm + lax.broadcasted_iota(jnp.int32, (tm, 1), 0)
        valid = (row < m_valid).astype(jnp.float32)                   # (TM, 1)
        diff = diff * valid
        enc_stat = enc_stat * valid

    err = jnp.sum(diff * diff)                                        # scalar
    err_ref[...] = jnp.full(err_ref.shape, err, jnp.float32)          # (8, 128)
    cnt = jnp.sum(enc_stat, axis=0, keepdims=True)                    # (1, K)
    cnt_ref[...] = jnp.broadcast_to(cnt, cnt_ref.shape)               # (8, K)


# ----------------------------------------------------------------------------
# Wrapper: layout plumbing (NCHW<->NHWC), tiling, and the tiny final reductions.
# ----------------------------------------------------------------------------
def vector_quantizer_forward(inputs_nchw, embedding, commitment_cost, *, tm=512):
    B, C, H, W = inputs_nchw.shape
    K, D = embedding.shape
    assert C == D, (C, D)

    x_nhwc = jnp.transpose(inputs_nchw, (0, 2, 3, 1)).astype(jnp.float32)
    flat = x_nhwc.reshape(-1, D)
    M = flat.shape[0]

    # M-tile: multiple of 8 sublanes, no bigger than (padded) M.
    tm = int(min(tm, -(-M // 8) * 8))
    tm = -(-tm // 8) * 8
    grid = -(-M // tm)                      # pl.cdiv
    Mp = grid * tm
    needs_mask = (Mp != M)
    flat_p = jnp.pad(flat, ((0, Mp - M), (0, 0))) if needs_mask else flat

    emb = embedding.astype(jnp.float32)
    e_sq = jnp.sum(emb * emb, axis=1)[None, :]            # (1, K), hoisted
    emb_t2 = (-2.0 * emb).T                               # (D, K), hoisted (exact scale)

    kern = functools.partial(_vq_kernel, tm=tm, m_valid=M, needs_mask=needs_mask)

    out_shapes = (
        jax.ShapeDtypeStruct((Mp, D), jnp.float32),          # quantized (flat)
        jax.ShapeDtypeStruct((Mp, K), jnp.float32),          # one-hot encodings
        jax.ShapeDtypeStruct((8 * grid, 128), jnp.float32),  # per-tile sq-err
        jax.ShapeDtypeStruct((8 * grid, K), jnp.float32),    # per-tile code counts
    )

    cost = pl.CostEstimate(
        flops=4 * Mp * D * K,                              # two (TM,D)x(D/K) GEMMs / tile
        transcendentals=0,
        bytes_accessed=4 * (2 * Mp * D + Mp * K + 2 * K * D + K
                            + 8 * grid * (128 + K)),
    )

    q_flat, enc_flat, err_part, cnt_part = pl.pallas_call(
        kern,
        out_shape=out_shapes,
        grid_spec=pltpu.PrefetchScalarGridSpec(
            num_scalar_prefetch=0,
            grid=(grid,),
            in_specs=[
                pl.BlockSpec((tm, D), lambda i: (i, 0)),   # x tile
                pl.BlockSpec((K, D), lambda i: (0, 0)),    # codebook (resident)
                pl.BlockSpec((D, K), lambda i: (0, 0)),    # -2*codebook^T (resident)
                pl.BlockSpec((1, K), lambda i: (0, 0)),    # ||e||^2 (resident)
            ],
            out_specs=[
                pl.BlockSpec((tm, D), lambda i: (i, 0)),
                pl.BlockSpec((tm, K), lambda i: (i, 0)),
                pl.BlockSpec((8, 128), lambda i: (i, 0)),
                pl.BlockSpec((8, K), lambda i: (i, 0)),
            ],
        ),
        compiler_params=pltpu.CompilerParams(
            dimension_semantics=("parallel",)),
        cost_estimate=cost,
    )(flat_p, emb, emb_t2, e_sq)

    # Tiny final reductions over G (= M / tile) partials.
    err_total = jnp.sum(err_part.reshape(grid, 8, 128)[:, 0, 0])
    counts = jnp.sum(cnt_part.reshape(grid, 8, K)[:, 0, :], axis=0)   # (K,)

    mse = err_total / (M * D)
    e_latent_loss = mse                    # mse(quantized.detach(), inputs)
    q_latent_loss = mse                    # mse(quantized, inputs.detach())
    loss = q_latent_loss + commitment_cost * e_latent_loss

    avg_probs = counts / M
    perplexity = jnp.exp(-jnp.sum(avg_probs * jnp.log(avg_probs + 1e-10)))

    # Straight-through estimator: forward value is just `quantized`.
    quantized_nhwc = q_flat[:M].reshape(B, H, W, D)
    quantized = jnp.transpose(quantized_nhwc, (0, 3, 1, 2))           # NCHW
    encodings = enc_flat[:M]

    return loss, quantized, perplexity, encodings


if __name__ == "__main__":
    batch, spatial = 2, 16
    embedding_dim = 32          # channel dim of the input feature map
    num_embeddings = 128        # codebook size (lane-dense)
    commitment_cost = 0.25

    key = jax.random.PRNGKey(0)
    k_emb, k_x = jax.random.split(key)
    embedding = jax.random.uniform(
        k_emb, (num_embeddings, embedding_dim), jnp.float32,
        minval=-1.0 / num_embeddings, maxval=1.0 / num_embeddings)
    x = jax.random.normal(k_x, (batch, embedding_dim, spatial, spatial), jnp.float32)

    fwd = jax.jit(functools.partial(vector_quantizer_forward,
                                    commitment_cost=commitment_cost))
    loss, quantized, perplexity, encodings = fwd(x, embedding)
    (loss, quantized, perplexity, encodings) = jax.block_until_ready(
        (loss, quantized, perplexity, encodings))

    # ---- plain-JAX reference of the exact PyTorch forward ----
    xn = jnp.transpose(x, (0, 2, 3, 1))
    flat = xn.reshape(-1, embedding_dim)
    d = (jnp.sum(flat ** 2, axis=1, keepdims=True)
         + jnp.sum(embedding ** 2, axis=1)
         - 2.0 * flat @ embedding.T)
    idx_ref = jnp.argmin(d, axis=1)
    enc_ref = jax.nn.one_hot(idx_ref, num_embeddings, dtype=jnp.float32)
    q_ref = (enc_ref @ embedding).reshape(xn.shape)
    mse_ref = jnp.mean((q_ref - xn) ** 2)
    loss_ref = (1.0 + commitment_cost) * mse_ref
    avg_ref = jnp.mean(enc_ref, axis=0)
    perp_ref = jnp.exp(-jnp.sum(avg_ref * jnp.log(avg_ref + 1e-10)))
    q_ref_nchw = jnp.transpose(q_ref, (0, 3, 1, 2))

    assert quantized.shape == (batch, embedding_dim, spatial, spatial)
    assert encodings.shape == (batch * spatial * spatial, num_embeddings)
    assert bool(jnp.all(jnp.isfinite(quantized)))
    assert jnp.array_equal(encodings, enc_ref)
    assert jnp.allclose(quantized, q_ref_nchw, atol=1e-5, rtol=1e-5)
    assert jnp.allclose(loss, loss_ref, atol=1e-6, rtol=1e-4)
    assert jnp.allclose(perplexity, perp_ref, atol=1e-3, rtol=1e-4)
    print("KERNEL_OK")
</pallas_src>

<mosaic_0001>
module attributes {stable_mosaic.version = 11 : i64} {
  func.func @_vq_kernel(%arg0: i32, %arg1: memref<512x32xf32, #tpu.memory_space<vmem>>, %arg2: memref<128x32xf32, #tpu.memory_space<vmem>>, %arg3: memref<32x128xf32, #tpu.memory_space<vmem>>, %arg4: memref<1x128xf32, #tpu.memory_space<vmem>>, %arg5: memref<512x32xf32, #tpu.memory_space<vmem>>, %arg6: memref<512x128xf32, #tpu.memory_space<vmem>>, %arg7: memref<8x128xf32, #tpu.memory_space<vmem>>, %arg8: memref<8x128xf32, #tpu.memory_space<vmem>>) attributes {dimension_semantics = [#tpu.dimension_semantics<parallel>], iteration_bounds = array<i64: 1>, scalar_prefetch = 0 : i64, scratch_operands = 0 : i64, tpu.core_type = #tpu.core_type<tc>, window_params = [{transform_indices = @transform_0, window_bounds = array<i64: 512, 32>}, {pipeline_mode = #tpu.pipeline_mode<synchronous>, transform_indices = @transform_1, window_bounds = array<i64: 128, 32>}, {pipeline_mode = #tpu.pipeline_mode<synchronous>, transform_indices = @transform_2, window_bounds = array<i64: 32, 128>}, {pipeline_mode = #tpu.pipeline_mode<synchronous>, transform_indices = @transform_3, window_bounds = array<i64: 1, 128>}, {transform_indices = @transform_4, window_bounds = array<i64: 512, 32>}, {transform_indices = @transform_5, window_bounds = array<i64: 512, 128>}, {transform_indices = @transform_6, window_bounds = array<i64: 8, 128>}, {transform_indices = @transform_7, window_bounds = array<i64: 8, 128>}]} {
    %c0 = arith.constant 0 : index
    %c0_0 = arith.constant 0 : index
    %0 = vector.load %arg1[%c0, %c0_0] : memref<512x32xf32, #tpu.memory_space<vmem>>, vector<512x32xf32>
    %c0_1 = arith.constant 0 : index
    %c0_2 = arith.constant 0 : index
    %1 = vector.load %arg2[%c0_1, %c0_2] : memref<128x32xf32, #tpu.memory_space<vmem>>, vector<128x32xf32>
    %c0_3 = arith.constant 0 : index
    %c0_4 = arith.constant 0 : index
    %2 = vector.load %arg3[%c0_3, %c0_4] : memref<32x128xf32, #tpu.memory_space<vmem>>, vector<32x128xf32>
    %c0_5 = arith.constant 0 : index
    %c0_6 = arith.constant 0 : index
    %3 = vector.load %arg4[%c0_5, %c0_6] : memref<1x128xf32, #tpu.memory_space<vmem>>, vector<1x128xf32>
    %cst = arith.constant dense<0.000000e+00> : vector<512x128xf32>
    %4 = tpu.matmul %0, %2, %cst {dimension_numbers = #tpu.dot_dimension_numbers<[1], [0], [0], [1], [0, 0, 1, 1], [], []>} : vector<512x32xf32>, vector<32x128xf32>, vector<512x128xf32> -> vector<512x128xf32>
    %5 = vector.broadcast %3 : vector<1x128xf32> to vector<512x128xf32>
    %6 = arith.addf %5, %4 : vector<512x128xf32>
    %cst_7 = arith.constant dense<0x7F800000> : vector<512xf32>
    %7 = vector.multi_reduction <minimumf>, %6, %cst_7 [1] : vector<512x128xf32> to vector<512xf32>
    %8 = vector.shape_cast %7 : vector<512xf32> to vector<512x1xf32>
    %9 = tpu.iota {dimensions = array<i32: 1>} : vector<512x128xi32>
    %10 = vector.broadcast %8 : vector<512x1xf32> to vector<512x128xf32>
    %11 = arith.cmpf oeq, %6, %10 : vector<512x128xf32>
    %c128_i32 = arith.constant 128 : i32
    %12 = vector.broadcast %c128_i32 : i32 to vector<512x128xi32>
    %13 = arith.select %11, %9, %12 : vector<512x128xi1>, vector<512x128xi32>
    %cst_8 = arith.constant dense<2147483647> : vector<512xi32>
    %14 = vector.multi_reduction <minsi>, %13, %cst_8 [1] : vector<512x128xi32> to vector<512xi32>
    %15 = vector.shape_cast %14 : vector<512xi32> to vector<512x1xi32>
    %16 = vector.broadcast %15 : vector<512x1xi32> to vector<512x128xi32>
    %17 = arith.cmpi eq, %9, %16 : vector<512x128xi32>
    %18 = arith.extui %17 : vector<512x128xi1> to vector<512x128xi32>
    %19 = arith.sitofp %18 : vector<512x128xi32> to vector<512x128xf32>
    %cst_9 = arith.constant dense<0.000000e+00> : vector<512x32xf32>
    %20 = tpu.matmul %19, %1, %cst_9 {dimension_numbers = #tpu.dot_dimension_numbers<[1], [0], [0], [1], [0, 0, 1, 1], [], []>} : vector<512x128xf32>, vector<128x32xf32>, vector<512x32xf32> -> vector<512x32xf32>
    %c0_10 = arith.constant 0 : index
    %c0_11 = arith.constant 0 : index
    %21 = vector.load %arg5[%c0_10, %c0_11] : memref<512x32xf32, #tpu.memory_space<vmem>>, vector<512x32xf32>
    tpu.vector_store %arg5[%c0_10, %c0_11], %20 {strides = array<i32>} : memref<512x32xf32, #tpu.memory_space<vmem>>, vector<512x32xf32>,
    %c0_12 = arith.constant 0 : index
    %c0_13 = arith.constant 0 : index
    %22 = vector.load %arg6[%c0_12, %c0_13] : memref<512x128xf32, #tpu.memory_space<vmem>>, vector<512x128xf32>
    tpu.vector_store %arg6[%c0_12, %c0_13], %19 {strides = array<i32>} : memref<512x128xf32, #tpu.memory_space<vmem>>, vector<512x128xf32>,
    %23 = arith.subf %20, %0 : vector<512x32xf32>
    %24 = arith.mulf %23, %23 : vector<512x32xf32>
    %25 = vector.shape_cast %24 : vector<512x32xf32> to vector<1x512x32xf32>
    %cst_14 = arith.constant dense<0.000000e+00> : vector<1xf32>
    %26 = vector.multi_reduction <add>, %25, %cst_14 [1, 2] : vector<1x512x32xf32> to vector<1xf32>
    %27 = vector.shape_cast %26 : vector<1xf32> to vector<1x1x1xf32>
    %28 = vector.extract %27[0, 0, 0] : f32 from vector<1x1x1xf32>
    %29 = vector.broadcast %28 : f32 to vector<8x128xf32>
    %c0_15 = arith.constant 0 : index
    %c0_16 = arith.constant 0 : index
    %30 = vector.load %arg7[%c0_15, %c0_16] : memref<8x128xf32, #tpu.memory_space<vmem>>, vector<8x128xf32>
    tpu.vector_store %arg7[%c0_15, %c0_16], %29 {strides = array<i32>} : memref<8x128xf32, #tpu.memory_space<vmem>>, vector<8x128xf32>,
    %cst_17 = arith.constant dense<0.000000e+00> : vector<128xf32>
    %31 = vector.multi_reduction <add>, %19, %cst_17 [0] : vector<512x128xf32> to vector<128xf32>
    %32 = vector.shape_cast %31 : vector<128xf32> to vector<1x128xf32>
    %33 = vector.shape_cast %32 : vector<1x128xf32> to vector<1x128xf32>
    %34 = vector.broadcast %33 : vector<1x128xf32> to vector<8x128xf32>
    %c0_18 = arith.constant 0 : index
    %c0_19 = arith.constant 0 : index
    %35 = vector.load %arg8[%c0_18, %c0_19] : memref<8x128xf32, #tpu.memory_space<vmem>>, vector<8x128xf32>
    tpu.vector_store %arg8[%c0_18, %c0_19], %34 {strides = array<i32>} : memref<8x128xf32, #tpu.memory_space<vmem>>, vector<8x128xf32>,
    return
  }
  func.func @transform_0(%arg0: i32) -> (i32, i32) {
    %c0_i32 = arith.constant 0 : i32
    %c0_i32_0 = arith.constant 0 : i32
    return %arg0, %c0_i32 : i32, i32
  }
  func.func @transform_1(%arg0: i32) -> (i32, i32) {
    %c0_i32 = arith.constant 0 : i32
    %c0_i32_0 = arith.constant 0 : i32
    %c0_i32_1 = arith.constant 0 : i32
    return %c0_i32, %c0_i32_0 : i32, i32
  }
  func.func @transform_2(%arg0: i32) -> (i32, i32) {
    %c0_i32 = arith.constant 0 : i32
    %c0_i32_0 = arith.constant 0 : i32
    %c0_i32_1 = arith.constant 0 : i32
    return %c0_i32, %c0_i32_0 : i32, i32
  }
  func.func @transform_3(%arg0: i32) -> (i32, i32) {
    %c0_i32 = arith.constant 0 : i32
    %c0_i32_0 = arith.constant 0 : i32
    %c0_i32_1 = arith.constant 0 : i32
    return %c0_i32, %c0_i32_0 : i32, i32
  }
  func.func @transform_4(%arg0: i32) -> (i32, i32) {
    %c0_i32 = arith.constant 0 : i32
    %c0_i32_0 = arith.constant 0 : i32
    return %arg0, %c0_i32 : i32, i32
  }
  func.func @transform_5(%arg0: i32) -> (i32, i32) {
    %c0_i32 = arith.constant 0 : i32
    %c0_i32_0 = arith.constant 0 : i32
    return %arg0, %c0_i32 : i32, i32
  }
  func.func @transform_6(%arg0: i32) -> (i32, i32) {
    %c0_i32 = arith.constant 0 : i32
    %c0_i32_0 = arith.constant 0 : i32
    return %arg0, %c0_i32 : i32, i32
  }
  func.func @transform_7(%arg0: i32) -> (i32, i32) {
    %c0_i32 = arith.constant 0 : i32
    %c0_i32_0 = arith.constant 0 : i32
    return %arg0, %c0_i32 : i32, i32
  }
}

</mosaic_0001>

<bundles_post_ra>
// kernel: vector_quantizer_forward.1
= control target key start
LH: loop header
LB: loop body
LE: loop exit
PB: predicated region body
PF: predicated region fallthrough
CT: control target
= control target key end

     0   :  { %13 = vsyncpa [#allocation3], 0  ;;  %s5593_s0 = inlined_call_operand.hbm [shape: f32[512,32], index: 0, kind: input, shape index: {}]   ;;  %s5594_s1 = inlined_call_operand.vmem [shape: f32[128,32], index: 1, kind: input, shape index: {}]   ;;  %s5595_s2 = inlined_call_operand.vmem [shape: f32[32,128], index: 2, kind: input, shape index: {}]   ;;  %s5596_s3 = inlined_call_operand.vmem [shape: f32[1,128], index: 3, kind: input, shape index: {}]   ;;  %s5597_s4 = inlined_call_operand.hbm [shape: f32[512,32], index: 4, kind: output, shape index: {0}]   ;;  %s5598_s5 = inlined_call_operand.hbm [shape: f32[512,128], index: 5, kind: output, shape index: {1}]   ;;  %s5599_s6 = inlined_call_operand.vmem [shape: f32[8,128], index: 6, kind: output, shape index: {2}]   ;;  %s5600_s7 = inlined_call_operand.vmem [shape: f32[8,128], index: 7, kind: output, shape index: {3}]  }
   0x1   :  { %14 = vsyncpa [#allocation4], 0 }
   0x2   :  { %15 = vsyncpa [#allocation7], 0  ;;  %s3750_s24 = smov [#allocation2]  }
   0x3   :  { %s21_s25 = sshll.u32 %s3750_s24, 4  ;;  %s22_s25 = int_to_ptr.vmem [resolvable:$true] %s21_s25 }
   0x4   :  { %s3692_s26 = scalar_lea.vmem %s22_s25, 8192  ;;  %p3697_p1 = scmp.lt.s32.totalorder %s22_s25, %s22_s25 }
   0x5   :  { %p3693_p0 = scmp.ne.s32.totalorder %s22_s25, %s3692_s26  ;;  %p3698_p2 = scmp.lt.s32.totalorder %s3692_s26, %s3692_s26 }
   0x7   :  { %p3699_p3 = por %p3698_p2, %p3697_p1 }
   0x9   :  { %p3700_p4 = pnand %p3699_p3, %p3693_p0 }
   0xb   :  { %3703 = shalt.err (!%p3700_p4)
}
   0xc   :  { %s3751_s27 = smov 128   ;;  %s3752_s28 = smov 8  }
   0xd   :  { %27 = dma.hbm_to_vmem [thread:$0]  %s5593_s0, 8192, %s22_s25, [#allocation3], %s3751_s27, %s3751_s27, %s3752_s28  }
   0xe   :  { %3744 = dma.done.wait [#allocation3], 8192  }
   0xf   :  { %3745 = vsyncadd [#allocation3], 4294959104  ;;  %vm122_vm0 = vcmask 261120   ;;  %v120_v0 = vld [vmem:[%s5595_s2 + $0x18] sm:$0xff]  ;;  %v119_v1 = vld [vmem:[%s5595_s2 + $0x10] sm:$0xff]  ;;  %s3756_s25 = smov [#allocation6]  }
  0x10   :  { %3347 = vmatprep.subr.mxu0 %v120_v0  ;;  %v37_v2 = vld [vmem:[#allocation2] sm:$0xff]  ;;  %v118_v3 = vld [vmem:[%s5595_s2 + $0x8] sm:$0xff]  ;;  %v39_v6 = vld [vmem:[#allocation2 + $0x10] sm:$0xff]  ;;  %s2982_s26 = sshll.u32 %s3756_s25, 4  ;;  %s2983_s26 = int_to_ptr.vmem [resolvable:$true] %s2982_s26 }
  0x11   :  { %3348 = vmatpush3.msra.mxu0 %v120_v0  ;;  %3355 = vmatprep.mubr.msk.f32.mxu0 %vm122_vm0, %v37_v2  ;;  %v117_v4 = vld [vmem:[%s5595_s2] sm:$0xff]  ;;  %v38_v5 = vld [vmem:[#allocation2 + $0x8] sm:$0xff]  ;;  %v40_v7 = vld [vmem:[#allocation2 + $0x18] sm:$0xff] }
  0x12   :  { %3349 = vmatprep.subr.mxu0 %v119_v1  ;;  %v41_v8 = vld [vmem:[#allocation2 + $0x20] sm:$0xff]  ;;  %v42_v9 = vld [vmem:[#allocation2 + $0x28] sm:$0xff]  ;;  %v43_v10 = vld [vmem:[#allocation2 + $0x30] sm:$0xff] }
  0x13   :  { %3350 = vmatpush3.msra.mxu0 %v119_v1  ;;  %v44_v11 = vld [vmem:[#allocation2 + $0x38] sm:$0xff]  ;;  %v45_v12 = vld [vmem:[#allocation2 + $0x40] sm:$0xff]  ;;  %v46_v13 = vld [vmem:[#allocation2 + $0x48] sm:$0xff] }
  0x14   :  { %3351 = vmatprep.subr.mxu0 %v118_v3  ;;  %v47_v14 = vld [vmem:[#allocation2 + $0x50] sm:$0xff]  ;;  %v48_v15 = vld [vmem:[#allocation2 + $0x58] sm:$0xff]  ;;  %v49_v16 = vld [vmem:[#allocation2 + $0x60] sm:$0xff] }
  0x15   :  { %3352 = vmatpush3.msra.mxu0 %v118_v3  ;;  %v50_v17 = vld [vmem:[#allocation2 + $0x68] sm:$0xff]  ;;  %v51_v18 = vld [vmem:[#allocation2 + $0x70] sm:$0xff]  ;;  %v52_v19 = vld [vmem:[#allocation2 + $0x78] sm:$0xff] }
  0x16   :  { %3353 = vmatprep.subr.mxu0 %v117_v4  ;;  %v53_v20 = vld [vmem:[#allocation2 + $0x80] sm:$0xff]  ;;  %v54_v21 = vld [vmem:[#allocation2 + $0x88] sm:$0xff]  ;;  %v55_v22 = vld [vmem:[#allocation2 + $0x90] sm:$0xff] }
  0x17   :  { %3354 = vmatpush3.msra.mxu0 %v117_v4  ;;  %v56_v23 = vld [vmem:[#allocation2 + $0x98] sm:$0xff]  ;;  %v57_v24 = vld [vmem:[#allocation2 + $0xa0] sm:$0xff]  ;;  %v58_v25 = vld [vmem:[#allocation2 + $0xa8] sm:$0xff] }
  0x18   :  { %3356 = vmatmul.mubr.msk.f32.vlgmr.msra.gmra.mxu0 %vm122_vm0, %v38_v5  ;;  %v59_v26 = vld [vmem:[#allocation2 + $0xb0] sm:$0xff]  ;;  %v60_v27 = vld [vmem:[#allocation2 + $0xb8] sm:$0xff]  ;;  %v61_v28 = vld [vmem:[#allocation2 + $0xc0] sm:$0xff] }
  0x19   :  { %3358 = vmatprep.mubr.msk.f32.mxu0 %vm122_vm0, %v39_v6  ;;  %v62_v29 = vld [vmem:[#allocation2 + $0xc8] sm:$0xff]  ;;  %v63_v30 = vld [vmem:[#allocation2 + $0xd0] sm:$0xff]  ;;  %v64_v31 = vld [vmem:[#allocation2 + $0xd8] sm:$0xff] }
  0x1a   :  { %v65_v32 = vld [vmem:[#allocation2 + $0xe0] sm:$0xff]  ;;  %v66_v33 = vld [vmem:[#allocation2 + $0xe8] sm:$0xff]  ;;  %v67_v34 = vld [vmem:[#allocation2 + $0xf0] sm:$0xff] }
  0x1b   :  { %v68_v35 = vld [vmem:[#allocation2 + $0xf8] sm:$0xff]  ;;  %v69_v36 = vld [vmem:[#allocation2 + $0x100] sm:$0xff]  ;;  %v70_v37 = vld [vmem:[#allocation2 + $0x108] sm:$0xff] }
  0x1c   :  { %3359 = vmatmul.mubr.msk.f32.gmra.mxu0 %vm122_vm0, %v40_v7  ;;  %v71_v38 = vld [vmem:[#allocation2 + $0x110] sm:$0xff]  ;;  %v72_v39 = vld [vmem:[#allocation2 + $0x118] sm:$0xff]  ;;  %v73_v40 = vld [vmem:[#allocation2 + $0x120] sm:$0xff] }
  0x1d   :  { %3361 = vmatprep.mubr.msk.f32.mxu0 %vm122_vm0, %v41_v8  ;;  %v74_v41 = vld [vmem:[#allocation2 + $0x128] sm:$0xff]  ;;  %v75_v42 = vld [vmem:[#allocation2 + $0x130] sm:$0xff]  ;;  %v76_v43 = vld [vmem:[#allocation2 + $0x138] sm:$0xff] }
  0x1e   :  { %v77_v44 = vld [vmem:[#allocation2 + $0x140] sm:$0xff]  ;;  %v78_v45 = vld [vmem:[#allocation2 + $0x148] sm:$0xff]  ;;  %v79_v46 = vld [vmem:[#allocation2 + $0x150] sm:$0xff] }
  0x1f   :  { %v80_v47 = vld [vmem:[#allocation2 + $0x158] sm:$0xff]  ;;  %v81_v48 = vld [vmem:[#allocation2 + $0x160] sm:$0xff]  ;;  %v82_v49 = vld [vmem:[#allocation2 + $0x168] sm:$0xff] }
  0x20   :  { %3362 = vmatmul.mubr.msk.f32.gmra.mxu0 %vm122_vm0, %v42_v9  ;;  %v83_v50 = vld [vmem:[#allocation2 + $0x170] sm:$0xff]  ;;  %v84_v51 = vld [vmem:[#allocation2 + $0x178] sm:$0xff]  ;;  %v85_v52 = vld [vmem:[#allocation2 + $0x180] sm:$0xff] }
  0x21   :  { %3364 = vmatprep.mubr.msk.f32.mxu0 %vm122_vm0, %v43_v10  ;;  %v86_v53 = vld [vmem:[#allocation2 + $0x188] sm:$0xff]  ;;  %v87_v54 = vld [vmem:[#allocation2 + $0x190] sm:$0xff]  ;;  %v88_v55 = vld [vmem:[#allocation2 + $0x198] sm:$0xff] }
  0x22   :  { %v89_v56 = vld [vmem:[#allocation2 + $0x1a0] sm:$0xff]  ;;  %v90_v57 = vld [vmem:[#allocation2 + $0x1a8] sm:$0xff]  ;;  %v91_v58 = vld [vmem:[#allocation2 + $0x1b0] sm:$0xff] }
  0x23   :  { %v92_v59 = vld [vmem:[#allocation2 + $0x1b8] sm:$0xff]  ;;  %v93_v60 = vld [vmem:[#allocation2 + $0x1c0] sm:$0xff]  ;;  %v94_v61 = vld [vmem:[#allocation2 + $0x1c8] sm:$0xff] }
  0x24   :  { %3365 = vmatmul.mubr.msk.f32.gmra.mxu0 %vm122_vm0, %v44_v11  ;;  %v95_v62 = vld [vmem:[#allocation2 + $0x1d0] sm:$0xff]  ;;  %v96_v63 = vld [vmem:[#allocation2 + $0x1d8] sm:$0xff]  ;;  %v97_v0 = vld [vmem:[#allocation2 + $0x1e0] sm:$0xff] }
  0x25   :  { %3367 = vmatprep.mubr.msk.f32.mxu0 %vm122_vm0, %v45_v12  ;;  %v98_v1 = vld [vmem:[#allocation2 + $0x1e8] sm:$0xff]  ;;  %v99_v2 = vld [vmem:[#allocation2 + $0x1f0] sm:$0xff]  ;;  %v100_v3 = vld [vmem:[#allocation2 + $0x1f8] sm:$0xff] }
  0x26   :  { %v3882_v4 = vld [vmem:[%s5596_s3] ss:$0 sm:$0xff] }
  0x28   :  { %3368 = vmatmul.mubr.msk.f32.gmra.mxu0 %vm122_vm0, %v46_v13 }
  0x29   :  { %3370 = vmatprep.mubr.msk.f32.mxu0 %vm122_vm0, %v47_v14 }
  0x2c   :  { %3371 = vmatmul.mubr.msk.f32.gmra.mxu0 %vm122_vm0, %v48_v15 }
  0x2d   :  { %3373 = vmatprep.mubr.msk.f32.mxu0 %vm122_vm0, %v49_v16 }
  0x30   :  { %3374 = vmatmul.mubr.msk.f32.gmra.mxu0 %vm122_vm0, %v50_v17 }
  0x31   :  { %3376 = vmatprep.mubr.msk.f32.mxu0 %vm122_vm0, %v51_v18 }
  0x34   :  { %3377 = vmatmul.mubr.msk.f32.gmra.mxu0 %vm122_vm0, %v52_v19 }
  0x35   :  { %3379 = vmatprep.mubr.msk.f32.mxu0 %vm122_vm0, %v53_v20 }
  0x38   :  { %3380 = vmatmul.mubr.msk.f32.gmra.mxu0 %vm122_vm0, %v54_v21 }
  0x39   :  { %3382 = vmatprep.mubr.msk.f32.mxu0 %vm122_vm0, %v55_v22 }
  0x3c   :  { %3383 = vmatmul.mubr.msk.f32.gmra.mxu0 %vm122_vm0, %v56_v23 }
  0x3d   :  { %3385 = vmatprep.mubr.msk.f32.mxu0 %vm122_vm0, %v57_v24 }
  0x40   :  { %3386 = vmatmul.mubr.msk.f32.gmra.mxu0 %vm122_vm0, %v58_v25 }
  0x41   :  { %3388 = vmatprep.mubr.msk.f32.mxu0 %vm122_vm0, %v59_v26 }
  0x44   :  { %3389 = vmatmul.mubr.msk.f32.gmra.mxu0 %vm122_vm0, %v60_v27 }
  0x45   :  { %3391 = vmatprep.mubr.msk.f32.mxu0 %vm122_vm0, %v61_v28 }
  0x48   :  { %3392 = vmatmul.mubr.msk.f32.gmra.mxu0 %vm122_vm0, %v62_v29 }
  0x49   :  { %3394 = vmatprep.mubr.msk.f32.mxu0 %vm122_vm0, %v63_v30 }
  0x4c   :  { %3395 = vmatmul.mubr.msk.f32.gmra.mxu0 %vm122_vm0, %v64_v31 }
  0x4d   :  { %3397 = vmatprep.mubr.msk.f32.mxu0 %vm122_vm0, %v65_v32 }
  0x50   :  { %3398 = vmatmul.mubr.msk.f32.gmra.mxu0 %vm122_vm0, %v66_v33 }
  0x51   :  { %3400 = vmatprep.mubr.msk.f32.mxu0 %vm122_vm0, %v67_v34 }
  0x54   :  { %3401 = vmatmul.mubr.msk.f32.gmra.mxu0 %vm122_vm0, %v68_v35 }
  0x55   :  { %3403 = vmatprep.mubr.msk.f32.mxu0 %vm122_vm0, %v69_v36 }
  0x58   :  { %3404 = vmatmul.mubr.msk.f32.gmra.mxu0 %vm122_vm0, %v70_v37 }
  0x59   :  { %3406 = vmatprep.mubr.msk.f32.mxu0 %vm122_vm0, %v71_v38 }
  0x5c   :  { %3407 = vmatmul.mubr.msk.f32.gmra.mxu0 %vm122_vm0, %v72_v39 }
  0x5d   :  { %3409 = vmatprep.mubr.msk.f32.mxu0 %vm122_vm0, %v73_v40 }
  0x60   :  { %3410 = vmatmul.mubr.msk.f32.gmra.mxu0 %vm122_vm0, %v74_v41 }
  0x61   :  { %3412 = vmatprep.mubr.msk.f32.mxu0 %vm122_vm0, %v75_v42 }
  0x64   :  { %3413 = vmatmul.mubr.msk.f32.gmra.mxu0 %vm122_vm0, %v76_v43 }
  0x65   :  { %3415 = vmatprep.mubr.msk.f32.mxu0 %vm122_vm0, %v77_v44 }
  0x68   :  { %3416 = vmatmul.mubr.msk.f32.gmra.mxu0 %vm122_vm0, %v78_v45 }
  0x69   :  { %3418 = vmatprep.mubr.msk.f32.mxu0 %vm122_vm0, %v79_v46 }
  0x6c   :  { %3419 = vmatmul.mubr.msk.f32.gmra.mxu0 %vm122_vm0, %v80_v47 }
  0x6d   :  { %3421 = vmatprep.mubr.msk.f32.mxu0 %vm122_vm0, %v81_v48 }
  0x70   :  { %3422 = vmatmul.mubr.msk.f32.gmra.mxu0 %vm122_vm0, %v82_v49 }
  0x71   :  { %3424 = vmatprep.mubr.msk.f32.mxu0 %vm122_vm0, %v83_v50 }
  0x74   :  { %3425 = vmatmul.mubr.msk.f32.gmra.mxu0 %vm122_vm0, %v84_v51 }
  0x75   :  { %3427 = vmatprep.mubr.msk.f32.mxu0 %vm122_vm0, %v85_v52 }
  0x78   :  { %3428 = vmatmul.mubr.msk.f32.gmra.mxu0 %vm122_vm0, %v86_v53 }
  0x79   :  { %3430 = vmatprep.mubr.msk.f32.mxu0 %vm122_vm0, %v87_v54 }
  0x7c   :  { %3431 = vmatmul.mubr.msk.f32.gmra.mxu0 %vm122_vm0, %v88_v55 }
  0x7d   :  { %3433 = vmatprep.mubr.msk.f32.mxu0 %vm122_vm0, %v89_v56 }
  0x80   :  { %3434 = vmatmul.mubr.msk.f32.gmra.mxu0 %vm122_vm0, %v90_v57 }
  0x81   :  { %3436 = vmatprep.mubr.msk.f32.mxu0 %vm122_vm0, %v91_v58 }
  0x84   :  { %3437 = vmatmul.mubr.msk.f32.gmra.mxu0 %vm122_vm0, %v92_v59 }
  0x85   :  { %3439 = vmatprep.mubr.msk.f32.mxu0 %vm122_vm0, %v93_v60 }
  0x88   :  { %3440 = vmatmul.mubr.msk.f32.gmra.mxu0 %vm122_vm0, %v94_v61 }
  0x89   :  { %3442 = vmatprep.mubr.msk.f32.mxu0 %vm122_vm0, %v95_v62 }
  0x8c   :  { %3443 = vmatmul.mubr.msk.f32.gmra.mxu0 %vm122_vm0, %v96_v63 }
  0x8d   :  { %3445 = vmatprep.mubr.msk.f32.mxu0 %vm122_vm0, %v97_v0 }
  0x90   :  { %3446 = vmatmul.mubr.msk.f32.gmra.mxu0 %vm122_vm0, %v98_v1 }
  0x91   :  { %3448 = vmatprep.mubr.msk.f32.mxu0 %vm122_vm0, %v99_v2 }
  0x94   :  { %3449 = vmatmul.mubr.msk.f32.gmra.mxu0 %vm122_vm0, %v100_v3 }
  0xd8   :  { %v3357_v5 = vpop.f32.mrf.mxu0 }
  0xd9   :  { %v3885_v6 = vadd.f32 %v3357_v5, %v3882_v4 }
  0xda   :  { %v381_v7 = vpop.f32.mrf.mxu0 }
  0xdb   :  { %772 = vmin.xlane.f32.xlu0 %v3885_v6  ;;  %v3889_v9 = vadd.f32 %v3882_v4, %v381_v7 }
  0xdc   :  { %v3360_v8 = vpop.f32.mrf.mxu0 }
  0xdd   :  { %v3892_v10 = vadd.f32 %v3360_v8, %v3882_v4 }
  0xde   :  { %v391_v11 = vpop.f32.mrf.mxu0 }
  0xdf   :  { %v3895_v12 = vadd.f32 %v3882_v4, %v391_v11  ;;  %770 = vmin.xlane.f32.xlu0 %v3889_v9  ;;  %776 = vmin.xlane.f32.xlu1 %v3892_v10 }
  0xe0   :  { %v3363_v13 = vpop.f32.mrf.mxu0 }
  0xe1   :  { %v3900_v15 = vadd.f32 %v3363_v13, %v3882_v4 }
  0xe2   :  { %v401_v14 = vpop.f32.mrf.mxu0 }
  0xe3   :  { %v3903_v16 = vadd.f32 %v3882_v4, %v401_v14  ;;  %774 = vmin.xlane.f32.xlu1 %v3895_v12 }
  0xe4   :  { %v3366_v17 = vpop.f32.mrf.mxu0 }
  0xe5   :  { %778 = vmin.xlane.f32.xlu0 %v3903_v16  ;;  %v3908_v19 = vadd.f32 %v3366_v17, %v3882_v4 }
  0xe6   :  { %v411_v18 = vpop.f32.mrf.mxu0 }
  0xe7   :  { %v3911_v20 = vadd.f32 %v3882_v4, %v411_v18  ;;  %780 = vmin.xlane.f32.xlu1 %v3900_v15 }
  0xe8   :  { %v3369_v21 = vpop.f32.mrf.mxu0 }
  0xe9   :  { %782 = vmin.xlane.f32.xlu0 %v3911_v20  ;;  %v3916_v23 = vadd.f32 %v3369_v21, %v3882_v4 }
  0xea   :  { %v421_v22 = vpop.f32.mrf.mxu0 }
  0xeb   :  { %v3919_v24 = vadd.f32 %v3882_v4, %v421_v22  ;;  %784 = vmin.xlane.f32.xlu1 %v3908_v19 }
  0xec   :  { %v3372_v25 = vpop.f32.mrf.mxu0 }
  0xed   :  { %786 = vmin.xlane.f32.xlu0 %v3919_v24  ;;  %v3924_v27 = vadd.f32 %v3372_v25, %v3882_v4 }
  0xee   :  { %v431_v26 = vpop.f32.mrf.mxu0 }
  0xef   :  { %v3927_v28 = vadd.f32 %v3882_v4, %v431_v26  ;;  %788 = vmin.xlane.f32.xlu1 %v3916_v23 }
  0xf0   :  { %v3375_v29 = vpop.f32.mrf.mxu0 }
  0xf1   :  { %790 = vmin.xlane.f32.xlu0 %v3927_v28  ;;  %v3932_v31 = vadd.f32 %v3375_v29, %v3882_v4 }
  0xf2   :  { %v441_v30 = vpop.f32.mrf.mxu0 }
  0xf3   :  { %v3935_v32 = vadd.f32 %v3882_v4, %v441_v30  ;;  %792 = vmin.xlane.f32.xlu1 %v3924_v27 }
  0xf4   :  { %v3378_v33 = vpop.f32.mrf.mxu0 }
  0xf5   :  { %794 = vmin.xlane.f32.xlu0 %v3935_v32  ;;  %v3940_v35 = vadd.f32 %v3378_v33, %v3882_v4 }
  0xf6   :  { %v451_v34 = vpop.f32.mrf.mxu0 }
  0xf7   :  { %v3943_v36 = vadd.f32 %v3882_v4, %v451_v34  ;;  %796 = vmin.xlane.f32.xlu1 %v3932_v31 }
  0xf8   :  { %v3381_v37 = vpop.f32.mrf.mxu0 }
  0xf9   :  { %798 = vmin.xlane.f32.xlu0 %v3943_v36  ;;  %v3948_v39 = vadd.f32 %v3381_v37, %v3882_v4 }
  0xfa   :  { %v461_v38 = vpop.f32.mrf.mxu0 }
  0xfb   :  { %v3951_v40 = vadd.f32 %v3882_v4, %v461_v38  ;;  %800 = vmin.xlane.f32.xlu1 %v3940_v35 }
  0xfc   :  { %v3384_v41 = vpop.f32.mrf.mxu0 }
  0xfd   :  { %802 = vmin.xlane.f32.xlu0 %v3951_v40  ;;  %v3956_v43 = vadd.f32 %v3384_v41, %v3882_v4 }
  0xfe   :  { %v471_v42 = vpop.f32.mrf.mxu0 }
  0xff   :  { %v3959_v44 = vadd.f32 %v3882_v4, %v471_v42  ;;  %804 = vmin.xlane.f32.xlu1 %v3948_v39 }
 0x100   :  { %v3387_v45 = vpop.f32.mrf.mxu0 }
 0x101   :  { %806 = vmin.xlane.f32.xlu0 %v3959_v44  ;;  %v3964_v47 = vadd.f32 %v3387_v45, %v3882_v4 }
 0x102   :  { %v481_v46 = vpop.f32.mrf.mxu0 }
 0x103   :  { %v3967_v48 = vadd.f32 %v3882_v4, %v481_v46  ;;  %808 = vmin.xlane.f32.xlu1 %v3956_v43 }
 0x104   :  { %v3390_v49 = vpop.f32.mrf.mxu0 }
 0x105   :  { %810 = vmin.xlane.f32.xlu0 %v3967_v48  ;;  %v3972_v51 = vadd.f32 %v3390_v49, %v3882_v4 }
 0x106   :  { %v491_v50 = vpop.f32.mrf.mxu0 }
 0x107   :  { %v3975_v52 = vadd.f32 %v3882_v4, %v491_v50  ;;  %812 = vmin.xlane.f32.xlu1 %v3964_v47 }
 0x108   :  { %v3393_v53 = vpop.f32.mrf.mxu0 }
 0x109   :  { %814 = vmin.xlane.f32.xlu0 %v3975_v52  ;;  %v3980_v55 = vadd.f32 %v3393_v53, %v3882_v4 }
 0x10a   :  { %v501_v54 = vpop.f32.mrf.mxu0 }
 0x10b   :  { %v3983_v56 = vadd.f32 %v3882_v4, %v501_v54  ;;  %816 = vmin.xlane.f32.xlu1 %v3972_v51 }
 0x10c   :  { %v3396_v57 = vpop.f32.mrf.mxu0 }
 0x10d   :  { %818 = vmin.xlane.f32.xlu0 %v3983_v56  ;;  %v3988_v59 = vadd.f32 %v3396_v57, %v3882_v4 }
 0x10e   :  { %v511_v58 = vpop.f32.mrf.mxu0 }
 0x10f   :  { %v3991_v60 = vadd.f32 %v3882_v4, %v511_v58  ;;  %820 = vmin.xlane.f32.xlu1 %v3980_v55 }
 0x110   :  { %v3399_v61 = vpop.f32.mrf.mxu0 }
 0x111   :  { %822 = vmin.xlane.f32.xlu0 %v3991_v60  ;;  %v3996_v63 = vadd.f32 %v3399_v61, %v3882_v4 }
 0x112   :  { %v521_v62 = vpop.f32.mrf.mxu0 }
 0x113   :  { %v3999_v0 = vadd.f32 %v3882_v4, %v521_v62  ;;  %824 = vmin.xlane.f32.xlu1 %v3988_v59 }
 0x114   :  { %v3402_v1 = vpop.f32.mrf.mxu0 }
 0x115   :  { %826 = vmin.xlane.f32.xlu0 %v3999_v0  ;;  %v4004_v3 = vadd.f32 %v3402_v1, %v3882_v4 }
 0x116   :  { %v531_v2 = vpop.f32.mrf.mxu0 }
 0x117   :  { %v4007_v5 = vadd.f32 %v3882_v4, %v531_v2  ;;  %828 = vmin.xlane.f32.xlu1 %v3996_v63 }
 0x118   :  { %v3405_v7 = vpop.f32.mrf.mxu0 }
 0x119   :  { %830 = vmin.xlane.f32.xlu0 %v4007_v5  ;;  %v4012_v11 = vadd.f32 %v3405_v7, %v3882_v4 }
 0x11a   :  { %v541_v8 = vpop.f32.mrf.mxu0 }
 0x11b   :  { %v4015_v13 = vadd.f32 %v3882_v4, %v541_v8  ;;  %832 = vmin.xlane.f32.xlu1 %v4004_v3 }
 0x11c   :  { %v3408_v14 = vpop.f32.mrf.mxu0 }
 0x11d   :  { %834 = vmin.xlane.f32.xlu0 %v4015_v13  ;;  %v4020_v18 = vadd.f32 %v3408_v14, %v3882_v4 }
 0x11e   :  { %v551_v17 = vpop.f32.mrf.mxu0 }
 0x11f   :  { %v4023_v21 = vadd.f32 %v3882_v4, %v551_v17  ;;  %836 = vmin.xlane.f32.xlu1 %v4012_v11 }
 0x120   :  { %v3411_v22 = vpop.f32.mrf.mxu0 }
 0x121   :  { %838 = vmin.xlane.f32.xlu0 %v4023_v21  ;;  %v4028_v26 = vadd.f32 %v3411_v22, %v3882_v4 }
 0x122   :  { %v561_v25 = vpop.f32.mrf.mxu0 }
 0x123   :  { %v4031_v29 = vadd.f32 %v3882_v4, %v561_v25  ;;  %840 = vmin.xlane.f32.xlu1 %v4020_v18 }
 0x124   :  { %v3414_v30 = vpop.f32.mrf.mxu0 }
 0x125   :  { %842 = vmin.xlane.f32.xlu0 %v4031_v29  ;;  %v4036_v33 = vadd.f32 %v3414_v30, %v3882_v4 }
 0x126   :  { %v571_v34 = vpop.f32.mrf.mxu0 }
 0x127   :  { %844 = vmin.xlane.f32.xlu1 %v4028_v26  ;;  %v4041_v37 = vadd.f32 %v3882_v4, %v571_v34 }
 0x128   :  { %v3417_v38 = vpop.f32.mrf.mxu0 }
 0x129   :  { %848 = vmin.xlane.f32.xlu0 %v4036_v33  ;;  %v4045_v41 = vadd.f32 %v3417_v38, %v3882_v4 }
 0x12a   :  { %v581_v42 = vpop.f32.mrf.mxu0 }
 0x12b   :  { %v4049_v45 = vadd.f32 %v3882_v4, %v581_v42 }
 0x12c   :  { %v3420_v46 = vpop.f32.mrf.mxu0 }
 0x12d   :  { %846 = vmin.xlane.f32.xlu0 %v4041_v37  ;;  %v4053_v49 = vadd.f32 %v3420_v46, %v3882_v4 }
 0x12e   :  { %v591_v50 = vpop.f32.mrf.mxu0 }
 0x12f   :  { %v4057_v53 = vadd.f32 %v3882_v4, %v591_v50 }
 0x130   :  { %v3423_v54 = vpop.f32.mrf.mxu0 }
 0x131   :  { %852 = vmin.xlane.f32.xlu0 %v4045_v41  ;;  %v4061_v57 = vadd.f32 %v3423_v54, %v3882_v4  ;;  %v898_v54 = vlaneseq }
 0x132   :  { %v601_v58 = vpop.f32.mrf.mxu0 }
 0x133   :  { %v4065_v61 = vadd.f32 %v3882_v4, %v601_v58 }
 0x134   :  { %v3426_v62 = vpop.f32.mrf.mxu0 }
 0x135   :  { %850 = vmin.xlane.f32.xlu0 %v4049_v45  ;;  %v4069_v1 = vadd.f32 %v3426_v62, %v3882_v4  ;;  %v4099_v62 = vand.u32 127, %v898_v54 }
 0x136   :  { %v611_v2 = vpop.f32.mrf.mxu0 }
 0x137   :  { %5705 = vst [vmem:[#allocation11_spill] sm:$0xff] %v4069_v1  ;;  %v4073_v7 = vadd.f32 %v3882_v4, %v611_v2 }
 0x138   :  { %v3429_v8 = vpop.f32.mrf.mxu0 }
 0x139   :  { %856 = vmin.xlane.f32.xlu0 %v4053_v49  ;;  %5706 = vst [vmem:[#allocation12_spill] sm:$0xff] %v4073_v7  ;;  %v4077_v14 = vadd.f32 %v3429_v8, %v3882_v4 }
 0x13a   :  { %v621_v17 = vpop.f32.mrf.mxu0 }
 0x13b   :  { %5707 = vst [vmem:[#allocation13_spill] sm:$0xff] %v4077_v14  ;;  %v4081_v22 = vadd.f32 %v3882_v4, %v621_v17 }
 0x13c   :  { %v3432_v25 = vpop.f32.mrf.mxu0 }
 0x13d   :  { %854 = vmin.xlane.f32.xlu0 %v4057_v53  ;;  %5708 = vst [vmem:[#allocation14_spill] sm:$0xff] %v4081_v22  ;;  %v4085_v30 = vadd.f32 %v3432_v25, %v3882_v4 }
 0x13e   :  { %v631_v34 = vpop.f32.mrf.mxu0 }
 0x13f   :  { %5709 = vst [vmem:[#allocation15_spill] sm:$0xff] %v4085_v30  ;;  %v4089_v38 = vadd.f32 %v3882_v4, %v631_v34 }
 0x140   :  { %v3435_v42 = vpop.f32.mrf.mxu0 }
 0x141   :  { %860 = vmin.xlane.f32.xlu0 %v4061_v57  ;;  %5710 = vst [vmem:[#allocation16_spill] sm:$0xff] %v4089_v38  ;;  %v4093_v46 = vadd.f32 %v3435_v42, %v3882_v4 }
 0x142   :  { %v641_v50 = vpop.f32.mrf.mxu0 }
 0x143   :  { %5711 = vst [vmem:[#allocation17_spill] sm:$0xff] %v4093_v46  ;;  %v4097_v58 = vadd.f32 %v3882_v4, %v641_v50 }
 0x144   :  { %v3438_v2 = vpop.f32.mrf.mxu0 }
 0x145   :  { %858 = vmin.xlane.f32.xlu0 %v4065_v61  ;;  %5712 = vst [vmem:[#allocation18_spill] sm:$0xff] %v4097_v58  ;;  %v4104_v17 = vadd.f32 %v3438_v2, %v3882_v4 }
 0x146   :  { %v651_v34 = vpop.f32.mrf.mxu0 }
 0x147   :  { %5713 = vst [vmem:[#allocation19_spill] sm:$0xff] %v4104_v17 }
 0x149   :  { %864 = vmin.xlane.f32.xlu0 %v4069_v1 }
 0x14d   :  { %862 = vmin.xlane.f32.xlu0 %v4073_v7 }
 0x151   :  { %868 = vmin.xlane.f32.xlu0 %v4077_v14 }
 0x155   :  { %866 = vmin.xlane.f32.xlu0 %v4081_v22 }
 0x159   :  { %872 = vmin.xlane.f32.xlu0 %v4085_v30 }
 0x15d   :  { %870 = vmin.xlane.f32.xlu0 %v4089_v38 }
 0x161   :  { %876 = vmin.xlane.f32.xlu0 %v4093_v46 }
 0x164   :  { %v773_v8 = vpop.xlane.xlu0 %772 }
 0x165   :  { %vm901_vm1 = vcmp.eq.f32.partialorder %v3885_v6, %v773_v8  ;;  %874 = vmin.xlane.f32.xlu0 %v4097_v58  ;;  %v4114_v6 = vadd.f32 %v3882_v4, %v651_v34  ;;  %v3441_v58 = vpop.f32.mrf.mxu0 }
 0x166   :  { %v4107_v25 = vsel %vm901_vm1, %v4099_v62, 128 }
 0x167   :  { %v1043_v42 = vshra.s32 %v4107_v25, 16  ;;  %5714 = vst [vmem:[#allocation20_spill] sm:$0xff] %v4114_v6  ;;  %v661_v38 = vpop.f32.mrf.mxu0 }
 0x168   :  { %v771_v46 = vpop.xlane.xlu0 %770  ;;  %v777_v50 = vpop.xlane.xlu1 %776 }
 0x169   :  { %vm900_vm2 = vcmp.eq.f32.partialorder %v3889_v9, %v771_v46  ;;  %vm903_vm3 = vcmp.eq.f32.partialorder %v3892_v10, %v777_v50  ;;  %880 = vmin.xlane.f32.xlu0 %v4104_v17  ;;  %v4116_v54 = vcvt.s32.f32 %v1043_v42  ;;  %v4129_v10 = vadd.f32 %v3441_v58, %v3882_v4  ;;  %v3444_v22 = vpop.f32.mrf.mxu0 }
 0x16a   :  { %v4119_v2 = vsel %vm900_vm2, %v4099_v62, 128  ;;  %v4122_v8 = vsel %vm903_vm3, %v4099_v62, 128 }
 0x16b   :  { %1046 = vmin.xlane.f32.xlu1 %v4116_v54  ;;  %v1029_v9 = vshra.s32 %v4119_v2, 16  ;;  %5715 = vst [vmem:[#allocation21_spill] sm:$0xff] %v4129_v10  ;;  %v1071_v42 = vshra.s32 %v4122_v8, 16  ;;  %v671_v7 = vpop.f32.mrf.mxu0 }
 0x16c   :  { %v775_v46 = vpop.xlane.xlu1 %774 }
 0x16d   :  { %vm902_vm4 = vcmp.eq.f32.partialorder %v3895_v12, %v775_v46  ;;  %878 = vmin.xlane.f32.xlu0 %v4114_v6  ;;  %v4131_v34 = vcvt.s32.f32 %v1029_v9  ;;  %v4141_v12 = vadd.f32 %v3882_v4, %v661_v38  ;;  %v4143_v58 = vcvt.s32.f32 %v1071_v42  ;;  %v3447_v1 = vpop.f32.mrf.mxu0 }
 0x16e   :  { %v4135_v50 = vsel %vm902_vm4, %v4099_v62, 128  ;;  %v779_v17 = vpop.xlane.xlu0 %778 }
 0x16f   :  { %1032 = vmin.xlane.f32.xlu1 %v4131_v34  ;;  %5716 = vst [vmem:[#allocation22_spill] sm:$0xff] %v4141_v12  ;;  %v1057_v9 = vshra.s32 %v4135_v50, 16  ;;  %vm904_vm6 = vcmp.eq.f32.partialorder %v3903_v16, %v779_v17  ;;  %v4165_v16 = vadd.f32 %v3882_v4, %v671_v7 }
 0x170   :  { %v781_v30 = vpop.xlane.xlu1 %780  ;;  %v4159_v42 = vsel %vm904_vm6, %v4099_v62, 128 }
 0x171   :  { %vm905_vm5 = vcmp.eq.f32.partialorder %v3900_v15, %v781_v30  ;;  %884 = vmin.xlane.f32.xlu0 %v4129_v10  ;;  %v4153_v15 = vadd.f32 %v3444_v22, %v3882_v4  ;;  %v4155_v30 = vcvt.s32.f32 %v1057_v9  ;;  %5719 = vst [vmem:[#allocation25_spill] sm:$0xff] %v4159_v42  ;;  %5720 = vst [vmem:[#allocation26_spill] sm:$0xff] %v4165_v16  ;;  %v1085_v17 = vshra.s32 %v4159_v42, 16 }
 0x172   :  { %v4147_v46 = vsel %vm905_vm5, %v4099_v62, 128  ;;  %v783_v6 = vpop.xlane.xlu0 %782 }
 0x173   :  { %1074 = vmin.xlane.f32.xlu1 %v4143_v58  ;;  %5717 = vst [vmem:[#allocation23_spill] sm:$0xff] %v4153_v15  ;;  %5718 = vst [vmem:[#allocation24_spill] sm:$0xff] %v4155_v30  ;;  %v1099_v38 = vshra.s32 %v4147_v46, 16  ;;  %vm906_vm8 = vcmp.eq.f32.partialorder %v3911_v20, %v783_v6  ;;  %v4179_v7 = vcvt.s32.f32 %v1085_v17 }
 0x174   :  { %v785_v14 = vpop.xlane.xlu1 %784 }
 0x175   :  { %882 = vmin.xlane.f32.xlu0 %v4141_v12  ;;  %vm907_vm7 = vcmp.eq.f32.partialorder %v3908_v19, %v785_v14  ;;  %v4167_v22 = vcvt.s32.f32 %v1099_v38  ;;  %v4177_v14 = vadd.f32 %v3447_v1, %v3882_v4  ;;  %5723 = vst [vmem:[#allocation29_spill] sm:$0xff] %v4179_v7 }
 0x176   :  { %v787_v10 = vpop.xlane.xlu0 %786  ;;  %v4171_v9 = vsel %vm907_vm7, %v4099_v62, 128 }
 0x177   :  { %1060 = vmin.xlane.f32.xlu1 %v4155_v30  ;;  %5721 = vst [vmem:[#allocation27_spill] sm:$0xff] %v4171_v9  ;;  %5722 = vst [vmem:[#allocation28_spill] sm:$0xff] %v4177_v14  ;;  %v1127_v38 = vshra.s32 %v4171_v9, 16  ;;  %v681_v30 = vpop.f32.mrf.mxu0  ;;  %vm908_vm10 = vcmp.eq.f32.partialorder %v3919_v24, %v787_v10 }
 0x178   :  { %v789_v19 = vpop.xlane.xlu1 %788  ;;  %v4189_v20 = vadd.f32 %v3882_v4, %v681_v30 }
 0x179   :  { %888 = vmin.xlane.f32.xlu0 %v4153_v15  ;;  %v4183_v15 = vsel %vm906_vm8, %v4099_v62, 128  ;;  %vm909_vm9 = vcmp.eq.f32.partialorder %v3916_v23, %v789_v19  ;;  %v4191_v1 = vcvt.s32.f32 %v1127_v38  ;;  %v3450_v9 = vpop.f32.mrf.mxu0 }
 0x17a   :  { %v791_v12 = vpop.xlane.xlu0 %790  ;;  %5724 = vst [vmem:[#allocation30_spill] sm:$0xff] %v4183_v15  ;;  %5725 = vst [vmem:[#allocation31_spill] sm:$0xff] %v4189_v20  ;;  %v1113_v6 = vshra.s32 %v4183_v15, 16  ;;  %v4195_v17 = vsel %vm909_vm9, %v4099_v62, 128  ;;  %v4201_v19 = vadd.f32 %v3450_v9, %v3882_v4 }
 0x17b   :  { %1102 = vmin.xlane.f32.xlu1 %v4167_v22  ;;  %v1155_v38 = vshra.s32 %v4195_v17, 16  ;;  %vm910_vm12 = vcmp.eq.f32.partialorder %v3927_v28, %v791_v12 }
 0x17c   :  { %v793_v23 = vpop.xlane.xlu1 %792  ;;  %5726 = vst [vmem:[#allocation32_spill] sm:$0xff] %v4201_v19  ;;  %v4203_v30 = vcvt.s32.f32 %v1113_v6 }
 0x17d   :  { %886 = vmin.xlane.f32.xlu0 %v4165_v16  ;;  %vm911_vm11 = vcmp.eq.f32.partialorder %v3924_v27, %v793_v23  ;;  %v4217_v10 = vcvt.s32.f32 %v1155_v38 }
 0x17e   :  { %v795_v42 = vpop.xlane.xlu0 %794  ;;  %v4221_v6 = vsel %vm911_vm11, %v4099_v62, 128 }
 0x17f   :  { %1088 = vmin.xlane.f32.xlu1 %v4179_v7  ;;  %v691_v7 = vpop.f32.mrf.mxu0  ;;  %5728 = vst [vmem:[#allocation34_spill] sm:$0xff] %v4221_v6  ;;  %vm912_vm14 = vcmp.eq.f32.partialorder %v3935_v32, %v795_v42 }
 0x180   :  { %v4215_v24 = vadd.f32 %v3882_v4, %v691_v7  ;;  %v797_v27 = vpop.xlane.xlu1 %796  ;;  %v1183_v4 = vshra.s32 %v4221_v6, 16  ;;  %v4232_v7 = vsel %vm910_vm12, %v4099_v62, 128 }
 0x181   :  { %892 = vmin.xlane.f32.xlu0 %v4177_v14  ;;  %v4207_v14 = vsel %vm908_vm10, %v4099_v62, 128  ;;  %5729 = vst [vmem:[#allocation35_spill] sm:$0xff] %v4232_v7  ;;  %vm913_vm13 = vcmp.eq.f32.partialorder %v3932_v31, %v797_v27  ;;  %v1169_v28 = vshra.s32 %v4232_v7, 16  ;;  %v4252_v27 = vsel %vm912_vm14, %v4099_v62, 128 }
 0x182   :  { %v799_v16 = vpop.xlane.xlu0 %798  ;;  %5727 = vst [vmem:[#allocation33_spill] sm:$0xff] %v4215_v24  ;;  %v1141_v9 = vshra.s32 %v4207_v14, 16  ;;  %v4242_v12 = vsel %vm913_vm13, %v4099_v62, 128  ;;  %5733 = vst [vmem:[#allocation39_spill] sm:$0xff] %v4252_v27  ;;  %v1197_v32 = vshra.s32 %v4252_v27, 16 }
 0x183   :  { %1130 = vmin.xlane.f32.xlu1 %v4191_v1  ;;  %5731 = vst [vmem:[#allocation37_spill] sm:$0xff] %v4242_v12  ;;  %v4248_v6 = vcvt.s32.f32 %v1169_v28  ;;  %v1211_v31 = vshra.s32 %v4242_v12, 16  ;;  %vm914_vm1 = vcmp.eq.f32.partialorder %v3943_v36, %v799_v16 }
 0x184   :  { %v4228_v23 = vcvt.s32.f32 %v1141_v9  ;;  %v4275_v27 = vsel %vm914_vm1, %v4099_v62, 128 }
 0x185   :  { %890 = vmin.xlane.f32.xlu0 %v4189_v20  ;;  %5732 = vst [vmem:[#allocation38_spill] sm:$0xff] %v4248_v6  ;;  %v4258_v7 = vcvt.s32.f32 %v1211_v31 }
 0x186   :  { %v4209_v15 = vpop.xlane.xlu0 %802 }
 0x187   :  { %1116 = vmin.xlane.f32.xlu1 %v4203_v30  ;;  %vm916_vm5 = vcmp.eq.f32.partialorder %v3951_v40, %v4209_v15 }
 0x189   :  { %896 = vmin.xlane.f32.xlu0 %v4201_v19  ;;  %v4238_v19 = vcvt.s32.f32 %v1183_v4 }
 0x18a   :  { %v4223_v20 = vpop.xlane.xlu0 %806 }
 0x18b   :  { %1158 = vmin.xlane.f32.xlu1 %v4217_v10  ;;  %5730 = vst [vmem:[#allocation36_spill] sm:$0xff] %v4238_v19  ;;  %vm918_vm9 = vcmp.eq.f32.partialorder %v3959_v44, %v4223_v20 }
 0x18d   :  { %894 = vmin.xlane.f32.xlu0 %v4215_v24  ;;  %v801_v24 = vpop.xlane.xlu1 %800 }
 0x18e   :  { %v4234_v38 = vpop.xlane.xlu0 %810  ;;  %vm915_vm15 = vcmp.eq.f32.partialorder %v3940_v35, %v801_v24  ;;  %v4270_v35 = vcvt.s32.f32 %v1197_v32 }
 0x18f   :  { %1144 = vmin.xlane.f32.xlu1 %v4228_v23  ;;  %v4262_v42 = vsel %vm915_vm15, %v4099_v62, 128  ;;  %vm920_vm12 = vcmp.eq.f32.partialorder %v3967_v48, %v4234_v38 }
 0x190   :  { %v1239_v31 = vshra.s32 %v4262_v42, 16 }
 0x191   :  { %v805_v12 = vpop.xlane.xlu1 %804 }
 0x192   :  { %v4244_v9 = vpop.xlane.xlu0 %814  ;;  %vm917_vm3 = vcmp.eq.f32.partialorder %v3948_v39, %v805_v12  ;;  %v4286_v16 = vcvt.s32.f32 %v1239_v31 }
 0x193   :  { %1186 = vmin.xlane.f32.xlu1 %v4238_v19  ;;  %vm922_vm14 = vcmp.eq.f32.partialorder %v3975_v52, %v4244_v9 }
 0x195   :  { %v809_v39 = vpop.xlane.xlu1 %808 }
 0x196   :  { %v4254_v4 = vpop.xlane.xlu0 %818  ;;  %vm919_vm7 = vcmp.eq.f32.partialorder %v3956_v43, %v809_v39 }
 0x197   :  { %1172 = vmin.xlane.f32.xlu1 %v4248_v6  ;;  %v4324_v43 = vsel %vm919_vm7, %v4099_v62, 128  ;;  %vm924_vm1 = vcmp.eq.f32.partialorder %v3983_v56, %v4254_v4 }
 0x199   :  { %v813_v15 = vpop.xlane.xlu1 %812 }
 0x19a   :  { %v823_v28 = vpop.xlane.xlu0 %822  ;;  %vm921_vm11 = vcmp.eq.f32.partialorder %v3964_v47, %v813_v15 }
 0x19b   :  { %vm926_vm2 = vcmp.eq.f32.partialorder %v3991_v60, %v823_v28  ;;  %1214 = vmin.xlane.f32.xlu1 %v4258_v7  ;;  %v1225_v28 = vshra.s32 %v4275_v27, 16 }
 0x19c   :  { %v4268_v19 = vsel %vm926_vm2, %v4099_v62, 128 }
 0x19d   :  { %5734 = vst [vmem:[#allocation40_spill] sm:$0xff] %v4268_v19  ;;  %v1393_v24 = vshra.s32 %v4268_v19, 16  ;;  %v4291_v19 = vsel %vm917_vm3, %v4099_v62, 128  ;;  %v817_v44 = vpop.xlane.xlu1 %816 }
 0x19e   :  { %v827_v6 = vpop.xlane.xlu0 %826  ;;  %vm923_vm13 = vcmp.eq.f32.partialorder %v3972_v51, %v817_v44  ;;  %v4386_v44 = vsel %vm922_vm14, %v4099_v62, 128 }
 0x19f   :  { %vm928_vm4 = vcmp.eq.f32.partialorder %v3999_v0, %v827_v6  ;;  %1200 = vmin.xlane.f32.xlu1 %v4270_v35  ;;  %v4280_v36 = vcvt.s32.f32 %v1393_v24  ;;  %v4303_v24 = vcvt.s32.f32 %v1225_v28  ;;  %v4375_v38 = vsel %vm923_vm13, %v4099_v62, 128  ;;  %5749 = vst [vmem:[#allocation55_spill] sm:$0xff] %v4386_v44 }
 0x1a0   :  { %v4283_v60 = vsel %vm928_vm4, %v4099_v62, 128  ;;  %5747 = vst [vmem:[#allocation53_spill] sm:$0xff] %v4375_v38  ;;  %v1351_v51 = vshra.s32 %v4375_v38, 16  ;;  %v1337_v52 = vshra.s32 %v4386_v44, 16 }
 0x1a1   :  { %5735 = vst [vmem:[#allocation41_spill] sm:$0xff] %v4280_v36  ;;  %5736 = vst [vmem:[#allocation42_spill] sm:$0xff] %v4283_v60  ;;  %1396 = vmin.xlane.f32.xlu0 %v4280_v36  ;;  %v1421_v32 = vshra.s32 %v4283_v60, 16  ;;  %v1267_v60 = vshra.s32 %v4291_v19, 16  ;;  %v4308_v36 = vsel %vm916_vm5, %v4099_v62, 128  ;;  %v821_v47 = vpop.xlane.xlu1 %820 }
 0x1a2   :  { %v831_v0 = vpop.xlane.xlu0 %830  ;;  %vm925_vm15 = vcmp.eq.f32.partialorder %v3980_v55, %v821_v47  ;;  %v4403_v38 = vcvt.s32.f32 %v1337_v52  ;;  %v4407_v47 = vsel %vm924_vm1, %v4099_v62, 128 }
 0x1a3   :  { %vm930_vm6 = vcmp.eq.f32.partialorder %v4007_v5, %v831_v0  ;;  %1242 = vmin.xlane.f32.xlu1 %v4286_v16  ;;  %v4297_v6 = vcvt.s32.f32 %v1421_v32  ;;  %v4319_v28 = vcvt.s32.f32 %v1267_v60  ;;  %v4396_v9 = vsel %vm925_vm15, %v4099_v62, 128 }
 0x1a4   :  { %v4300_v12 = vsel %vm930_vm6, %v4099_v62, 128  ;;  %5750 = vst [vmem:[#allocation56_spill] sm:$0xff] %v4396_v9  ;;  %5751 = vst [vmem:[#allocation57_spill] sm:$0xff] %v4403_v38  ;;  %v1379_v55 = vshra.s32 %v4396_v9, 16  ;;  %v1365_v56 = vshra.s32 %v4407_v47, 16 }
 0x1a5   :  { %5737 = vst [vmem:[#allocation43_spill] sm:$0xff] %v4297_v6  ;;  %5738 = vst [vmem:[#allocation44_spill] sm:$0xff] %v4300_v12  ;;  %1424 = vmin.xlane.f32.xlu0 %v4297_v6  ;;  %v1449_v31 = vshra.s32 %v4300_v12, 16  ;;  %v1253_v12 = vshra.s32 %v4308_v36, 16 }
 0x1a6   :  { %v835_v40 = vpop.xlane.xlu0 %834  ;;  %v4421_v9 = vcvt.s32.f32 %v1365_v56 }
 0x1a7   :  { %vm932_vm8 = vcmp.eq.f32.partialorder %v4015_v13, %v835_v40  ;;  %1228 = vmin.xlane.f32.xlu1 %v4303_v24  ;;  %v4313_v5 = vcvt.s32.f32 %v1449_v31  ;;  %v4337_v40 = vcvt.s32.f32 %v1253_v12 }
 0x1a8   :  { %v4316_v32 = vsel %vm932_vm8, %v4099_v62, 128 }
 0x1a9   :  { %5739 = vst [vmem:[#allocation45_spill] sm:$0xff] %v4313_v5  ;;  %5740 = vst [vmem:[#allocation46_spill] sm:$0xff] %v4316_v32  ;;  %1452 = vmin.xlane.f32.xlu0 %v4313_v5  ;;  %v1477_v0 = vshra.s32 %v4316_v32, 16  ;;  %v1295_v32 = vshra.s32 %v4324_v43, 16  ;;  %v4341_v5 = vsel %vm918_vm9, %v4099_v62, 128 }
 0x1aa   :  { %v839_v13 = vpop.xlane.xlu0 %838  ;;  %v1281_v12 = vshra.s32 %v4341_v5, 16 }
 0x1ab   :  { %vm934_vm10 = vcmp.eq.f32.partialorder %v4023_v21, %v839_v13  ;;  %1270 = vmin.xlane.f32.xlu1 %v4319_v28  ;;  %v4330_v39 = vcvt.s32.f32 %v1477_v0  ;;  %v4350_v0 = vcvt.s32.f32 %v1295_v32  ;;  %v4354_v13 = vsel %vm921_vm11, %v4099_v62, 128 }
 0x1ac   :  { %v4333_v60 = vsel %vm934_vm10, %v4099_v62, 128  ;;  %5744 = vst [vmem:[#allocation50_spill] sm:$0xff] %v4354_v13  ;;  %v4361_v15 = vcvt.s32.f32 %v1281_v12  ;;  %v4365_v32 = vsel %vm920_vm12, %v4099_v62, 128  ;;  %v825_v12 = vpop.xlane.xlu1 %824 }
 0x1ad   :  { %5741 = vst [vmem:[#allocation47_spill] sm:$0xff] %v4330_v39  ;;  %5742 = vst [vmem:[#allocation48_spill] sm:$0xff] %v4333_v60  ;;  %v1505_v31 = vshra.s32 %v4333_v60, 16  ;;  %1480 = vmin.xlane.f32.xlu0 %v4330_v39  ;;  %v1309_v48 = vshra.s32 %v4365_v32, 16  ;;  %vm927_vm2 = vcmp.eq.f32.partialorder %v3988_v59, %v825_v12 }
 0x1ae   :  { %v4343_v21 = vpop.xlane.xlu0 %842  ;;  %5745 = vst [vmem:[#allocation51_spill] sm:$0xff] %v4361_v15  ;;  %5746 = vst [vmem:[#allocation52_spill] sm:$0xff] %v4365_v32  ;;  %v4417_v4 = vsel %vm927_vm2, %v4099_v62, 128 }
 0x1af   :  { %1256 = vmin.xlane.f32.xlu1 %v4337_v40  ;;  %v4347_v20 = vcvt.s32.f32 %v1505_v31  ;;  %v1323_v31 = vshra.s32 %v4354_v13, 16  ;;  %v4382_v13 = vcvt.s32.f32 %v1309_v48  ;;  %5753 = vst [vmem:[#allocation59_spill] sm:$0xff] %v4417_v4  ;;  %v1407_v59 = vshra.s32 %v4417_v4, 16 }
 0x1b0   :  { %v829_v32 = vpop.xlane.xlu1 %828  ;;  %vm936_vm8 = vcmp.eq.f32.partialorder %v4031_v29, %v4343_v21 }
 0x1b1   :  { %5743 = vst [vmem:[#allocation49_spill] sm:$0xff] %v4347_v20  ;;  %1508 = vmin.xlane.f32.xlu0 %v4347_v20  ;;  %v4371_v39 = vcvt.s32.f32 %v1323_v31  ;;  %5748 = vst [vmem:[#allocation54_spill] sm:$0xff] %v4382_v13  ;;  %vm929_vm3 = vcmp.eq.f32.partialorder %v3996_v63, %v829_v32 }
 0x1b2   :  { %v4356_v60 = vpop.xlane.xlu0 %848  ;;  %v4425_v12 = vsel %vm929_vm3, %v4099_v62, 128 }
 0x1b3   :  { %1298 = vmin.xlane.f32.xlu1 %v4350_v0  ;;  %5754 = vst [vmem:[#allocation60_spill] sm:$0xff] %v4425_v12  ;;  %v1435_v63 = vshra.s32 %v4425_v12, 16  ;;  %vm939_vm9 = vcmp.eq.f32.partialorder %v4036_v33, %v4356_v60  ;;  %v116_v60 = vld [vmem:[%s5594_s1 + $0x78] sm:$0xff] }
 0x1b4   :  { %v4483_v29 = vsel %vm939_vm9, %v4099_v62, 128  ;;  %3451 = vmatprep.subr.mxu0 %v116_v60  ;;  %3579 = vmatprep.subr.mxu1 %v116_v60 }
 0x1b5   :  { %3452 = vmatpush3.msra.mxu0 %v116_v60  ;;  %3595 = vmatpush3.msra.mxu1 %v116_v60 }
 0x1b6   :  { %v4367_v20 = vpop.xlane.xlu0 %846 }
 0x1b7   :  { %1284 = vmin.xlane.f32.xlu1 %v4361_v15  ;;  %v4392_v15 = vcvt.s32.f32 %v1351_v51  ;;  %v833_v51 = vpop.xlane.xlu1 %832  ;;  %vm938_vm10 = vcmp.eq.f32.partialorder %v4041_v37, %v4367_v20 }
 0x1b8   :  { %vm931_vm4 = vcmp.eq.f32.partialorder %v4004_v3, %v833_v51  ;;  %v4494_v33 = vsel %vm938_vm10, %v4099_v62, 128 }
 0x1b9   :  { %v4435_v32 = vsel %vm931_vm4, %v4099_v62, 128  ;;  %5760 = vst [vmem:[#allocation66_spill] sm:$0xff] %v4494_v33  ;;  %v1561_v37 = vshra.s32 %v4494_v33, 16 }
 0x1ba   :  { %v4377_v6 = vpop.xlane.xlu0 %852  ;;  %5756 = vst [vmem:[#allocation62_spill] sm:$0xff] %v4435_v32  ;;  %v1463_v3 = vshra.s32 %v4435_v32, 16 }
 0x1bb   :  { %1326 = vmin.xlane.f32.xlu1 %v4371_v39  ;;  %v837_v52 = vpop.xlane.xlu1 %836  ;;  %vm941_vm11 = vcmp.eq.f32.partialorder %v4045_v41, %v4377_v6  ;;  %v114_v6 = vld [vmem:[%s5594_s1 + $0x68] sm:$0xff]  ;;  %v4521_v33 = vcvt.s32.f32 %v1561_v37  ;;  %v1028_v37 = vand.u32 65535, %v4119_v2 }
 0x1bc   :  { %vm933_vm5 = vcmp.eq.f32.partialorder %v4012_v11, %v837_v52  ;;  %v4449_v12 = vcvt.s32.f32 %v1463_v3  ;;  %v4511_v41 = vsel %vm941_vm11, %v4099_v62, 128 }
 0x1bd   :  { %v4445_v51 = vsel %vm933_vm5, %v4099_v62, 128  ;;  %5762 = vst [vmem:[#allocation68_spill] sm:$0xff] %v4511_v41  ;;  %v1603_v60 = vshra.s32 %v4511_v41, 16  ;;  %5763 = vst [vmem:[#allocation69_spill] sm:$0xff] %v4521_v33 }
 0x1be   :  { %v4388_v31 = vpop.xlane.xlu0 %850  ;;  %5757 = vst [vmem:[#allocation63_spill] sm:$0xff] %v4445_v51  ;;  %v1491_v11 = vshra.s32 %v4445_v51, 16 }
 0x1bf   :  { %1312 = vmin.xlane.f32.xlu1 %v4382_v13  ;;  %v4413_v13 = vcvt.s32.f32 %v1379_v55  ;;  %v4431_v55 = vcvt.s32.f32 %v1407_v59  ;;  %v841_v56 = vpop.xlane.xlu1 %840  ;;  %vm940_vm12 = vcmp.eq.f32.partialorder %v4049_v45, %v4388_v31  ;;  %v113_v45 = vld [vmem:[%s5594_s1 + $0x60] sm:$0xff] }
 0x1c0   :  { %vm935_vm6 = vcmp.eq.f32.partialorder %v4020_v18, %v841_v56  ;;  %v4460_v32 = vcvt.s32.f32 %v1491_v11  ;;  %v4527_v31 = vsel %vm940_vm12, %v4099_v62, 128 }
 0x1c1   :  { %5752 = vst [vmem:[#allocation58_spill] sm:$0xff] %v4413_v13  ;;  %5755 = vst [vmem:[#allocation61_spill] sm:$0xff] %v4431_v55  ;;  %v4453_v52 = vsel %vm935_vm6, %v4099_v62, 128 }
 0x1c2   :  { %v4398_v48 = vpop.xlane.xlu0 %856  ;;  %5764 = vst [vmem:[#allocation70_spill] sm:$0xff] %v4527_v31 }
 0x1c3   :  { %1354 = vmin.xlane.f32.xlu1 %v4392_v15  ;;  %v845_v59 = vpop.xlane.xlu1 %844  ;;  %vm943_vm13 = vcmp.eq.f32.partialorder %v4053_v49, %v4398_v48  ;;  %v111_v49 = vld [vmem:[%s5594_s1 + $0x50] sm:$0xff] }
 0x1c4   :  { %vm937_vm7 = vcmp.eq.f32.partialorder %v4028_v26, %v845_v59  ;;  %v4474_v26 = vsel %vm936_vm8, %v4099_v62, 128  ;;  %v4549_v2 = vsel %vm943_vm13, %v4099_v62, 128 }
 0x1c5   :  { %v4463_v18 = vsel %vm937_vm7, %v4099_v62, 128  ;;  %v1533_v59 = vshra.s32 %v4474_v26, 16 }
 0x1c6   :  { %v4411_v44 = vpop.xlane.xlu0 %854  ;;  %5758 = vst [vmem:[#allocation64_spill] sm:$0xff] %v4463_v18  ;;  %v1547_v3 = vshra.s32 %v4463_v18, 16 }
 0x1c7   :  { %1340 = vmin.xlane.f32.xlu1 %v4403_v38  ;;  %v4491_v18 = vcvt.s32.f32 %v1533_v59  ;;  %v115_v59 = vld [vmem:[%s5594_s1 + $0x70] sm:$0xff]  ;;  %vm942_vm15 = vcmp.eq.f32.partialorder %v4057_v53, %v4411_v44 }
 0x1c8   :  { %v4480_v11 = vcvt.s32.f32 %v1547_v3  ;;  %3453 = vmatprep.subr.mxu0 %v115_v59  ;;  %3580 = vmatprep.subr.mxu1 %v115_v59 }
 0x1c9   :  { %5759 = vst [vmem:[#allocation65_spill] sm:$0xff] %v4491_v18  ;;  %3454 = vmatpush3.msra.mxu0 %v115_v59  ;;  %3596 = vmatpush3.msra.mxu1 %v115_v59 }
 0x1ca   :  { %v4427_v38 = vpop.xlane.xlu0 %860  ;;  %3455 = vmatprep.subr.mxu0 %v114_v6  ;;  %3581 = vmatprep.subr.mxu1 %v114_v6 }
 0x1cb   :  { %1382 = vmin.xlane.f32.xlu1 %v4413_v13  ;;  %v4441_v13 = vcvt.s32.f32 %v1435_v63  ;;  %v1519_v63 = vshra.s32 %v4453_v52, 16  ;;  %3456 = vmatpush3.msra.mxu0 %v114_v6  ;;  %vm945_vm2 = vcmp.eq.f32.partialorder %v4061_v57, %v4427_v38 }
 0x1cc   :  { %3457 = vmatprep.subr.mxu0 %v113_v45  ;;  %3597 = vmatpush3.msra.mxu1 %v114_v6  ;;  %v4541_v6 = vcvt.s32.f32 %v1603_v60  ;;  %v4591_v57 = vsel %vm945_vm2, %v4099_v62, 128 }
 0x1cd   :  { %v4471_v51 = vcvt.s32.f32 %v1519_v63  ;;  %v1575_v63 = vshra.s32 %v4483_v29, 16  ;;  %3458 = vmatpush3.msra.mxu0 %v113_v45  ;;  %3582 = vmatprep.subr.mxu1 %v113_v45  ;;  %5766 = vst [vmem:[#allocation72_spill] sm:$0xff] %v4591_v57 }
 0x1ce   :  { %v4439_v4 = vpop.xlane.xlu0 %858  ;;  %3598 = vmatpush3.msra.mxu1 %v113_v45 }
 0x1cf   :  { %1368 = vmin.xlane.f32.xlu1 %v4421_v9  ;;  %v4505_v20 = vcvt.s32.f32 %v1575_v63  ;;  %v1042_v63 = vand.u32 65535, %v4107_v25  ;;  %v112_v25 = vld [vmem:[%s5594_s1 + $0x58] sm:$0xff]  ;;  %vm944_vm4 = vcmp.eq.f32.partialorder %v4065_v61, %v4439_v4  ;;  %v106_v61 = vld [vmem:[%s5594_s1 + $0x28] sm:$0xff] }
 0x1d0   :  { %3459 = vmatprep.subr.mxu0 %v112_v25  ;;  %3583 = vmatprep.subr.mxu1 %v112_v25 }
 0x1d1   :  { %5761 = vst [vmem:[#allocation67_spill] sm:$0xff] %v4505_v20  ;;  %v1044_v41 = vcvt.s32.f32 %v1042_v63  ;;  %3460 = vmatpush3.msra.mxu0 %v112_v25  ;;  %v1070_v63 = vand.u32 65535, %v4122_v8  ;;  %3599 = vmatpush3.msra.mxu1 %v112_v25  ;;  %v4574_v8 = vsel %vm942_vm15, %v4099_v62, 128 }
 0x1d2   :  { %3461 = vmatprep.subr.mxu0 %v111_v49  ;;  %3584 = vmatprep.subr.mxu1 %v111_v49  ;;  %v1617_v44 = vshra.s32 %v4574_v8, 16 }
 0x1d3   :  { %1410 = vmin.xlane.f32.xlu1 %v4431_v55  ;;  %v4455_v55 = vpop.xlane.xlu0 %864  ;;  %3462 = vmatpush3.msra.mxu0 %v111_v49  ;;  %v1072_v53 = vcvt.s32.f32 %v1070_v63 }
 0x1d4   :  { %3600 = vmatpush3.msra.mxu1 %v111_v49  ;;  %v107_v49 = vld [vmem:[%s5594_s1 + $0x30] sm:$0xff] }
 0x1d7   :  { %1438 = vmin.xlane.f32.xlu1 %v4441_v13  ;;  %v4468_v56 = vpop.xlane.xlu0 %862 }
 0x1db   :  { %1466 = vmin.xlane.f32.xlu1 %v4449_v12  ;;  %v4485_v21 = vpop.xlane.xlu0 %868 }
 0x1df   :  { %1494 = vmin.xlane.f32.xlu1 %v4460_v32  ;;  %v4502_v3 = vpop.xlane.xlu0 %866 }
 0x1e3   :  { %1522 = vmin.xlane.f32.xlu1 %v4471_v51 }
 0x1e7   :  { %1550 = vmin.xlane.f32.xlu1 %v4480_v11 }
 0x1eb   :  { %1536 = vmin.xlane.f32.xlu1 %v4491_v18  ;;  %v1589_v18 = vshra.s32 %v4527_v31, 16  ;;  %v1030_v31 = vcvt.s32.f32 %v1028_v37 }
 0x1ef   :  { %1578 = vmin.xlane.f32.xlu1 %v4505_v20  ;;  %v4529_v20 = vpop.xlane.xlu0 %872 }
 0x1f3   :  { %1564 = vmin.xlane.f32.xlu1 %v4521_v33  ;;  %v4558_v60 = vpop.xlane.xlu0 %870  ;;  %v4563_v33 = vcvt.s32.f32 %v1589_v18  ;;  %v1056_v18 = vand.u32 65535, %v4135_v50 }
 0x1f4   :  { %v4538_v59 = vpop.xlane.xlu1 %1046 }
 0x1f5   :  { %vm1048_vm14 = vcmp.eq.f32.partialorder %v4116_v54, %v4538_v59  ;;  %v110_v54 = vld [vmem:[%s5594_s1 + $0x48] sm:$0xff]  ;;  %v1058_v63 = vcvt.s32.f32 %v1056_v18  ;;  %v105_v18 = vld [vmem:[%s5594_s1 + $0x20] sm:$0xff] }
 0x1f6   :  { %v1049_v48 = vsel %vm1048_vm14, %v1044_v41, inf  ;;  %v1631_v41 = vshra.s32 %v4549_v2, 16  ;;  %3463 = vmatprep.subr.mxu0 %v110_v54  ;;  %3585 = vmatprep.subr.mxu1 %v110_v54 }
 0x1f7   :  { %1606 = vmin.xlane.f32.xlu1 %v4541_v6  ;;  %1050 = vmin.xlane.f32.xlu0 %v1049_v48  ;;  %v109_v48 = vld [vmem:[%s5594_s1 + $0x40] sm:$0xff]  ;;  %v4593_v38 = vpop.xlane.xlu0 %876 }
 0x1f8   :  { %v4560_v45 = vpop.xlane.xlu1 %1032  ;;  %3464 = vmatpush3.msra.mxu0 %v110_v54  ;;  %3601 = vmatpush3.msra.mxu1 %v110_v54 }
 0x1f9   :  { %vm1034_vm1 = vcmp.eq.f32.partialorder %v4131_v34, %v4560_v45  ;;  %v108_v34 = vld [vmem:[%s5594_s1 + $0x38] sm:$0xff]  ;;  %3465 = vmatprep.subr.mxu0 %v109_v48  ;;  %3586 = vmatprep.subr.mxu1 %v109_v48 }
 0x1fa   :  { %v1035_v25 = vsel %vm1034_vm1, %v1030_v31, inf  ;;  %v4586_v31 = vcvt.s32.f32 %v1631_v41  ;;  %3466 = vmatpush3.msra.mxu0 %v109_v48  ;;  %3602 = vmatpush3.msra.mxu1 %v109_v48  ;;  %v1659_v41 = vshra.s32 %v4591_v57, 16  ;;  %v5770_v48 = vld [vmem:[#allocation11_spill] sm:$0xff] }
 0x1fb   :  { %1592 = vmin.xlane.f32.xlu1 %v4563_v33  ;;  %1036 = vmin.xlane.f32.xlu0 %v1035_v25  ;;  %v4605_v25 = vcvt.s32.f32 %v1617_v44  ;;  %vm947_vm6 = vcmp.eq.f32.partialorder %v5770_v48, %v4455_v55  ;;  %v5771_v44 = vld [vmem:[#allocation25_spill] sm:$0xff]  ;;  %v5774_v48 = vld [vmem:[#allocation12_spill] sm:$0xff] }
 0x1fc   :  { %v4583_v37 = vpop.xlane.xlu1 %1074  ;;  %5765 = vst [vmem:[#allocation71_spill] sm:$0xff] %v4586_v31  ;;  %3467 = vmatprep.subr.mxu0 %v108_v34  ;;  %3587 = vmatprep.subr.mxu1 %v108_v34  ;;  %v4632_v55 = vsel %vm947_vm6, %v4099_v62, 128  ;;  %vm946_vm8 = vcmp.eq.f32.partialorder %v5774_v48, %v4468_v56  ;;  %v103_v56 = vld [vmem:[%s5594_s1 + $0x10] sm:$0xff] }
 0x1fd   :  { %vm1076_vm3 = vcmp.eq.f32.partialorder %v4143_v58, %v4583_v37  ;;  %v1098_v58 = vand.u32 65535, %v4147_v46  ;;  %3468 = vmatpush3.msra.mxu0 %v108_v34  ;;  %5767 = vst [vmem:[#allocation73_spill] sm:$0xff] %v4605_v25  ;;  %v4613_v46 = vsel %vm944_vm4, %v4099_v62, 128  ;;  %3603 = vmatpush3.msra.mxu1 %v108_v34  ;;  %5773 = vst [vmem:[#allocation25_spill] sm:$0xff] %v4632_v55 }
 0x1fe   :  { %v1077_v50 = vsel %vm1076_vm3, %v1072_v53, inf  ;;  %v5768_v53 = vld [vmem:[#allocation24_spill] sm:$0xff]  ;;  %3469 = vmatprep.subr.mxu0 %v107_v49  ;;  %3588 = vmatprep.subr.mxu1 %v107_v49  ;;  %v1645_v34 = vshra.s32 %v4613_v46, 16 }
 0x1ff   :  { %1634 = vmin.xlane.f32.xlu1 %v4586_v31  ;;  %1078 = vmin.xlane.f32.xlu0 %v1077_v50  ;;  %5769 = vst [vmem:[#allocation24_spill] sm:$0xff] %v4613_v46  ;;  %v1084_v50 = vand.u32 65535, %v5771_v44  ;;  %v1100_v31 = vcvt.s32.f32 %v1098_v58  ;;  %v104_v58 = vld [vmem:[%s5594_s1 + $0x18] sm:$0xff] }
 0x200   :  { %v4602_v54 = vpop.xlane.xlu1 %1060  ;;  %3470 = vmatpush3.msra.mxu0 %v107_v49  ;;  %3604 = vmatpush3.msra.mxu1 %v107_v49  ;;  %v4644_v46 = vcvt.s32.f32 %v1645_v34  ;;  %v5779_v34 = vld [vmem:[#allocation30_spill] sm:$0xff] }
 0x201   :  { %vm1062_vm5 = vcmp.eq.f32.partialorder %v5768_v53, %v4602_v54  ;;  %v4622_v53 = vpop.xlane.xlu0 %874  ;;  %3471 = vmatprep.subr.mxu0 %v106_v61  ;;  %3589 = vmatprep.subr.mxu1 %v106_v61  ;;  %v1086_v49 = vcvt.s32.f32 %v1084_v50 }
 0x202   :  { %v1063_v4 = vsel %vm1062_vm5, %v1058_v63, inf  ;;  %v4627_v63 = vcvt.s32.f32 %v1659_v41  ;;  %3472 = vmatpush3.msra.mxu0 %v106_v61  ;;  %v5775_v41 = vld [vmem:[#allocation27_spill] sm:$0xff]  ;;  %3605 = vmatpush3.msra.mxu1 %v106_v61  ;;  %v5778_v61 = vld [vmem:[#allocation13_spill] sm:$0xff] }
 0x203   :  { %1620 = vmin.xlane.f32.xlu1 %v4605_v25  ;;  %1064 = vmin.xlane.f32.xlu0 %v1063_v4  ;;  %v5776_v25 = vld [vmem:[#allocation29_spill] sm:$0xff]  ;;  %vm949_vm10 = vcmp.eq.f32.partialorder %v5778_v61, %v4485_v21  ;;  %v5780_v61 = vld [vmem:[#allocation14_spill] sm:$0xff] }
 0x204   :  { %v4624_v57 = vpop.xlane.xlu1 %1102  ;;  %5772 = vst [vmem:[#allocation11_spill] sm:$0xff] %v4627_v63  ;;  %3473 = vmatprep.subr.mxu0 %v105_v18  ;;  %3590 = vmatprep.subr.mxu1 %v105_v18  ;;  %v4671_v21 = vsel %vm949_vm10, %v4099_v62, 128  ;;  %vm948_vm12 = vcmp.eq.f32.partialorder %v5780_v61, %v4502_v3 }
 0x205   :  { %vm1104_vm7 = vcmp.eq.f32.partialorder %v4167_v22, %v4624_v57  ;;  %v1126_v22 = vand.u32 65535, %v5775_v41  ;;  %3474 = vmatpush3.msra.mxu0 %v105_v18  ;;  %v4654_v48 = vpop.xlane.xlu0 %880  ;;  %3606 = vmatpush3.msra.mxu1 %v105_v18  ;;  %v1112_v41 = vand.u32 65535, %v5779_v34  ;;  %v4690_v3 = vsel %vm948_vm12, %v4099_v62, 128 }
 0x206   :  { %v1105_v4 = vsel %vm1104_vm7, %v1100_v31, inf  ;;  %v1687_v31 = vshra.s32 %v4632_v55, 16  ;;  %3475 = vmatprep.subr.mxu0 %v104_v58  ;;  %3591 = vmatprep.subr.mxu1 %v104_v58  ;;  %5781 = vst [vmem:[#allocation27_spill] sm:$0xff] %v4690_v3 }
 0x207   :  { %1662 = vmin.xlane.f32.xlu1 %v4627_v63  ;;  %1106 = vmin.xlane.f32.xlu0 %v1105_v4  ;;  %v4652_v4 = vsel %vm946_vm8, %v4099_v62, 128  ;;  %v1128_v63 = vcvt.s32.f32 %v1126_v22  ;;  %v101_v22 = vld [vmem:[%s5594_s1] sm:$0xff]  ;;  %v1114_v34 = vcvt.s32.f32 %v1112_v41 }
 0x208   :  { %v4641_v44 = vpop.xlane.xlu1 %1088  ;;  %5777 = vst [vmem:[#allocation12_spill] sm:$0xff] %v4652_v4  ;;  %3476 = vmatpush3.msra.mxu0 %v104_v58  ;;  %v4666_v18 = vcvt.s32.f32 %v1687_v31  ;;  %3607 = vmatpush3.msra.mxu1 %v104_v58 }
 0x209   :  { %vm1090_vm9 = vcmp.eq.f32.partialorder %v5776_v25, %v4641_v44  ;;  %v102_v25 = vld [vmem:[%s5594_s1 + $0x8] sm:$0xff]  ;;  %3477 = vmatprep.subr.mxu0 %v103_v56  ;;  %3592 = vmatprep.subr.mxu1 %v103_v56  ;;  %v4680_v31 = vpop.xlane.xlu0 %878 }
 0x20a   :  { %v1091_v50 = vsel %vm1090_vm9, %v1086_v49, inf  ;;  %v1673_v49 = vshra.s32 %v4652_v4, 16  ;;  %3478 = vmatpush3.msra.mxu0 %v103_v56  ;;  %3608 = vmatpush3.msra.mxu1 %v103_v56  ;;  %v1140_v56 = vand.u32 65535, %v4207_v14  ;;  %v5785_v14 = vld [vmem:[#allocation16_spill] sm:$0xff] }
 0x20b   :  { %1648 = vmin.xlane.f32.xlu1 %v4644_v46  ;;  %1092 = vmin.xlane.f32.xlu0 %v1091_v50  ;;  %vm950_vm1 = vcmp.eq.f32.partialorder %v5785_v14, %v4558_v60  ;;  %v5789_v60 = vld [vmem:[#allocation17_spill] sm:$0xff] }
 0x20c   :  { %v4663_v55 = vpop.xlane.xlu1 %1130  ;;  %3479 = vmatprep.subr.mxu0 %v102_v25  ;;  %v4685_v4 = vcvt.s32.f32 %v1673_v49  ;;  %3593 = vmatprep.subr.mxu1 %v102_v25  ;;  %vm953_vm3 = vcmp.eq.f32.partialorder %v5789_v60, %v4593_v38  ;;  %v5796_v60 = vld [vmem:[#allocation37_spill] sm:$0xff] }
 0x20d   :  { %vm1132_vm11 = vcmp.eq.f32.partialorder %v4191_v1, %v4663_v55  ;;  %v1154_v1 = vand.u32 65535, %v4195_v17  ;;  %3480 = vmatpush3.msra.mxu0 %v102_v25  ;;  %3609 = vmatpush3.msra.mxu1 %v102_v25 }
 0x20e   :  { %v1133_v50 = vsel %vm1132_vm11, %v1128_v63, inf  ;;  %v1715_v63 = vshra.s32 %v4671_v21, 16  ;;  %3481 = vmatprep.subr.mxu0 %v101_v22  ;;  %3594 = vmatprep.subr.mxu1 %v101_v22 }
 0x20f   :  { %1690 = vmin.xlane.f32.xlu1 %v4666_v18  ;;  %1134 = vmin.xlane.f32.xlu0 %v1133_v50  ;;  %v5782_v50 = vld [vmem:[#allocation15_spill] sm:$0xff]  ;;  %v1156_v49 = vcvt.s32.f32 %v1154_v1  ;;  %v5786_v1 = vld [vmem:[#allocation34_spill] sm:$0xff] }
 0x210   :  { %v4682_v58 = vpop.xlane.xlu1 %1116  ;;  %3482 = vmatpush3.msra.mxu0 %v101_v22  ;;  %vm951_vm14 = vcmp.eq.f32.partialorder %v5782_v50, %v4529_v20  ;;  %v4699_v61 = vcvt.s32.f32 %v1715_v63  ;;  %3610 = vmatpush3.msra.mxu1 %v101_v22  ;;  %v4706_v20 = vpop.xlane.xlu0 %884  ;;  %v1142_v50 = vcvt.s32.f32 %v1140_v56 }
 0x211   :  { %vm1118_vm13 = vcmp.eq.f32.partialorder %v4203_v30, %v4682_v58  ;;  %v1701_v30 = vshra.s32 %v4690_v3, 16  ;;  %v4704_v25 = vsel %vm951_vm14, %v4099_v62, 128 }
 0x212   :  { %v1119_v17 = vsel %vm1118_vm13, %v1114_v34, inf  ;;  %5783 = vst [vmem:[#allocation29_spill] sm:$0xff] %v4699_v61  ;;  %5784 = vst [vmem:[#allocation13_spill] sm:$0xff] %v4704_v25 }
 0x213   :  { %1676 = vmin.xlane.f32.xlu1 %v4685_v4  ;;  %1120 = vmin.xlane.f32.xlu0 %v1119_v17  ;;  %v1182_v17 = vand.u32 65535, %v5786_v1  ;;  %v4715_v22 = vcvt.s32.f32 %v1701_v30 }
 0x214   :  { %v4696_v41 = vpop.xlane.xlu1 %1158  ;;  %v4726_v56 = vpop.xlane.xlu0 %882 }
 0x215   :  { %vm1160_vm15 = vcmp.eq.f32.partialorder %v4217_v10, %v4696_v41  ;;  %v1743_v10 = vshra.s32 %v4704_v25, 16  ;;  %5787 = vst [vmem:[#allocation30_spill] sm:$0xff] %v4715_v22  ;;  %v1184_v30 = vcvt.s32.f32 %v1182_v17 }
 0x216   :  { %v1161_v34 = vsel %vm1160_vm15, %v1156_v49, inf  ;;  %v4720_v49 = vsel %vm950_vm1, %v4099_v62, 128 }
 0x217   :  { %1718 = vmin.xlane.f32.xlu1 %v4699_v61  ;;  %1162 = vmin.xlane.f32.xlu0 %v1161_v34  ;;  %5788 = vst [vmem:[#allocation14_spill] sm:$0xff] %v4720_v49  ;;  %v5790_v34 = vld [vmem:[#allocation35_spill] sm:$0xff]  ;;  %v1729_v25 = vshra.s32 %v4720_v49, 16  ;;  %v5793_v61 = vld [vmem:[#allocation36_spill] sm:$0xff] }
 0x218   :  { %v4712_v63 = vpop.xlane.xlu1 %1144  ;;  %v1168_v14 = vand.u32 65535, %v5790_v34  ;;  %v1210_v34 = vand.u32 65535, %v5796_v60 }
 0x219   :  { %vm1146_vm2 = vcmp.eq.f32.partialorder %v4228_v23, %v4712_v63  ;;  %v4731_v23 = vcvt.s32.f32 %v1743_v10 }
 0x21a   :  { %v1147_v3 = vsel %vm1146_vm2, %v1142_v50, inf  ;;  %v4736_v50 = vsel %vm953_vm3, %v4099_v62, 128  ;;  %v1170_v49 = vcvt.s32.f32 %v1168_v14 }
 0x21b   :  { %1704 = vmin.xlane.f32.xlu1 %v4715_v22  ;;  %1148 = vmin.xlane.f32.xlu0 %v1147_v3  ;;  %5792 = vst [vmem:[#allocation16_spill] sm:$0xff] %v4731_v23  ;;  %5794 = vst [vmem:[#allocation34_spill] sm:$0xff] %v4736_v50  ;;  %v5795_v3 = vld [vmem:[#allocation18_spill] sm:$0xff]  ;;  %v1771_v10 = vshra.s32 %v4736_v50, 16  ;;  %v4745_v22 = vcvt.s32.f32 %v1729_v25  ;;  %v1212_v25 = vcvt.s32.f32 %v1210_v34 }
 0x21c   :  { %v4728_v1 = vpop.xlane.xlu1 %1186  ;;  %vm952_vm5 = vcmp.eq.f32.partialorder %v5795_v3, %v4622_v53  ;;  %v5799_v3 = vld [vmem:[#allocation19_spill] sm:$0xff] }
 0x21d   :  { %5791 = vst [vmem:[#allocation15_spill] sm:$0xff] %v4728_v1  ;;  %vm1188_vm4 = vcmp.eq.f32.partialorder %v5793_v61, %v4728_v1  ;;  %v5797_v61 = vld [vmem:[#allocation38_spill] sm:$0xff]  ;;  %v889_v1 = vpop.xlane.xlu0 %888  ;;  %vm955_vm7 = vcmp.eq.f32.partialorder %v5799_v3, %v4654_v48  ;;  %v5801_v48 = vld [vmem:[#allocation20_spill] sm:$0xff] }
 0x21e   :  { %v1189_v38 = vsel %vm1188_vm4, %v1184_v30, inf  ;;  %v4750_v30 = vsel %vm952_vm5, %v4099_v62, 128  ;;  %vm954_vm9 = vcmp.eq.f32.partialorder %v5801_v48, %v4680_v31 }
 0x21f   :  { %1746 = vmin.xlane.f32.xlu1 %v4731_v23  ;;  %1190 = vmin.xlane.f32.xlu0 %v1189_v38  ;;  %5798 = vst [vmem:[#allocation17_spill] sm:$0xff] %v4750_v30  ;;  %v5800_v38 = vld [vmem:[#allocation39_spill] sm:$0xff]  ;;  %v1757_v50 = vshra.s32 %v4750_v30, 16  ;;  %v4759_v23 = vcvt.s32.f32 %v1771_v10 }
 0x220   :  { %v4742_v17 = vpop.xlane.xlu1 %1172  ;;  %v1196_v14 = vand.u32 65535, %v5800_v38 }
 0x221   :  { %vm1174_vm6 = vcmp.eq.f32.partialorder %v5797_v61, %v4742_v17  ;;  %v887_v34 = vpop.xlane.xlu0 %886  ;;  %v4773_v30 = vcvt.s32.f32 %v1757_v50 }
 0x222   :  { %v1175_v53 = vsel %vm1174_vm6, %v1170_v49, inf  ;;  %v4764_v49 = vsel %vm955_vm7, %v4099_v62, 128  ;;  %v1198_v10 = vcvt.s32.f32 %v1196_v14 }
 0x223   :  { %1732 = vmin.xlane.f32.xlu1 %v4745_v22  ;;  %1176 = vmin.xlane.f32.xlu0 %v1175_v53  ;;  %v1238_v53 = vand.u32 65535, %v4262_v42  ;;  %v1799_v38 = vshra.s32 %v4764_v49, 16  ;;  %v1224_v42 = vand.u32 65535, %v4275_v27  ;;  %v1266_v27 = vand.u32 65535, %v4291_v19 }
 0x224   :  { %v4756_v60 = vpop.xlane.xlu1 %1214  ;;  %v1252_v19 = vand.u32 65535, %v4308_v36  ;;  %v1294_v36 = vand.u32 65535, %v4324_v43  ;;  %v1280_v43 = vand.u32 65535, %v4341_v5  ;;  %v5815_v5 = vld [vmem:[#allocation50_spill] sm:$0xff] }
 0x225   :  { %vm1216_vm8 = vcmp.eq.f32.partialorder %v4258_v7, %v4756_v60  ;;  %v4778_v7 = vsel %vm954_vm9, %v4099_v62, 128  ;;  %v4787_v48 = vcvt.s32.f32 %v1799_v38  ;;  %v1226_v38 = vcvt.s32.f32 %v1224_v42 }
 0x226   :  { %v1217_v61 = vsel %vm1216_vm8, %v1212_v25, inf  ;;  %5802 = vst [vmem:[#allocation35_spill] sm:$0xff] %v4778_v7  ;;  %v5803_v25 = vld [vmem:[#allocation21_spill] sm:$0xff]  ;;  %v1785_v50 = vshra.s32 %v4778_v7, 16 }
 0x227   :  { %1774 = vmin.xlane.f32.xlu1 %v4759_v23  ;;  %1218 = vmin.xlane.f32.xlu0 %v1217_v61  ;;  %vm957_vm11 = vcmp.eq.f32.partialorder %v5803_v25, %v4706_v20  ;;  %v1240_v61 = vcvt.s32.f32 %v1238_v53  ;;  %v5805_v25 = vld [vmem:[#allocation22_spill] sm:$0xff] }
 0x228   :  { %v4770_v3 = vpop.xlane.xlu1 %1200  ;;  %vm956_vm13 = vcmp.eq.f32.partialorder %v5805_v25, %v4726_v56  ;;  %v4801_v7 = vcvt.s32.f32 %v1785_v50  ;;  %v5806_v56 = vld [vmem:[#allocation23_spill] sm:$0xff]  ;;  %v1268_v25 = vcvt.s32.f32 %v1266_v27  ;;  %v1254_v27 = vcvt.s32.f32 %v1252_v19 }
 0x229   :  { %vm1202_vm10 = vcmp.eq.f32.partialorder %v4270_v35, %v4770_v3  ;;  %v4792_v35 = vsel %vm957_vm11, %v4099_v62, 128  ;;  %vm959_vm15 = vcmp.eq.f32.partialorder %v5806_v56, %v889_v1 }
 0x22a   :  { %v1203_v31 = vsel %vm1202_vm10, %v1198_v10, inf  ;;  %5804 = vst [vmem:[#allocation36_spill] sm:$0xff] %v4792_v35  ;;  %v893_v10 = vpop.xlane.xlu0 %892 }
 0x22b   :  { %1760 = vmin.xlane.f32.xlu1 %v4773_v30  ;;  %1204 = vmin.xlane.f32.xlu0 %v1203_v31  ;;  %v1827_v31 = vshra.s32 %v4792_v35, 16 }
 0x22c   :  { %v4784_v14 = vpop.xlane.xlu1 %1242 }
 0x22d   :  { %vm1244_vm12 = vcmp.eq.f32.partialorder %v4286_v16, %v4784_v14  ;;  %v4806_v16 = vsel %vm956_vm13, %v4099_v62, 128  ;;  %v4814_v35 = vcvt.s32.f32 %v1827_v31 }
 0x22e   :  { %v1245_v20 = vsel %vm1244_vm12, %v1240_v61, inf  ;;  %v1813_v50 = vshra.s32 %v4806_v16, 16 }
 0x22f   :  { %1802 = vmin.xlane.f32.xlu1 %v4787_v48  ;;  %1246 = vmin.xlane.f32.xlu0 %v1245_v20  ;;  %v891_v20 = vpop.xlane.xlu0 %890 }
 0x230   :  { %v4798_v53 = vpop.xlane.xlu1 %1228  ;;  %v4827_v56 = vcvt.s32.f32 %v1813_v50 }
 0x231   :  { %vm1230_vm14 = vcmp.eq.f32.partialorder %v4303_v24, %v4798_v53  ;;  %v4819_v24 = vsel %vm959_vm15, %v4099_v62, 128 }
 0x232   :  { %v1231_v61 = vsel %vm1230_vm14, %v1226_v38, inf  ;;  %5807 = vst [vmem:[#allocation18_spill] sm:$0xff] %v4819_v24  ;;  %v5808_v38 = vld [vmem:[#allocation26_spill] sm:$0xff]  ;;  %v1855_v31 = vshra.s32 %v4819_v24, 16  ;;  %5809 = vst [vmem:[#allocation37_spill] sm:$0xff] %v4827_v56 }
 0x233   :  { %1788 = vmin.xlane.f32.xlu1 %v4801_v7  ;;  %1232 = vmin.xlane.f32.xlu0 %v1231_v61  ;;  %vm958_vm2 = vcmp.eq.f32.partialorder %v5808_v38, %v887_v34  ;;  %v5811_v38 = vld [vmem:[#allocation28_spill] sm:$0xff] }
 0x234   :  { %v4811_v42 = vpop.xlane.xlu1 %1270  ;;  %vm961_vm4 = vcmp.eq.f32.partialorder %v5811_v38, %v893_v10  ;;  %v4840_v24 = vcvt.s32.f32 %v1855_v31  ;;  %v5814_v10 = vld [vmem:[#allocation31_spill] sm:$0xff] }
 0x235   :  { %vm1272_vm1 = vcmp.eq.f32.partialorder %v4319_v28, %v4811_v42  ;;  %v4832_v28 = vsel %vm958_vm2, %v4099_v62, 128  ;;  %vm960_vm6 = vcmp.eq.f32.partialorder %v5814_v10, %v891_v20  ;;  %v5819_v10 = vld [vmem:[#allocation33_spill] sm:$0xff] }
 0x236   :  { %v1273_v1 = vsel %vm1272_vm1, %v1268_v25, inf  ;;  %5810 = vst [vmem:[#allocation38_spill] sm:$0xff] %v4832_v28  ;;  %v897_v25 = vpop.xlane.xlu0 %896  ;;  %v1841_v50 = vshra.s32 %v4832_v28, 16  ;;  %5812 = vst [vmem:[#allocation19_spill] sm:$0xff] %v4840_v24  ;;  %v1282_v28 = vcvt.s32.f32 %v1280_v43 }
 0x237   :  { %1830 = vmin.xlane.f32.xlu1 %v4814_v35  ;;  %1274 = vmin.xlane.f32.xlu0 %v1273_v1  ;;  %v1296_v1 = vcvt.s32.f32 %v1294_v36 }
 0x238   :  { %v4824_v61 = vpop.xlane.xlu1 %1256 }
 0x239   :  { %vm1258_vm3 = vcmp.eq.f32.partialorder %v4337_v40, %v4824_v61  ;;  %v4845_v40 = vsel %vm961_vm4, %v4099_v62, 128 }
 0x23a   :  { %v1259_v34 = vsel %vm1258_vm3, %v1254_v27, inf  ;;  %5813 = vst [vmem:[#allocation39_spill] sm:$0xff] %v4845_v40  ;;  %v895_v38 = vpop.xlane.xlu0 %894  ;;  %v1883_v31 = vshra.s32 %v4845_v40, 16 }
 0x23b   :  { %1816 = vmin.xlane.f32.xlu1 %v4827_v56  ;;  %1260 = vmin.xlane.f32.xlu0 %v1259_v34  ;;  %v1322_v34 = vand.u32 65535, %v5815_v5  ;;  %v4853_v56 = vcvt.s32.f32 %v1841_v50  ;;  %vm962_vm8 = vcmp.eq.f32.partialorder %v5819_v10, %v895_v38  ;;  %v5823_v38 = vld [vmem:[#allocation32_spill] sm:$0xff] }
 0x23c   :  { %v4837_v19 = vpop.xlane.xlu1 %1298  ;;  %v4866_v40 = vcvt.s32.f32 %v1883_v31  ;;  %vm963_vm10 = vcmp.eq.f32.partialorder %v5823_v38, %v897_v25  ;;  %v5829_v25 = vld [vmem:[#allocation55_spill] sm:$0xff] }
 0x23d   :  { %vm1300_vm5 = vcmp.eq.f32.partialorder %v4350_v0, %v4837_v19  ;;  %5816 = vst [vmem:[#allocation20_spill] sm:$0xff] %v4853_v56  ;;  %v5817_v0 = vld [vmem:[#allocation51_spill] sm:$0xff]  ;;  %v1324_v43 = vcvt.s32.f32 %v1322_v34 }
 0x23e   :  { %v1301_v27 = vsel %vm1300_vm5, %v1296_v1, inf  ;;  %v4858_v1 = vsel %vm960_vm6, %v4099_v62, 128  ;;  %5821 = vst [vmem:[#allocation22_spill] sm:$0xff] %v4866_v40 }
 0x23f   :  { %1858 = vmin.xlane.f32.xlu1 %v4840_v24  ;;  %1302 = vmin.xlane.f32.xlu0 %v1301_v27  ;;  %5818 = vst [vmem:[#allocation21_spill] sm:$0xff] %v4858_v1  ;;  %v5820_v27 = vld [vmem:[#allocation52_spill] sm:$0xff]  ;;  %v1869_v50 = vshra.s32 %v4858_v1, 16 }
 0x240   :  { %v4850_v36 = vpop.xlane.xlu1 %1284  ;;  %v1308_v5 = vand.u32 65535, %v5820_v27 }
 0x241   :  { %vm1286_vm7 = vcmp.eq.f32.partialorder %v5817_v0, %v4850_v36  ;;  %v4871_v0 = vsel %vm962_vm8, %v4099_v62, 128  ;;  %v4879_v1 = vcvt.s32.f32 %v1869_v50 }
 0x242   :  { %v1287_v20 = vsel %vm1286_vm7, %v1282_v28, inf  ;;  %5822 = vst [vmem:[#allocation23_spill] sm:$0xff] %v4871_v0  ;;  %v1310_v34 = vcvt.s32.f32 %v1308_v5  ;;  %v1897_v31 = vshra.s32 %v4871_v0, 16 }
 0x243   :  { %1844 = vmin.xlane.f32.xlu1 %v4853_v56  ;;  %1288 = vmin.xlane.f32.xlu0 %v1287_v20  ;;  %v5824_v20 = vld [vmem:[#allocation53_spill] sm:$0xff]  ;;  %5826 = vst [vmem:[#allocation28_spill] sm:$0xff] %v4879_v1  ;;  %v4884_v56 = vsel %vm963_vm10, %v4099_v62, 128 }
 0x244   :  { %v4863_v24 = vpop.xlane.xlu1 %1326  ;;  %v1350_v10 = vand.u32 65535, %v5824_v20  ;;  %5828 = vst [vmem:[#allocation31_spill] sm:$0xff] %v4884_v56  ;;  %v1911_v5 = vshra.s32 %v4884_v56, 16  ;;  %v4893_v50 = vcvt.s32.f32 %v1897_v31  ;;  %v4905_v31 = vpop.xlane.xlu0 %1396 }
 0x245   :  { %vm1328_vm9 = vcmp.eq.f32.partialorder %v4371_v39, %v4863_v24  ;;  %v5827_v39 = vld [vmem:[#allocation54_spill] sm:$0xff]  ;;  %5836 = vst [vmem:[#allocation32_spill] sm:$0xff] %v4905_v31 }
 0x246   :  { %v1329_v28 = vsel %vm1328_vm9, %v1324_v43, inf  ;;  %v1352_v20 = vcvt.s32.f32 %v1350_v10  ;;  %5831 = vst [vmem:[#allocation51_spill] sm:$0xff] %v4893_v50  ;;  %v4901_v10 = vcvt.s32.f32 %v1911_v5 }
 0x247   :  { %1886 = vmin.xlane.f32.xlu1 %v4866_v40  ;;  %1330 = vmin.xlane.f32.xlu0 %v1329_v28  ;;  %v1336_v28 = vand.u32 65535, %v5829_v25  ;;  %v5834_v25 = vld [vmem:[#allocation57_spill] sm:$0xff] }
 0x248   :  { %v4876_v27 = vpop.xlane.xlu1 %1312  ;;  %5835 = vst [vmem:[#allocation52_spill] sm:$0xff] %v4901_v10 }
 0x249   :  { %5825 = vst [vmem:[#allocation26_spill] sm:$0xff] %v4876_v27  ;;  %vm1314_vm11 = vcmp.eq.f32.partialorder %v5827_v39, %v4876_v27 }
 0x24a   :  { %v1315_v43 = vsel %vm1314_vm11, %v1310_v34, inf  ;;  %v5832_v34 = vld [vmem:[#allocation56_spill] sm:$0xff] }
 0x24b   :  { %1872 = vmin.xlane.f32.xlu1 %v4879_v1  ;;  %1316 = vmin.xlane.f32.xlu0 %v1315_v43  ;;  %v1378_v0 = vand.u32 65535, %v5832_v34  ;;  %v1338_v43 = vcvt.s32.f32 %v1336_v28  ;;  %v5838_v34 = vld [vmem:[#allocation58_spill] sm:$0xff] }
 0x24c   :  { %v4888_v38 = vpop.xlane.xlu1 %1354 }
 0x24d   :  { %5830 = vst [vmem:[#allocation50_spill] sm:$0xff] %v4888_v38  ;;  %vm1356_vm12 = vcmp.eq.f32.partialorder %v4392_v15, %v4888_v38  ;;  %v1364_v15 = vand.u32 65535, %v4407_v47 }
 0x24e   :  { %v1357_v39 = vsel %vm1356_vm12, %v1352_v20, inf }
 0x24f   :  { %1358 = vmin.xlane.f32.xlu0 %v1357_v39  ;;  %1900 = vmin.xlane.f32.xlu1 %v4893_v50  ;;  %v1380_v39 = vcvt.s32.f32 %v1378_v0  ;;  %v5839_v50 = vld [vmem:[#allocation59_spill] sm:$0xff]  ;;  %v5842_v0 = vld [vmem:[#allocation60_spill] sm:$0xff] }
 0x250   :  { %v4897_v1 = vpop.xlane.xlu1 %1340  ;;  %v1434_v38 = vand.u32 65535, %v5842_v0 }
 0x251   :  { %5833 = vst [vmem:[#allocation33_spill] sm:$0xff] %v4897_v1  ;;  %vm1342_vm13 = vcmp.eq.f32.partialorder %v5834_v25, %v4897_v1  ;;  %v1406_v25 = vand.u32 65535, %v5839_v50 }
 0x252   :  { %v1343_v56 = vsel %vm1342_vm13, %v1338_v43, inf  ;;  %v1366_v43 = vcvt.s32.f32 %v1364_v15  ;;  %v5845_v15 = vld [vmem:[#allocation41_spill] sm:$0xff]  ;;  %v1436_v0 = vcvt.s32.f32 %v1434_v38 }
 0x253   :  { %1344 = vmin.xlane.f32.xlu0 %v1343_v56  ;;  %1914 = vmin.xlane.f32.xlu1 %v4901_v10  ;;  %v4916_v56 = vpop.xlane.xlu0 %1424  ;;  %v5841_v10 = vld [vmem:[#allocation40_spill] sm:$0xff]  ;;  %vm1398_vm2 = vcmp.eq.f32.partialorder %v5845_v15, %v4905_v31 }
 0x254   :  { %v4907_v20 = vpop.xlane.xlu1 %1382  ;;  %v1392_v1 = vand.u32 65535, %v5841_v10 }
 0x255   :  { %5837 = vst [vmem:[#allocation53_spill] sm:$0xff] %v4907_v20  ;;  %vm1384_vm14 = vcmp.eq.f32.partialorder %v5838_v34, %v4907_v20  ;;  %v5844_v34 = vld [vmem:[#allocation61_spill] sm:$0xff] }
 0x256   :  { %v1385_v28 = vsel %vm1384_vm14, %v1380_v39, inf  ;;  %v1408_v39 = vcvt.s32.f32 %v1406_v25  ;;  %v1394_v20 = vcvt.s32.f32 %v1392_v1 }
 0x257   :  { %1386 = vmin.xlane.f32.xlu0 %v1385_v28 }
 0x258   :  { %v4912_v5 = vpop.xlane.xlu1 %1368 }
 0x259   :  { %5840 = vst [vmem:[#allocation54_spill] sm:$0xff] %v4912_v5  ;;  %vm1370_vm15 = vcmp.eq.f32.partialorder %v4421_v9, %v4912_v5  ;;  %v5846_v9 = vld [vmem:[#allocation42_spill] sm:$0xff] }
 0x25a   :  { %v1371_v47 = vsel %vm1370_vm15, %v1366_v43, inf  ;;  %v1420_v28 = vand.u32 65535, %v5846_v9  ;;  %v5847_v5 = vld [vmem:[#allocation62_spill] sm:$0xff]  ;;  %v5850_v9 = vld [vmem:[#allocation63_spill] sm:$0xff] }
 0x25b   :  { %1372 = vmin.xlane.f32.xlu0 %v1371_v47  ;;  %v1462_v43 = vand.u32 65535, %v5847_v5  ;;  %v4928_v47 = vpop.xlane.xlu0 %1452  ;;  %v1490_v5 = vand.u32 65535, %v5850_v9 }
 0x25c   :  { %v4920_v40 = vpop.xlane.xlu1 %1410  ;;  %v1422_v27 = vcvt.s32.f32 %v1420_v28 }
 0x25d   :  { %5843 = vst [vmem:[#allocation55_spill] sm:$0xff] %v4920_v40  ;;  %vm1412_vm1 = vcmp.eq.f32.partialorder %v5844_v34, %v4920_v40  ;;  %v1399_v34 = vsel %vm1398_vm2, %v1394_v20, inf  ;;  %v1464_v40 = vcvt.s32.f32 %v1462_v43  ;;  %v5851_v20 = vld [vmem:[#allocation45_spill] sm:$0xff]  ;;  %v1492_v43 = vcvt.s32.f32 %v1490_v5 }
 0x25e   :  { %v1413_v50 = vsel %vm1412_vm1, %v1408_v39, inf  ;;  %v5848_v39 = vld [vmem:[#allocation43_spill] sm:$0xff]  ;;  %vm1454_vm6 = vcmp.eq.f32.partialorder %v5851_v20, %v4928_v47 }
 0x25f   :  { %1414 = vmin.xlane.f32.xlu0 %v1413_v50  ;;  %vm1426_vm4 = vcmp.eq.f32.partialorder %v5848_v39, %v4916_v56  ;;  %v5849_v50 = vld [vmem:[#allocation44_spill] sm:$0xff]  ;;  %v4942_v1 = vpop.xlane.xlu0 %1480 }
 0x260   :  { %v4930_v10 = vpop.xlane.xlu1 %1438  ;;  %v1448_v15 = vand.u32 65535, %v5849_v50  ;;  %v1427_v38 = vsel %vm1426_vm4, %v1422_v27, inf  ;;  %v5854_v27 = vld [vmem:[#allocation48_spill] sm:$0xff] }
 0x261   :  { %vm1440_vm3 = vcmp.eq.f32.partialorder %v4441_v13, %v4930_v10  ;;  %v1504_v9 = vand.u32 65535, %v5854_v27 }
 0x262   :  { %v1441_v25 = vsel %vm1440_vm3, %v1436_v0, inf  ;;  %v5852_v0 = vld [vmem:[#allocation46_spill] sm:$0xff]  ;;  %v1450_v28 = vcvt.s32.f32 %v1448_v15 }
 0x263   :  { %1442 = vmin.xlane.f32.xlu1 %v1441_v25  ;;  %1400 = vmin.xlane.f32.xlu0 %v1399_v34  ;;  %v1476_v25 = vand.u32 65535, %v5852_v0  ;;  %v1518_v34 = vand.u32 65535, %v4453_v52  ;;  %v4956_v20 = vpop.xlane.xlu0 %1508 }
 0x264   :  { %v4938_v31 = vpop.xlane.xlu1 %1466  ;;  %v1455_v50 = vsel %vm1454_vm6, %v1450_v28, inf  ;;  %v1532_v28 = vand.u32 65535, %v4474_v26 }
 0x265   :  { %vm1468_vm5 = vcmp.eq.f32.partialorder %v4449_v12, %v4938_v31  ;;  %v1520_v5 = vcvt.s32.f32 %v1518_v34  ;;  %v1478_v15 = vcvt.s32.f32 %v1476_v25 }
 0x266   :  { %v1469_v13 = vsel %vm1468_vm5, %v1464_v40, inf  ;;  %v5853_v40 = vld [vmem:[#allocation47_spill] sm:$0xff] }
 0x267   :  { %1470 = vmin.xlane.f32.xlu1 %v1469_v13  ;;  %1428 = vmin.xlane.f32.xlu0 %v1427_v38  ;;  %vm1482_vm8 = vcmp.eq.f32.partialorder %v5853_v40, %v4942_v1  ;;  %v5855_v13 = vld [vmem:[#allocation64_spill] sm:$0xff]  ;;  %v1506_v40 = vcvt.s32.f32 %v1504_v9 }
 0x268   :  { %v4948_v39 = vpop.xlane.xlu1 %1494  ;;  %v1546_v38 = vand.u32 65535, %v5855_v13  ;;  %v1483_v0 = vsel %vm1482_vm8, %v1478_v15, inf  ;;  %v1534_v13 = vcvt.s32.f32 %v1532_v28  ;;  %v5858_v15 = vld [vmem:[#allocation66_spill] sm:$0xff] }
 0x269   :  { %vm1496_vm7 = vcmp.eq.f32.partialorder %v4460_v32, %v4948_v39 }
 0x26a   :  { %v1497_v12 = vsel %vm1496_vm7, %v1492_v43, inf  ;;  %v5856_v43 = vld [vmem:[#allocation49_spill] sm:$0xff] }
 0x26b   :  { %1498 = vmin.xlane.f32.xlu1 %v1497_v12  ;;  %1456 = vmin.xlane.f32.xlu0 %v1455_v50  ;;  %vm1510_vm10 = vcmp.eq.f32.partialorder %v5856_v43, %v4956_v20  ;;  %v1548_v50 = vcvt.s32.f32 %v1546_v38  ;;  %v1560_v38 = vand.u32 65535, %v5858_v15  ;;  %v5860_v43 = vld [vmem:[#allocation68_spill] sm:$0xff] }
 0x26c   :  { %v4958_v52 = vpop.xlane.xlu1 %1522  ;;  %v1511_v34 = vsel %vm1510_vm10, %v1506_v40, inf  ;;  %v1053_v40 = vcvt.f32.s32 %v4538_v59 }
 0x26d   :  { %vm1524_vm9 = vcmp.eq.f32.partialorder %v4471_v51, %v4958_v52  ;;  %v1574_v51 = vand.u32 65535, %v4483_v29  ;;  %v1602_v29 = vand.u32 65535, %v5860_v43  ;;  %v1562_v28 = vcvt.s32.f32 %v1560_v38 }
 0x26e   :  { %v1525_v32 = vsel %vm1524_vm9, %v1520_v5, inf  ;;  %v5857_v5 = vld [vmem:[#allocation65_spill] sm:$0xff]  ;;  %v1630_v43 = vand.u32 65535, %v4549_v2 }
 0x26f   :  { %1526 = vmin.xlane.f32.xlu1 %v1525_v32  ;;  %1484 = vmin.xlane.f32.xlu0 %v1483_v0  ;;  %v1576_v32 = vcvt.s32.f32 %v1574_v51  ;;  %v1039_v51 = vcvt.f32.s32 %v4560_v45  ;;  %v1081_v45 = vcvt.f32.s32 %v4583_v37 }
 0x270   :  { %v4965_v12 = vpop.xlane.xlu1 %1550 }
 0x271   :  { %vm1552_vm11 = vcmp.eq.f32.partialorder %v4480_v11, %v4965_v12  ;;  %v5859_v11 = vld [vmem:[#allocation67_spill] sm:$0xff] }
 0x272   :  { %v1553_v25 = vsel %vm1552_vm11, %v1548_v50, inf }
 0x273   :  { %1554 = vmin.xlane.f32.xlu1 %v1553_v25  ;;  %1512 = vmin.xlane.f32.xlu0 %v1511_v34  ;;  %v5861_v25 = vld [vmem:[#allocation69_spill] sm:$0xff] }
 0x274   :  { %v4970_v27 = vpop.xlane.xlu1 %1536 }
 0x275   :  { %vm1538_vm12 = vcmp.eq.f32.partialorder %v5857_v5, %v4970_v27 }
 0x276   :  { %v1539_v26 = vsel %vm1538_vm12, %v1534_v13, inf  ;;  %v5862_v13 = vld [vmem:[#allocation70_spill] sm:$0xff] }
 0x277   :  { %1540 = vmin.xlane.f32.xlu0 %v1539_v26  ;;  %v1588_v5 = vand.u32 65535, %v5862_v13 }
 0x278   :  { %v4975_v9 = vpop.xlane.xlu1 %1578 }
 0x279   :  { %vm1580_vm13 = vcmp.eq.f32.partialorder %v5859_v11, %v4975_v9  ;;  %v1054_v11 = vshll.u32 %v1053_v40, 16  ;;  %v1590_v13 = vcvt.s32.f32 %v1588_v5  ;;  %v1067_v5 = vcvt.f32.s32 %v4602_v54 }
 0x27a   :  { %v1581_v0 = vsel %vm1580_vm13, %v1576_v32, inf  ;;  %v1604_v32 = vcvt.s32.f32 %v1602_v29 }
 0x27b   :  { %1582 = vmin.xlane.f32.xlu1 %v1581_v0 }
 0x27c   :  { %v4980_v50 = vpop.xlane.xlu1 %1564 }
 0x27d   :  { %vm1566_vm14 = vcmp.eq.f32.partialorder %v5861_v25, %v4980_v50 }
 0x27e   :  { %v1567_v34 = vsel %vm1566_vm14, %v1562_v28, inf  ;;  %v1040_v28 = vshll.u32 %v1039_v51, 16  ;;  %v1616_v51 = vand.u32 65535, %v4574_v8 }
 0x27f   :  { %1568 = vmin.xlane.f32.xlu0 %v1567_v34 }
 0x280   :  { %v4987_v26 = vpop.xlane.xlu1 %1606  ;;  %v1051_v15 = vpop.xlane.xlu0 %1050 }
 0x281   :  { %vm1608_vm15 = vcmp.eq.f32.partialorder %v4541_v6, %v4987_v26  ;;  %v1052_v38 = vcvt.f32.s32 %v1051_v15  ;;  %v5699_v6 = vmov 0.0  }
 0x282   :  { %v1609_v0 = vsel %vm1608_vm15, %v1604_v32, inf }
 0x283   :  { %v1055_v59 = vadd.s32 %v1054_v11, %v1052_v38  ;;  %1610 = vmin.xlane.f32.xlu1 %v1609_v0  ;;  %v1632_v11 = vcvt.s32.f32 %v1630_v43  ;;  %v1082_v38 = vshll.u32 %v1081_v45, 16  ;;  %v5864_v43 = vld [vmem:[#allocation72_spill] sm:$0xff] }
 0x284   :  { %v4992_v25 = vpop.xlane.xlu1 %1592  ;;  %v1037_v34 = vpop.xlane.xlu0 %1036  ;;  %v1658_v45 = vand.u32 65535, %v5864_v43 }
 0x285   :  { %vm1925_vm1 = vcmp.eq.s32.totalorder %v4099_v62, %v1055_v59  ;;  %vm1594_vm2 = vcmp.eq.f32.partialorder %v4563_v33, %v4992_v25  ;;  %v1038_v29 = vcvt.f32.s32 %v1037_v34  ;;  %v5863_v33 = vld [vmem:[#allocation71_spill] sm:$0xff] }
 0x286   :  { %v3072_v40 = vsel %vm1925_vm1, 1.0, %v5699_v6  ;;  %v1595_v15 = vsel %vm1594_vm2, %v1590_v13, inf  ;;  %v5701_v13 = vmov 1.0   ;;  %v1660_v43 = vcvt.s32.f32 %v1658_v45 }
 0x287   :  { %2566 = vst [vmem:[#allocation6 + $0x8] sm:$0xff] %v3072_v40  ;;  %v1041_v2 = vadd.s32 %v1040_v28, %v1038_v29  ;;  %1596 = vmin.xlane.f32.xlu0 %v1595_v15  ;;  %v1068_v29 = vshll.u32 %v1067_v5, 16  ;;  %v5868_v5 = vld [vmem:[#allocation24_spill] sm:$0xff] }
 0x288   :  { %v5003_v37 = vpop.xlane.xlu1 %1634  ;;  %v1079_v32 = vpop.xlane.xlu0 %1078 }
 0x289   :  { %vm1636_vm3 = vcmp.eq.f32.partialorder %v5863_v33, %v5003_v37  ;;  %v1080_v0 = vcvt.f32.s32 %v1079_v32  ;;  %vm1924_vm4 = vcmp.eq.s32.totalorder %v4099_v62, %v1041_v2  ;;  %v1618_v32 = vcvt.s32.f32 %v1616_v51 }
 0x28a   :  { %v3071_v34 = vsel %vm1924_vm4, 1.0, %v5699_v6  ;;  %3483 = vmatprep.mubr.msk.f32.mxu0 %vm1924_vm4, %v5701_v13  ;;  %v1637_v28 = vsel %vm1636_vm3, %v1632_v11, inf  ;;  %v1109_v33 = vcvt.f32.s32 %v4624_v57  ;;  %v5866_v6 = vld [vmem:[#allocation73_spill] sm:$0xff]  ;;  %v1095_v51 = vcvt.f32.s32 %v4641_v44 }
 0x28b   :  { %v1083_v8 = vadd.s32 %v1082_v38, %v1080_v0  ;;  %2565 = vst [vmem:[#allocation6] sm:$0xff] %v3071_v34  ;;  %v2895_v54 = vadd.f32 %v3072_v40, %v3071_v34  ;;  %1638 = vmin.xlane.f32.xlu1 %v1637_v28  ;;  %3484 = vmatmul.mubr.msk.f32.vlgmr.msra.gmra.mxu0 %vm1925_vm1, %v5701_v13  ;;  %v5867_v38 = vmov 0.0   ;;  %v1644_v34 = vand.u32 65535, %v5868_v5  ;;  %v5872_v44 = vld [vmem:[#allocation25_spill] sm:$0xff] }
 0x28c   :  { %v5014_v15 = vpop.xlane.xlu1 %1620  ;;  %v1065_v2 = vpop.xlane.xlu0 %1064  ;;  %v1686_v45 = vand.u32 65535, %v5872_v44 }
 0x28d   :  { %5865 = vst [vmem:[#allocation56_spill] sm:$0xff] %v5014_v15  ;;  %vm1622_vm5 = vcmp.eq.f32.partialorder %v5866_v6, %v5014_v15  ;;  %v1066_v11 = vcvt.f32.s32 %v1065_v2  ;;  %vm1927_vm6 = vcmp.eq.s32.totalorder %v4099_v62, %v1083_v8  ;;  %v1110_v6 = vshll.u32 %v1109_v33, 16  ;;  %v5870_v2 = vld [vmem:[#allocation11_spill] sm:$0xff] }
 0x28e   :  { %v1623_v40 = vsel %vm1622_vm5, %v1618_v32, inf  ;;  %v3074_v59 = vsel %vm1927_vm6, 1.0, %v5867_v38  ;;  %v1096_v33 = vshll.u32 %v1095_v51, 16  ;;  %v5873_v51 = vld [vmem:[#allocation12_spill] sm:$0xff] }
 0x28f   :  { %v1069_v0 = vadd.s32 %v1068_v29, %v1066_v11  ;;  %1624 = vmin.xlane.f32.xlu0 %v1623_v40  ;;  %2568 = vst [vmem:[#allocation6 + $0x18] sm:$0xff] %v3074_v59  ;;  %v5871_v29 = vmov 1.0  }
 0x290   :  { %v5025_v28 = vpop.xlane.xlu1 %1662  ;;  %v1107_v57 = vpop.xlane.xlu0 %1106 }
 0x291   :  { %5869 = vst [vmem:[#allocation57_spill] sm:$0xff] %v5025_v28  ;;  %vm1664_vm7 = vcmp.eq.f32.partialorder %v5870_v2, %v5025_v28  ;;  %v1108_v32 = vcvt.f32.s32 %v1107_v57  ;;  %vm1926_vm8 = vcmp.eq.s32.totalorder %v4099_v62, %v1069_v0  ;;  %v1646_v0 = vcvt.s32.f32 %v1644_v34 }
 0x292   :  { %v3073_v13 = vsel %vm1926_vm8, 1.0, %v5867_v38  ;;  %3486 = vmatprep.mubr.msk.f32.mxu0 %vm1926_vm8, %v5871_v29  ;;  %v1665_v11 = vsel %vm1664_vm7, %v1660_v43, inf  ;;  %v1137_v28 = vcvt.f32.s32 %v4663_v55  ;;  %v1123_v34 = vcvt.f32.s32 %v4682_v58 }
 0x293   :  { %v1111_v40 = vadd.s32 %v1110_v6, %v1108_v32  ;;  %2567 = vst [vmem:[#allocation6 + $0x10] sm:$0xff] %v3073_v13  ;;  %v2896_v5 = vadd.f32 %v3073_v13, %v2895_v54  ;;  %1666 = vmin.xlane.f32.xlu1 %v1665_v11  ;;  %3487 = vmatmul.mubr.msk.f32.gmra.mxu0 %vm1927_vm6, %v5871_v29  ;;  %v1672_v6 = vand.u32 65535, %v5873_v51  ;;  %v5874_v51 = vld [vmem:[#allocation27_spill] sm:$0xff] }
 0x294   :  { %v5036_v2 = vpop.xlane.xlu1 %1648  ;;  %v1093_v57 = vpop.xlane.xlu0 %1092 }
 0x295   :  { %v2897_v15 = vadd.f32 %v3074_v59, %v2896_v5  ;;  %vm1650_vm9 = vcmp.eq.f32.partialorder %v4644_v46, %v5036_v2  ;;  %v1094_v43 = vcvt.f32.s32 %v1093_v57  ;;  %vm1929_vm10 = vcmp.eq.s32.totalorder %v4099_v62, %v1111_v40 }
 0x296   :  { %v1651_v13 = vsel %vm1650_vm9, %v1646_v0, inf  ;;  %v3076_v8 = vsel %vm1929_vm10, 1.0, %v5867_v38  ;;  %v1688_v59 = vcvt.s32.f32 %v1686_v45  ;;  %v1138_v46 = vshll.u32 %v1137_v28, 16 }
 0x297   :  { %v1097_v54 = vadd.s32 %v1096_v33, %v1094_v43  ;;  %1652 = vmin.xlane.f32.xlu0 %v1651_v13  ;;  %2570 = vst [vmem:[#allocation6 + $0x28] sm:$0xff] %v3076_v8  ;;  %v1714_v28 = vand.u32 65535, %v4671_v21  ;;  %v1124_v45 = vshll.u32 %v1123_v34, 16  ;;  %v1674_v0 = vcvt.s32.f32 %v1672_v6 }
 0x298   :  { %v5047_v32 = vpop.xlane.xlu1 %1690  ;;  %v1135_v55 = vpop.xlane.xlu0 %1134  ;;  %v1165_v43 = vcvt.f32.s32 %v4696_v41  ;;  %v1700_v34 = vand.u32 65535, %v5874_v51  ;;  %v1151_v6 = vcvt.f32.s32 %v4712_v63  ;;  %v5878_v51 = vld [vmem:[#allocation30_spill] sm:$0xff] }
 0x299   :  { %vm1692_vm11 = vcmp.eq.f32.partialorder %v4666_v18, %v5047_v32  ;;  %v1136_v11 = vcvt.f32.s32 %v1135_v55  ;;  %vm1928_vm12 = vcmp.eq.s32.totalorder %v4099_v62, %v1097_v54 }
 0x29a   :  { %v3075_v5 = vsel %vm1928_vm12, 1.0, %v5867_v38  ;;  %3489 = vmatprep.mubr.msk.f32.mxu0 %vm1928_vm12, %v5871_v29  ;;  %v1693_v44 = vsel %vm1692_vm11, %v1688_v59, inf  ;;  %v1716_v59 = vcvt.s32.f32 %v1714_v28 }
 0x29b   :  { %v1139_v33 = vadd.s32 %v1138_v46, %v1136_v11  ;;  %2569 = vst [vmem:[#allocation6 + $0x20] sm:$0xff] %v3075_v5  ;;  %v2898_v58 = vadd.f32 %v3075_v5, %v2897_v15  ;;  %1694 = vmin.xlane.f32.xlu1 %v1693_v44  ;;  %3490 = vmatmul.mubr.msk.f32.gmra.mxu0 %vm1929_vm10, %v5871_v29 }
 0x29c   :  { %v5058_v18 = vpop.xlane.xlu1 %1676  ;;  %v1121_v57 = vpop.xlane.xlu0 %1120 }
 0x29d   :  { %vm1678_vm13 = vcmp.eq.f32.partialorder %v4685_v4, %v5058_v18  ;;  %v1122_v13 = vcvt.f32.s32 %v1121_v57  ;;  %v2899_v54 = vadd.f32 %v3076_v8, %v2898_v58  ;;  %vm1931_vm14 = vcmp.eq.s32.totalorder %v4099_v62, %v1139_v33  ;;  %v5875_v8 = vld [vmem:[#allocation29_spill] sm:$0xff] }
 0x29e   :  { %v1679_v15 = vsel %vm1678_vm13, %v1674_v0, inf  ;;  %v3078_v21 = vsel %vm1931_vm14, 1.0, %v5867_v38  ;;  %v1166_v4 = vshll.u32 %v1165_v43, 16  ;;  %v5876_v58 = vld [vmem:[#allocation13_spill] sm:$0xff]  ;;  %v1702_v43 = vcvt.s32.f32 %v1700_v34 }
 0x29f   :  { %1680 = vmin.xlane.f32.xlu0 %v1679_v15  ;;  %v1125_v40 = vadd.s32 %v1124_v45, %v1122_v13  ;;  %2572 = vst [vmem:[#allocation6 + $0x38] sm:$0xff] %v3078_v21  ;;  %v1742_v28 = vand.u32 65535, %v5876_v58  ;;  %v1152_v45 = vshll.u32 %v1151_v6, 16  ;;  %v5877_v13 = vld [vmem:[#allocation15_spill] sm:$0xff]  ;;  %v5879_v6 = vld [vmem:[#allocation14_spill] sm:$0xff]  ;;  %v1179_v34 = vcvt.f32.s32 %v4742_v17 }
 0x2a0   :  { %v5069_v55 = vpop.xlane.xlu1 %1718  ;;  %v1163_v41 = vpop.xlane.xlu0 %1162  ;;  %v1193_v15 = vcvt.f32.s32 %v5877_v13 }
 0x2a1   :  { %vm1720_vm15 = vcmp.eq.f32.partialorder %v5875_v8, %v5069_v55  ;;  %v1164_v46 = vcvt.f32.s32 %v1163_v41  ;;  %vm1930_vm1 = vcmp.eq.s32.totalorder %v4099_v62, %v1125_v40  ;;  %v1180_v13 = vshll.u32 %v1179_v34, 16  ;;  %v5882_v34 = vld [vmem:[#allocation17_spill] sm:$0xff] }
 0x2a2   :  { %v3077_v11 = vsel %vm1930_vm1, 1.0, %v5867_v38  ;;  %3492 = vmatprep.mubr.msk.f32.mxu1 %vm1930_vm1, %v5871_v29  ;;  %v1721_v5 = vsel %vm1720_vm15, %v1716_v59, inf }
 0x2a3   :  { %v1167_v44 = vadd.s32 %v1166_v4, %v1164_v46  ;;  %2571 = vst [vmem:[#allocation6 + $0x30] sm:$0xff] %v3077_v11  ;;  %v2900_v63 = vadd.f32 %v3077_v11, %v2899_v54  ;;  %1722 = vmin.xlane.f32.xlu1 %v1721_v5  ;;  %3493 = vmatmul.mubr.msk.f32.vlgmr.msra.gmra.mxu1 %vm1931_vm14, %v5871_v29  ;;  %v1728_v4 = vand.u32 65535, %v5879_v6  ;;  %v1744_v46 = vcvt.s32.f32 %v1742_v28  ;;  %v5880_v5 = vld [vmem:[#allocation16_spill] sm:$0xff]  ;;  %v5881_v28 = vld [vmem:[#allocation34_spill] sm:$0xff] }
 0x2a4   :  { %v5080_v57 = vpop.xlane.xlu1 %1704  ;;  %v1149_v0 = vpop.xlane.xlu0 %1148  ;;  %v1194_v11 = vshll.u32 %v1193_v15, 16 }
 0x2a5   :  { %v2901_v40 = vadd.f32 %v3078_v21, %v2900_v63  ;;  %vm1706_vm2 = vcmp.eq.f32.partialorder %v5878_v51, %v5080_v57  ;;  %v1150_v41 = vcvt.f32.s32 %v1149_v0  ;;  %vm1933_vm3 = vcmp.eq.s32.totalorder %v4099_v62, %v1167_v44 }
 0x2a6   :  { %v1707_v54 = vsel %vm1706_vm2, %v1702_v43, inf  ;;  %v3080_v33 = vsel %vm1933_vm3, 1.0, %v5867_v38  ;;  %v1770_v43 = vand.u32 65535, %v5881_v28 }
 0x2a7   :  { %v1153_v59 = vadd.s32 %v1152_v45, %v1150_v41  ;;  %1708 = vmin.xlane.f32.xlu0 %v1707_v54  ;;  %2574 = vst [vmem:[#allocation6 + $0x48] sm:$0xff] %v3080_v33  ;;  %v1730_v41 = vcvt.s32.f32 %v1728_v4  ;;  %v1221_v54 = vcvt.f32.s32 %v4756_v60  ;;  %v1207_v4 = vcvt.f32.s32 %v4770_v3 }
 0x2a8   :  { %v5091_v8 = vpop.xlane.xlu1 %1746  ;;  %v1191_v21 = vpop.xlane.xlu0 %1190 }
 0x2a9   :  { %vm1748_vm4 = vcmp.eq.f32.partialorder %v5880_v5, %v5091_v8  ;;  %v1192_v63 = vcvt.f32.s32 %v1191_v21  ;;  %vm1932_vm5 = vcmp.eq.s32.totalorder %v4099_v62, %v1153_v59  ;;  %v1208_v28 = vshll.u32 %v1207_v4, 16 }
 0x2aa   :  { %v3079_v58 = vsel %vm1932_vm5, 1.0, %v5867_v38  ;;  %3495 = vmatprep.mubr.msk.f32.mxu1 %vm1932_vm5, %v5871_v29  ;;  %v1749_v45 = vsel %vm1748_vm4, %v1744_v46, inf  ;;  %v1756_v46 = vand.u32 65535, %v5882_v34 }
 0x2ab   :  { %v1195_v0 = vadd.s32 %v1194_v11, %v1192_v63  ;;  %2573 = vst [vmem:[#allocation6 + $0x40] sm:$0xff] %v3079_v58  ;;  %v2902_v17 = vadd.f32 %v3079_v58, %v2901_v40  ;;  %1750 = vmin.xlane.f32.xlu1 %v1749_v45  ;;  %3496 = vmatmul.mubr.msk.f32.gmra.mxu1 %vm1933_vm3, %v5871_v29 }
 0x2ac   :  { %v5102_v15 = vpop.xlane.xlu1 %1732  ;;  %v1177_v51 = vpop.xlane.xlu0 %1176 }
 0x2ad   :  { %v2903_v59 = vadd.f32 %v3080_v33, %v2902_v17  ;;  %vm1734_vm6 = vcmp.eq.f32.partialorder %v4745_v22, %v5102_v15  ;;  %v1178_v6 = vcvt.f32.s32 %v1177_v51  ;;  %vm1935_vm7 = vcmp.eq.s32.totalorder %v4099_v62, %v1195_v0  ;;  %v5883_v0 = vld [vmem:[#allocation35_spill] sm:$0xff] }
 0x2ae   :  { %v1735_v40 = vsel %vm1734_vm6, %v1730_v41, inf  ;;  %v3082_v44 = vsel %vm1935_vm7, 1.0, %v5867_v38  ;;  %v1772_v33 = vcvt.s32.f32 %v1770_v43  ;;  %v1222_v22 = vshll.u32 %v1221_v54, 16 }
 0x2af   :  { %v1181_v21 = vadd.s32 %v1180_v13, %v1178_v6  ;;  %1736 = vmin.xlane.f32.xlu0 %v1735_v40  ;;  %2576 = vst [vmem:[#allocation6 + $0x58] sm:$0xff] %v3082_v44  ;;  %v1798_v17 = vand.u32 65535, %v4764_v49  ;;  %v1758_v13 = vcvt.s32.f32 %v1756_v46  ;;  %v1249_v51 = vcvt.f32.s32 %v4784_v14 }
 0x2b0   :  { %v5113_v11 = vpop.xlane.xlu1 %1774  ;;  %v1219_v60 = vpop.xlane.xlu0 %1218  ;;  %v1784_v40 = vand.u32 65535, %v5883_v0 }
 0x2b1   :  { %vm1776_vm8 = vcmp.eq.f32.partialorder %v4759_v23, %v5113_v11  ;;  %v1220_v5 = vcvt.f32.s32 %v1219_v60  ;;  %vm1934_vm9 = vcmp.eq.s32.totalorder %v4099_v62, %v1181_v21  ;;  %v1235_v21 = vcvt.f32.s32 %v4798_v53 }
 0x2b2   :  { %v3081_v63 = vsel %vm1934_vm9, 1.0, %v5867_v38  ;;  %3498 = vmatprep.mubr.msk.f32.mxu1 %vm1934_vm9, %v5871_v29  ;;  %v1777_v58 = vsel %vm1776_vm8, %v1772_v33, inf }
 0x2b3   :  { %v1223_v45 = vadd.s32 %v1222_v22, %v1220_v5  ;;  %2575 = vst [vmem:[#allocation6 + $0x50] sm:$0xff] %v3081_v63  ;;  %v2904_v3 = vadd.f32 %v3081_v63, %v2903_v59  ;;  %1778 = vmin.xlane.f32.xlu1 %v1777_v58  ;;  %3499 = vmatmul.mubr.msk.f32.gmra.mxu1 %vm1935_vm7, %v5871_v29  ;;  %v5884_v22 = vld [vmem:[#allocation36_spill] sm:$0xff]  ;;  %v1236_v63 = vshll.u32 %v1235_v21, 16  ;;  %v5885_v21 = vld [vmem:[#allocation18_spill] sm:$0xff] }
 0x2b4   :  { %v5124_v23 = vpop.xlane.xlu1 %1760  ;;  %v1205_v43 = vpop.xlane.xlu0 %1204  ;;  %v1826_v5 = vand.u32 65535, %v5884_v22 }
 0x2b5   :  { %v2905_v41 = vadd.f32 %v3082_v44, %v2904_v3  ;;  %vm1762_vm10 = vcmp.eq.f32.partialorder %v4773_v30, %v5124_v23  ;;  %v1206_v54 = vcvt.f32.s32 %v1205_v43  ;;  %vm1937_vm11 = vcmp.eq.s32.totalorder %v4099_v62, %v1223_v45 }
 0x2b6   :  { %v1763_v59 = vsel %vm1762_vm10, %v1758_v13, inf  ;;  %v3084_v49 = vsel %vm1937_vm11, 1.0, %v5867_v38  ;;  %v1800_v44 = vcvt.s32.f32 %v1798_v17  ;;  %v1250_v30 = vshll.u32 %v1249_v51, 16 }
 0x2b7   :  { %v1209_v6 = vadd.s32 %v1208_v28, %v1206_v54  ;;  %1764 = vmin.xlane.f32.xlu0 %v1763_v59  ;;  %2578 = vst [vmem:[#allocation6 + $0x68] sm:$0xff] %v3084_v49  ;;  %v1786_v3 = vcvt.s32.f32 %v1784_v40  ;;  %v1277_v17 = vcvt.f32.s32 %v4811_v42  ;;  %v1263_v54 = vcvt.f32.s32 %v4824_v61 }
 0x2b8   :  { %v5135_v34 = vpop.xlane.xlu1 %1802  ;;  %v1247_v14 = vpop.xlane.xlu0 %1246 }
 0x2b9   :  { %vm1804_vm12 = vcmp.eq.f32.partialorder %v4787_v48, %v5135_v34  ;;  %v1248_v46 = vcvt.f32.s32 %v1247_v14  ;;  %vm1936_vm13 = vcmp.eq.s32.totalorder %v4099_v62, %v1209_v6  ;;  %v1828_v6 = vcvt.s32.f32 %v1826_v5 }
 0x2ba   :  { %v3083_v4 = vsel %vm1936_vm13, 1.0, %v5867_v38  ;;  %3501 = vmatprep.mubr.msk.f32.mxu1 %vm1936_vm13, %v5871_v29  ;;  %v1805_v60 = vsel %vm1804_vm12, %v1800_v44, inf  ;;  %v1854_v14 = vand.u32 65535, %v5885_v21  ;;  %v1264_v44 = vshll.u32 %v1263_v54, 16 }
 0x2bb   :  { %v1251_v33 = vadd.s32 %v1250_v30, %v1248_v46  ;;  %2577 = vst [vmem:[#allocation6 + $0x60] sm:$0xff] %v3083_v4  ;;  %v2906_v53 = vadd.f32 %v3083_v4, %v2905_v41  ;;  %1806 = vmin.xlane.f32.xlu1 %v1805_v60  ;;  %3502 = vmatmul.mubr.msk.f32.gmra.mxu1 %vm1937_vm11, %v5871_v29  ;;  %v1812_v41 = vand.u32 65535, %v4806_v16  ;;  %v1305_v4 = vcvt.f32.s32 %v4837_v19 }
 0x2bc   :  { %v5146_v48 = vpop.xlane.xlu1 %1788  ;;  %v1233_v58 = vpop.xlane.xlu0 %1232  ;;  %v1333_v21 = vcvt.f32.s32 %v4863_v24 }
 0x2bd   :  { %v2907_v28 = vadd.f32 %v3084_v49, %v2906_v53  ;;  %vm1790_vm14 = vcmp.eq.f32.partialorder %v4801_v7, %v5146_v48  ;;  %v1234_v43 = vcvt.f32.s32 %v1233_v58  ;;  %vm1939_vm15 = vcmp.eq.s32.totalorder %v4099_v62, %v1251_v33  ;;  %v5886_v53 = vld [vmem:[#allocation37_spill] sm:$0xff]  ;;  %v5887_v58 = vld [vmem:[#allocation38_spill] sm:$0xff] }
 0x2be   :  { %v1791_v13 = vsel %vm1790_vm14, %v1786_v3, inf  ;;  %v3086_v45 = vsel %vm1939_vm15, 1.0, %v5867_v38  ;;  %v1278_v7 = vshll.u32 %v1277_v17, 16  ;;  %v1814_v46 = vcvt.s32.f32 %v1812_v41 }
 0x2bf   :  { %v1237_v51 = vadd.s32 %v1236_v63, %v1234_v43  ;;  %1792 = vmin.xlane.f32.xlu0 %v1791_v13  ;;  %2580 = vst [vmem:[#allocation6 + $0x78] sm:$0xff] %v3086_v45  ;;  %v1840_v3 = vand.u32 65535, %v5887_v58  ;;  %v1291_v17 = vcvt.f32.s32 %v4850_v36  ;;  %v1856_v43 = vcvt.s32.f32 %v1854_v14 }
 0x2c0   :  { %v5157_v59 = vpop.xlane.xlu1 %1830  ;;  %v1275_v42 = vpop.xlane.xlu0 %1274  ;;  %v1306_v13 = vshll.u32 %v1305_v4, 16  ;;  %v1334_v58 = vshll.u32 %v1333_v21, 16  ;;  %v5896_v21 = vld [vmem:[#allocation28_spill] sm:$0xff] }
 0x2c1   :  { %vm1832_vm1 = vcmp.eq.f32.partialorder %v4814_v35, %v5157_v59  ;;  %v1276_v49 = vcvt.f32.s32 %v1275_v42  ;;  %vm1938_vm2 = vcmp.eq.s32.totalorder %v4099_v62, %v1237_v51  ;;  %v5888_v51 = vld [vmem:[#allocation19_spill] sm:$0xff] }
 0x2c2   :  { %v3085_v0 = vsel %vm1938_vm2, 1.0, %v5867_v38  ;;  %3504 = vmatprep.mubr.msk.f32.mxu1 %vm1938_vm2, %v5871_v29  ;;  %v1833_v40 = vsel %vm1832_vm1, %v1828_v6, inf  ;;  %v5889_v6 = vld [vmem:[#allocation39_spill] sm:$0xff] }
 0x2c3   :  { %v1279_v16 = vadd.s32 %v1278_v7, %v1276_v49  ;;  %2579 = vst [vmem:[#allocation6 + $0x70] sm:$0xff] %v3085_v0  ;;  %v2908_v61 = vadd.f32 %v3085_v0, %v2907_v28  ;;  %1834 = vmin.xlane.f32.xlu1 %v1833_v40  ;;  %3505 = vmatmul.mubr.msk.f32.gmra.mxu1 %vm1939_vm15, %v5871_v29  ;;  %v1882_v7 = vand.u32 65535, %v5889_v6  ;;  %v1292_v49 = vshll.u32 %v1291_v17, 16 }
 0x2c4   :  { %v5168_v35 = vpop.xlane.xlu1 %1816  ;;  %v1261_v30 = vpop.xlane.xlu0 %1260 }
 0x2c5   :  { %v2909_v60 = vadd.f32 %v3086_v45, %v2908_v61  ;;  %vm1818_vm3 = vcmp.eq.f32.partialorder %v5886_v53, %v5168_v35  ;;  %v1262_v22 = vcvt.f32.s32 %v1261_v30  ;;  %vm1941_vm4 = vcmp.eq.s32.totalorder %v4099_v62, %v1279_v16 }
 0x2c6   :  { %v1819_v5 = vsel %vm1818_vm3, %v1814_v46, inf  ;;  %v3088_v33 = vsel %vm1941_vm4, 1.0, %v5867_v38  ;;  %v1842_v61 = vcvt.s32.f32 %v1840_v3  ;;  %v5893_v3 = vld [vmem:[#allocation22_spill] sm:$0xff] }
 0x2c7   :  { %v1265_v63 = vadd.s32 %v1264_v44, %v1262_v22  ;;  %1820 = vmin.xlane.f32.xlu0 %v1819_v5  ;;  %2582 = vst [vmem:[#allocation6 + $0x88] sm:$0xff] %v3088_v33  ;;  %v5890_v44 = vld [vmem:[#allocation20_spill] sm:$0xff]  ;;  %v5892_v22 = vld [vmem:[#allocation26_spill] sm:$0xff] }
 0x2c8   :  { %v5179_v28 = vpop.xlane.xlu1 %1858  ;;  %v1303_v19 = vpop.xlane.xlu0 %1302  ;;  %v1319_v5 = vcvt.f32.s32 %v5892_v22 }
 0x2c9   :  { %vm1860_vm5 = vcmp.eq.f32.partialorder %v5888_v51, %v5179_v28  ;;  %v1304_v45 = vcvt.f32.s32 %v1303_v19  ;;  %vm1940_vm6 = vcmp.eq.s32.totalorder %v4099_v62, %v1265_v63 }
 0x2ca   :  { %v3087_v41 = vsel %vm1940_vm6, 1.0, %v5867_v38  ;;  %3507 = vmatprep.mubr.msk.f32.mxu1 %vm1940_vm6, %v5871_v29  ;;  %v1861_v54 = vsel %vm1860_vm5, %v1856_v43, inf }
 0x2cb   :  { %v1307_v42 = vadd.s32 %v1306_v13, %v1304_v45  ;;  %2581 = vst [vmem:[#allocation6 + $0x80] sm:$0xff] %v3087_v41  ;;  %v2910_v36 = vadd.f32 %v3087_v41, %v2909_v60  ;;  %1862 = vmin.xlane.f32.xlu1 %v1861_v54  ;;  %3508 = vmatmul.mubr.msk.f32.gmra.mxu1 %vm1941_vm4, %v5871_v29  ;;  %v5891_v60 = vld [vmem:[#allocation21_spill] sm:$0xff]  ;;  %v5894_v45 = vld [vmem:[#allocation23_spill] sm:$0xff]  ;;  %v1320_v54 = vshll.u32 %v1319_v5, 16 }
 0x2cc   :  { %v5190_v0 = vpop.xlane.xlu1 %1844  ;;  %v1289_v40 = vpop.xlane.xlu0 %1288  ;;  %v1868_v53 = vand.u32 65535, %v5891_v60  ;;  %v1896_v41 = vand.u32 65535, %v5894_v45  ;;  %v5898_v60 = vld [vmem:[#allocation33_spill] sm:$0xff] }
 0x2cd   :  { %v2911_v14 = vadd.f32 %v3088_v33, %v2910_v36  ;;  %vm1846_vm7 = vcmp.eq.f32.partialorder %v5890_v44, %v5190_v0  ;;  %v1290_v30 = vcvt.f32.s32 %v1289_v40  ;;  %vm1943_vm8 = vcmp.eq.s32.totalorder %v4099_v62, %v1307_v42 }
 0x2ce   :  { %v1847_v46 = vsel %vm1846_vm7, %v1842_v61, inf  ;;  %v3090_v16 = vsel %vm1943_vm8, 1.0, %v5867_v38  ;;  %v1884_v33 = vcvt.s32.f32 %v1882_v7  ;;  %v1870_v7 = vcvt.s32.f32 %v1868_v53 }
 0x2cf   :  { %v1293_v4 = vadd.s32 %v1292_v49, %v1290_v30  ;;  %1848 = vmin.xlane.f32.xlu0 %v1847_v46  ;;  %2584 = vst [vmem:[#allocation6 + $0x98] sm:$0xff] %v3090_v16  ;;  %v5895_v49 = vld [vmem:[#allocation50_spill] sm:$0xff]  ;;  %v5897_v46 = vld [vmem:[#allocation31_spill] sm:$0xff]  ;;  %v1347_v53 = vcvt.f32.s32 %v5898_v60  ;;  %v1898_v5 = vcvt.s32.f32 %v1896_v41 }
 0x2d0   :  { %v5201_v63 = vpop.xlane.xlu1 %1886  ;;  %v1331_v24 = vpop.xlane.xlu0 %1330  ;;  %v1361_v40 = vcvt.f32.s32 %v5895_v49 }
 0x2d1   :  { %vm1888_vm9 = vcmp.eq.f32.partialorder %v5893_v3, %v5201_v63  ;;  %v1332_v17 = vcvt.f32.s32 %v1331_v24  ;;  %vm1942_vm10 = vcmp.eq.s32.totalorder %v4099_v62, %v1293_v4  ;;  %v1910_v4 = vand.u32 65535, %v5897_v46  ;;  %v5902_v46 = vld [vmem:[#allocation54_spill] sm:$0xff] }
 0x2d2   :  { %v3089_v19 = vsel %vm1942_vm10, 1.0, %v5867_v38  ;;  %3510 = vmatprep.mubr.msk.f32.mxu1 %vm1942_vm10, %v5871_v29  ;;  %v1889_v43 = vsel %vm1888_vm9, %v1884_v33, inf  ;;  %v1362_v24 = vshll.u32 %v1361_v40, 16  ;;  %v5899_v33 = vld [vmem:[#allocation51_spill] sm:$0xff]  ;;  %v5901_v40 = vld [vmem:[#allocation52_spill] sm:$0xff]  ;;  %v1375_v60 = vcvt.f32.s32 %v5902_v46 }
 0x2d3   :  { %v1335_v13 = vadd.s32 %v1334_v58, %v1332_v17  ;;  %2583 = vst [vmem:[#allocation6 + $0x90] sm:$0xff] %v3089_v19  ;;  %v2912_v51 = vadd.f32 %v3089_v19, %v2911_v14  ;;  %1890 = vmin.xlane.f32.xlu1 %v1889_v43  ;;  %3511 = vmatmul.mubr.msk.f32.gmra.mxu1 %vm1943_vm8, %v5871_v29 }
 0x2d4   :  { %v5212_v36 = vpop.xlane.xlu1 %1872  ;;  %v1317_v6 = vpop.xlane.xlu0 %1316 }
 0x2d5   :  { %v2913_v61 = vadd.f32 %v3090_v16, %v2912_v51  ;;  %vm1874_vm11 = vcmp.eq.f32.partialorder %v5896_v21, %v5212_v36  ;;  %v1318_v44 = vcvt.f32.s32 %v1317_v6  ;;  %vm1945_vm12 = vcmp.eq.s32.totalorder %v4099_v62, %v1335_v13  ;;  %v5900_v6 = vld [vmem:[#allocation53_spill] sm:$0xff] }
 0x2d6   :  { %v1875_v14 = vsel %vm1874_vm11, %v1870_v7, inf  ;;  %v3092_v42 = vsel %vm1945_vm12, 1.0, %v5867_v38  ;;  %v1348_v51 = vshll.u32 %v1347_v53, 16  ;;  %v1389_v7 = vcvt.f32.s32 %v5900_v6 }
 0x2d7   :  { %v1321_v30 = vadd.s32 %v1320_v54, %v1318_v44  ;;  %1876 = vmin.xlane.f32.xlu0 %v1875_v14  ;;  %2586 = vst [vmem:[#allocation6 + $0xa8] sm:$0xff] %v3092_v42  ;;  %v1912_v54 = vcvt.s32.f32 %v1910_v4  ;;  %v1445_v6 = vcvt.f32.s32 %v4930_v10 }
 0x2d8   :  { %v5223_v22 = vpop.xlane.xlu1 %1900  ;;  %v1359_v16 = vpop.xlane.xlu0 %1358 }
 0x2d9   :  { %vm1902_vm13 = vcmp.eq.f32.partialorder %v5899_v33, %v5223_v22  ;;  %v1360_v58 = vcvt.f32.s32 %v1359_v16  ;;  %vm1944_vm14 = vcmp.eq.s32.totalorder %v4099_v62, %v1321_v30  ;;  %v1390_v30 = vshll.u32 %v1389_v7, 16 }
 0x2da   :  { %v3091_v3 = vsel %vm1944_vm14, 1.0, %v5867_v38  ;;  %3513 = vmatprep.mubr.msk.f32.mxu1 %vm1944_vm14, %v5871_v29  ;;  %v1903_v17 = vsel %vm1902_vm13, %v1898_v5, inf  ;;  %v1376_v5 = vshll.u32 %v1375_v60, 16  ;;  %v1446_v60 = vshll.u32 %v1445_v6, 16 }
 0x2db   :  { %v1363_v19 = vadd.s32 %v1362_v24, %v1360_v58  ;;  %2585 = vst [vmem:[#allocation6 + $0xa0] sm:$0xff] %v3091_v3  ;;  %v2914_v43 = vadd.f32 %v3091_v3, %v2913_v61  ;;  %1904 = vmin.xlane.f32.xlu0 %v1903_v17  ;;  %3514 = vmatmul.mubr.msk.f32.gmra.mxu1 %vm1945_vm12, %v5871_v29  ;;  %v5903_v24 = vld [vmem:[#allocation55_spill] sm:$0xff]  ;;  %v1487_v6 = vcvt.f32.s32 %v4942_v1 }
 0x2dc   :  { %v5233_v45 = vpop.xlane.xlu1 %1914  ;;  %v1345_v41 = vpop.xlane.xlu0 %1344  ;;  %v1417_v33 = vcvt.f32.s32 %v5903_v24 }
 0x2dd   :  { %v2915_v49 = vadd.f32 %v3092_v42, %v2914_v43  ;;  %vm1916_vm15 = vcmp.eq.f32.partialorder %v5901_v40, %v5233_v45  ;;  %v1346_v21 = vcvt.f32.s32 %v1345_v41  ;;  %vm1947_vm1 = vcmp.eq.s32.totalorder %v4099_v62, %v1363_v19  ;;  %v5904_v43 = vld [vmem:[#allocation32_spill] sm:$0xff] }
 0x2de   :  { %v1917_v44 = vsel %vm1916_vm15, %v1912_v54, inf  ;;  %v3094_v13 = vsel %vm1947_vm1, 1.0, %v5867_v38  ;;  %v1418_v54 = vshll.u32 %v1417_v33, 16 }
 0x2df   :  { %v1349_v61 = vadd.s32 %v1348_v51, %v1346_v21  ;;  %1918 = vmin.xlane.f32.xlu1 %v1917_v44  ;;  %2588 = vst [vmem:[#allocation6 + $0xb8] sm:$0xff] %v3094_v13  ;;  %v1403_v51 = vcvt.f32.s32 %v5904_v43 }
 0x2e0   :  { %v1387_v14 = vpop.xlane.xlu0 %1386 }
 0x2e1   :  { %v1388_v4 = vcvt.f32.s32 %v1387_v14  ;;  %vm1946_vm2 = vcmp.eq.s32.totalorder %v4099_v62, %v1349_v61  ;;  %v1404_v61 = vshll.u32 %v1403_v51, 16  ;;  %v1473_v14 = vcvt.f32.s32 %v4938_v31 }
 0x2e2   :  { %v3093_v42 = vsel %vm1946_vm2, 1.0, %v5867_v38  ;;  %3516 = vmatprep.mubr.msk.f32.mxu1 %vm1946_vm2, %v5871_v29  ;;  %v1501_v31 = vcvt.f32.s32 %v4948_v39 }
 0x2e3   :  { %v1391_v53 = vadd.s32 %v1390_v30, %v1388_v4  ;;  %2587 = vst [vmem:[#allocation6 + $0xb0] sm:$0xff] %v3093_v42  ;;  %3517 = vmatmul.mubr.msk.f32.gmra.mxu1 %vm1947_vm1, %v5871_v29  ;;  %v2916_v3 = vadd.f32 %v3093_v42, %v2915_v49  ;;  %v1431_v49 = vcvt.f32.s32 %v4916_v56  ;;  %v1474_v24 = vshll.u32 %v1473_v14, 16 }
 0x2e4   :  { %v1373_v16 = vpop.xlane.xlu0 %1372 }
 0x2e5   :  { %v1374_v58 = vcvt.f32.s32 %v1373_v16  ;;  %vm1949_vm3 = vcmp.eq.s32.totalorder %v4099_v62, %v1391_v53  ;;  %v2917_v40 = vadd.f32 %v3094_v13, %v2916_v3  ;;  %v1432_v42 = vshll.u32 %v1431_v49, 16 }
 0x2e6   :  { %v3096_v17 = vsel %vm1949_vm3, 1.0, %v5867_v38  ;;  %v1459_v53 = vcvt.f32.s32 %v4928_v47 }
 0x2e7   :  { %v1377_v19 = vadd.s32 %v1376_v5, %v1374_v58  ;;  %2590 = vst [vmem:[#allocation6 + $0xc8] sm:$0xff] %v3096_v17 }
 0x2e8   :  { %v1415_v41 = vpop.xlane.xlu0 %1414 }
 0x2e9   :  { %v1416_v7 = vcvt.f32.s32 %v1415_v41  ;;  %vm1948_vm4 = vcmp.eq.s32.totalorder %v4099_v62, %v1377_v19 }
 0x2ea   :  { %v3095_v21 = vsel %vm1948_vm4, 1.0, %v5867_v38  ;;  %3519 = vmatprep.mubr.msk.f32.mxu1 %vm1948_vm4, %v5871_v29 }
 0x2eb   :  { %v1419_v44 = vadd.s32 %v1418_v54, %v1416_v7  ;;  %2589 = vst [vmem:[#allocation6 + $0xc0] sm:$0xff] %v3095_v21  ;;  %3520 = vmatmul.mubr.msk.f32.gmra.mxu1 %vm1949_vm3, %v5871_v29  ;;  %v2918_v10 = vadd.f32 %v3095_v21, %v2917_v40  ;;  %v1502_v7 = vshll.u32 %v1501_v31, 16  ;;  %v1529_v40 = vcvt.f32.s32 %v4958_v52 }
 0x2ec   :  { %v1443_v30 = vpop.xlane.xlu1 %1442  ;;  %v1401_v46 = vpop.xlane.xlu0 %1400 }
 0x2ed   :  { %v1444_v13 = vcvt.f32.s32 %v1443_v30  ;;  %v1402_v4 = vcvt.f32.s32 %v1401_v46  ;;  %vm1951_vm5 = vcmp.eq.s32.totalorder %v4099_v62, %v1419_v44  ;;  %v2919_v33 = vadd.f32 %v3096_v17, %v2918_v10 }
 0x2ee   :  { %v3098_v56 = vsel %vm1951_vm5, 1.0, %v5867_v38  ;;  %v1460_v17 = vshll.u32 %v1459_v53, 16 }
 0x2ef   :  { %v1447_v16 = vadd.s32 %v1446_v60, %v1444_v13  ;;  %v1405_v5 = vadd.s32 %v1404_v61, %v1402_v4  ;;  %2592 = vst [vmem:[#allocation6 + $0xd8] sm:$0xff] %v3098_v56  ;;  %v1488_v60 = vshll.u32 %v1487_v6, 16  ;;  %v1515_v13 = vcvt.f32.s32 %v4956_v20 }
 0x2f0   :  { %v1471_v58 = vpop.xlane.xlu1 %1470  ;;  %v1429_v3 = vpop.xlane.xlu0 %1428  ;;  %v1530_v4 = vshll.u32 %v1529_v40, 16 }
 0x2f1   :  { %v1472_v19 = vcvt.f32.s32 %v1471_v58  ;;  %v1430_v43 = vcvt.f32.s32 %v1429_v3  ;;  %vm1950_vm6 = vcmp.eq.s32.totalorder %v4099_v62, %v1405_v5  ;;  %vm1953_vm7 = vcmp.eq.s32.totalorder %v4099_v62, %v1447_v16 }
 0x2f2   :  { %v3097_v51 = vsel %vm1950_vm6, 1.0, %v5867_v38  ;;  %3522 = vmatprep.mubr.msk.f32.mxu1 %vm1950_vm6, %v5871_v29  ;;  %v3100_v47 = vsel %vm1953_vm7, 1.0, %v5867_v38  ;;  %v1516_v3 = vshll.u32 %v1515_v13, 16 }
 0x2f3   :  { %v1475_v41 = vadd.s32 %v1474_v24, %v1472_v19  ;;  %v1433_v54 = vadd.s32 %v1432_v42, %v1430_v43  ;;  %2591 = vst [vmem:[#allocation6 + $0xd0] sm:$0xff] %v3097_v51  ;;  %v2920_v39 = vadd.f32 %v3097_v51, %v2919_v33  ;;  %3523 = vmatmul.mubr.msk.f32.gmra.mxu1 %vm1951_vm5, %v5871_v29  ;;  %2594 = vst [vmem:[#allocation6 + $0xe8] sm:$0xff] %v3100_v47 }
 0x2f4   :  { %v1499_v21 = vpop.xlane.xlu1 %1498  ;;  %v1457_v49 = vpop.xlane.xlu0 %1456  ;;  %v1543_v43 = vcvt.f32.s32 %v4970_v27 }
 0x2f5   :  { %v2921_v61 = vadd.f32 %v3098_v56, %v2920_v39  ;;  %v1500_v14 = vcvt.f32.s32 %v1499_v21  ;;  %v1458_v10 = vcvt.f32.s32 %v1457_v49  ;;  %vm1952_vm8 = vcmp.eq.s32.totalorder %v4099_v62, %v1433_v54 }
 0x2f6   :  { %v3099_v30 = vsel %vm1952_vm8, 1.0, %v5867_v38  ;;  %3525 = vmatprep.mubr.msk.f32.mxu1 %vm1952_vm8, %v5871_v29  ;;  %vm1955_vm9 = vcmp.eq.s32.totalorder %v4099_v62, %v1475_v41  ;;  %v1557_v56 = vcvt.f32.s32 %v4965_v12  ;;  %v1544_v21 = vshll.u32 %v1543_v43, 16 }
 0x2f7   :  { %v1503_v44 = vadd.s32 %v1502_v7, %v1500_v14  ;;  %v1461_v46 = vadd.s32 %v1460_v17, %v1458_v10  ;;  %2593 = vst [vmem:[#allocation6 + $0xe0] sm:$0xff] %v3099_v30  ;;  %v2922_v1 = vadd.f32 %v3099_v30, %v2921_v61  ;;  %3526 = vmatmul.mubr.msk.f32.gmra.mxu1 %vm1953_vm7, %v5871_v29  ;;  %v3102_v52 = vsel %vm1955_vm9, 1.0, %v5867_v38 }
 0x2f8   :  { %v1527_v42 = vpop.xlane.xlu1 %1526  ;;  %v1485_v5 = vpop.xlane.xlu0 %1484  ;;  %2596 = vst [vmem:[#allocation6 + $0xf8] sm:$0xff] %v3102_v52  ;;  %v1558_v19 = vshll.u32 %v1557_v56, 16  ;;  %v1585_v49 = vcvt.f32.s32 %v4975_v9  ;;  %v1571_v9 = vcvt.f32.s32 %v4980_v50  ;;  %v1613_v50 = vcvt.f32.s32 %v4987_v26 }
 0x2f9   :  { %v2923_v53 = vadd.f32 %v3100_v47, %v2922_v1  ;;  %v1528_v24 = vcvt.f32.s32 %v1527_v42  ;;  %v1486_v31 = vcvt.f32.s32 %v1485_v5  ;;  %vm1954_vm10 = vcmp.eq.s32.totalorder %v4099_v62, %v1461_v46 }
 0x2fa   :  { %v3101_v16 = vsel %vm1954_vm10, 1.0, %v5867_v38  ;;  %3528 = vmatprep.mubr.msk.f32.mxu1 %vm1954_vm10, %v5871_v29  ;;  %vm1957_vm11 = vcmp.eq.s32.totalorder %v4099_v62, %v1503_v44 }
 0x2fb   :  { %v1531_v33 = vadd.s32 %v1530_v4, %v1528_v24  ;;  %v1489_v58 = vadd.s32 %v1488_v60, %v1486_v31  ;;  %2595 = vst [vmem:[#allocation6 + $0xf0] sm:$0xff] %v3101_v16  ;;  %v2924_v20 = vadd.f32 %v3101_v16, %v2923_v53  ;;  %3529 = vmatmul.mubr.msk.f32.gmra.mxu1 %vm1955_vm9, %v5871_v29  ;;  %v3104_v12 = vsel %vm1957_vm11, 1.0, %v5867_v38 }
 0x2fc   :  { %v1555_v51 = vpop.xlane.xlu1 %1554  ;;  %v1513_v47 = vpop.xlane.xlu0 %1512  ;;  %2598 = vst [vmem:[#allocation6 + $0x108] sm:$0xff] %v3104_v12  ;;  %v1586_v60 = vshll.u32 %v1585_v49, 16  ;;  %v1572_v53 = vshll.u32 %v1571_v9, 16 }
 0x2fd   :  { %v2925_v54 = vadd.f32 %v3102_v52, %v2924_v20  ;;  %v1556_v39 = vcvt.f32.s32 %v1555_v51  ;;  %v1514_v17 = vcvt.f32.s32 %v1513_v47  ;;  %vm1956_vm12 = vcmp.eq.s32.totalorder %v4099_v62, %v1489_v58 }
 0x2fe   :  { %v3103_v6 = vsel %vm1956_vm12, 1.0, %v5867_v38  ;;  %3531 = vmatprep.mubr.msk.f32.mxu1 %vm1956_vm12, %v5871_v29  ;;  %vm1959_vm13 = vcmp.eq.s32.totalorder %v4099_v62, %v1531_v33  ;;  %v1599_v20 = vcvt.f32.s32 %v4992_v25 }
 0x2ff   :  { %v1559_v41 = vadd.s32 %v1558_v19, %v1556_v39  ;;  %v1517_v7 = vadd.s32 %v1516_v3, %v1514_v17  ;;  %2597 = vst [vmem:[#allocation6 + $0x100] sm:$0xff] %v3103_v6  ;;  %v2926_v40 = vadd.f32 %v3103_v6, %v2925_v54  ;;  %3532 = vmatmul.mubr.msk.f32.gmra.mxu1 %vm1957_vm11, %v5871_v29  ;;  %v3106_v27 = vsel %vm1959_vm13, 1.0, %v5867_v38 }
 0x300   :  { %v1541_v61 = vpop.xlane.xlu0 %1540  ;;  %2600 = vst [vmem:[#allocation6 + $0x118] sm:$0xff] %v3106_v27  ;;  %v1614_v3 = vshll.u32 %v1613_v50, 16  ;;  %v1600_v47 = vshll.u32 %v1599_v20, 16  ;;  %v1641_v39 = vcvt.f32.s32 %v5003_v37 }
 0x301   :  { %v2927_v14 = vadd.f32 %v3104_v12, %v2926_v40  ;;  %v1542_v10 = vcvt.f32.s32 %v1541_v61  ;;  %vm1958_vm14 = vcmp.eq.s32.totalorder %v4099_v62, %v1517_v7  ;;  %vm1961_vm15 = vcmp.eq.s32.totalorder %v4099_v62, %v1559_v41  ;;  %v5905_v7 = vld [vmem:[#allocation56_spill] sm:$0xff] }
 0x302   :  { %v3105_v30 = vsel %vm1958_vm14, 1.0, %v5867_v38  ;;  %3534 = vmatprep.mubr.msk.f32.mxu1 %vm1958_vm14, %v5871_v29  ;;  %v3108_v44 = vsel %vm1961_vm15, 1.0, %v5867_v38  ;;  %v1627_v40 = vcvt.f32.s32 %v5905_v7 }
 0x303   :  { %v1545_v46 = vadd.s32 %v1544_v21, %v1542_v10  ;;  %2599 = vst [vmem:[#allocation6 + $0x110] sm:$0xff] %v3105_v30  ;;  %v2928_v1 = vadd.f32 %v3105_v30, %v2927_v14  ;;  %3535 = vmatmul.mubr.msk.f32.gmra.mxu1 %vm1959_vm13, %v5871_v29  ;;  %2602 = vst [vmem:[#allocation6 + $0x128] sm:$0xff] %v3108_v44  ;;  %v1642_v21 = vshll.u32 %v1641_v39, 16  ;;  %v1725_v39 = vcvt.f32.s32 %v5069_v55 }
 0x304   :  { %v1583_v52 = vpop.xlane.xlu1 %1582  ;;  %v1628_v10 = vshll.u32 %v1627_v40, 16 }
 0x305   :  { %v2929_v13 = vadd.f32 %v3106_v27, %v2928_v1  ;;  %v1584_v4 = vcvt.f32.s32 %v1583_v52  ;;  %vm1960_vm1 = vcmp.eq.s32.totalorder %v4099_v62, %v1545_v46  ;;  %v1726_v40 = vshll.u32 %v1725_v39, 16 }
 0x306   :  { %v3107_v56 = vsel %vm1960_vm1, 1.0, %v5867_v38  ;;  %3537 = vmatprep.mubr.msk.f32.mxu1 %vm1960_vm1, %v5871_v29 }
 0x307   :  { %v1587_v42 = vadd.s32 %v1586_v60, %v1584_v4  ;;  %2601 = vst [vmem:[#allocation6 + $0x120] sm:$0xff] %v3107_v56  ;;  %v2930_v5 = vadd.f32 %v3107_v56, %v2929_v13  ;;  %3538 = vmatmul.mubr.msk.f32.gmra.mxu1 %vm1961_vm15, %v5871_v29  ;;  %v1655_v13 = vcvt.f32.s32 %v5036_v2 }
 0x308   :  { %v1569_v24 = vpop.xlane.xlu0 %1568 }
 0x309   :  { %v2931_v31 = vadd.f32 %v3108_v44, %v2930_v5  ;;  %v1570_v16 = vcvt.f32.s32 %v1569_v24  ;;  %vm1963_vm2 = vcmp.eq.s32.totalorder %v4099_v62, %v1587_v42  ;;  %v5906_v44 = vld [vmem:[#allocation57_spill] sm:$0xff]  ;;  %v1656_v50 = vshll.u32 %v1655_v13, 16 }
 0x30a   :  { %v3110_v33 = vsel %vm1963_vm2, 1.0, %v5867_v38  ;;  %v1669_v46 = vcvt.f32.s32 %v5906_v44 }
 0x30b   :  { %v1573_v58 = vadd.s32 %v1572_v53, %v1570_v16  ;;  %2604 = vst [vmem:[#allocation6 + $0x138] sm:$0xff] %v3110_v33  ;;  %v1697_v16 = vcvt.f32.s32 %v5047_v32 }
 0x30c   :  { %v1611_v12 = vpop.xlane.xlu1 %1610  ;;  %v1670_v56 = vshll.u32 %v1669_v46, 16  ;;  %v1739_v46 = vcvt.f32.s32 %v5102_v15 }
 0x30d   :  { %v1612_v19 = vcvt.f32.s32 %v1611_v12  ;;  %vm1962_vm3 = vcmp.eq.s32.totalorder %v4099_v62, %v1573_v58  ;;  %v1683_v12 = vcvt.f32.s32 %v5058_v18 }
 0x30e   :  { %v3109_v43 = vsel %vm1962_vm3, 1.0, %v5867_v38  ;;  %3540 = vmatprep.mubr.msk.f32.mxu1 %vm1962_vm3, %v5871_v29 }
 0x30f   :  { %v1615_v26 = vadd.s32 %v1614_v3, %v1612_v19  ;;  %2603 = vst [vmem:[#allocation6 + $0x130] sm:$0xff] %v3109_v43  ;;  %v2932_v51 = vadd.f32 %v3109_v43, %v2931_v31  ;;  %3541 = vmatmul.mubr.msk.f32.gmra.mxu1 %vm1963_vm2, %v5871_v29  ;;  %v1698_v19 = vshll.u32 %v1697_v16, 16 }
 0x310   :  { %v1597_v54 = vpop.xlane.xlu0 %1596 }
 0x311   :  { %v2933_v17 = vadd.f32 %v3110_v33, %v2932_v51  ;;  %v1598_v25 = vcvt.f32.s32 %v1597_v54  ;;  %vm1965_vm4 = vcmp.eq.s32.totalorder %v4099_v62, %v1615_v26 }
 0x312   :  { %v3112_v6 = vsel %vm1965_vm4, 1.0, %v5867_v38 }
 0x313   :  { %v1601_v41 = vadd.s32 %v1600_v47, %v1598_v25  ;;  %2606 = vst [vmem:[#allocation6 + $0x148] sm:$0xff] %v3112_v6  ;;  %v1684_v47 = vshll.u32 %v1683_v12, 16 }
 0x314   :  { %v1639_v27 = vpop.xlane.xlu1 %1638 }
 0x315   :  { %v1640_v49 = vcvt.f32.s32 %v1639_v27  ;;  %vm1964_vm5 = vcmp.eq.s32.totalorder %v4099_v62, %v1601_v41  ;;  %v1711_v41 = vcvt.f32.s32 %v5080_v57 }
 0x316   :  { %v3111_v61 = vsel %vm1964_vm5, 1.0, %v5867_v38  ;;  %3543 = vmatprep.mubr.msk.f32.mxu1 %vm1964_vm5, %v5871_v29 }
 0x317   :  { %v1643_v37 = vadd.s32 %v1642_v21, %v1640_v49  ;;  %2605 = vst [vmem:[#allocation6 + $0x140] sm:$0xff] %v3111_v61  ;;  %v2934_v14 = vadd.f32 %v3111_v61, %v2933_v17  ;;  %3544 = vmatmul.mubr.msk.f32.gmra.mxu1 %vm1965_vm4, %v5871_v29  ;;  %v1712_v61 = vshll.u32 %v1711_v41, 16 }
 0x318   :  { %v1625_v30 = vpop.xlane.xlu0 %1624 }
 0x319   :  { %v2935_v1 = vadd.f32 %v3112_v6, %v2934_v14  ;;  %v1626_v9 = vcvt.f32.s32 %v1625_v30  ;;  %vm1967_vm6 = vcmp.eq.s32.totalorder %v4099_v62, %v1643_v37  ;;  %v1753_v14 = vcvt.f32.s32 %v5091_v8 }
 0x31a   :  { %v3114_v52 = vsel %vm1967_vm6, 1.0, %v5867_v38 }
 0x31b   :  { %v1629_v60 = vadd.s32 %v1628_v10, %v1626_v9  ;;  %2608 = vst [vmem:[#allocation6 + $0x158] sm:$0xff] %v3114_v52  ;;  %v1754_v9 = vshll.u32 %v1753_v14, 16 }
 0x31c   :  { %v1667_v4 = vpop.xlane.xlu1 %1666 }
 0x31d   :  { %v1668_v42 = vcvt.f32.s32 %v1667_v4  ;;  %vm1966_vm7 = vcmp.eq.s32.totalorder %v4099_v62, %v1629_v60  ;;  %v1740_v4 = vshll.u32 %v1739_v46, 16 }
 0x31e   :  { %v3113_v5 = vsel %vm1966_vm7, 1.0, %v5867_v38  ;;  %3546 = vmatprep.mubr.msk.f32.mxu1 %vm1966_vm7, %v5871_v29 }
 0x31f   :  { %v1671_v53 = vadd.s32 %v1670_v56, %v1668_v42  ;;  %2607 = vst [vmem:[#allocation6 + $0x150] sm:$0xff] %v3113_v5  ;;  %v2936_v24 = vadd.f32 %v3113_v5, %v2935_v1  ;;  %3547 = vmatmul.mubr.msk.f32.gmra.mxu1 %vm1967_vm6, %v5871_v29  ;;  %v1781_v42 = vcvt.f32.s32 %v5113_v11 }
 0x320   :  { %v1653_v31 = vpop.xlane.xlu0 %1652 }
 0x321   :  { %v2937_v33 = vadd.f32 %v3114_v52, %v2936_v24  ;;  %v1654_v2 = vcvt.f32.s32 %v1653_v31  ;;  %vm1969_vm8 = vcmp.eq.s32.totalorder %v4099_v62, %v1671_v53  ;;  %v1782_v16 = vshll.u32 %v1781_v42, 16 }
 0x322   :  { %v3116_v58 = vsel %vm1969_vm8, 1.0, %v5867_v38 }
 0x323   :  { %v1657_v20 = vadd.s32 %v1656_v50, %v1654_v2  ;;  %2610 = vst [vmem:[#allocation6 + $0x168] sm:$0xff] %v3116_v58  ;;  %v1767_v50 = vcvt.f32.s32 %v5124_v23 }
 0x324   :  { %v1695_v3 = vpop.xlane.xlu1 %1694 }
 0x325   :  { %v1696_v43 = vcvt.f32.s32 %v1695_v3  ;;  %vm1968_vm9 = vcmp.eq.s32.totalorder %v4099_v62, %v1657_v20  ;;  %v1768_v20 = vshll.u32 %v1767_v50, 16  ;;  %v1809_v3 = vcvt.f32.s32 %v5135_v34 }
 0x326   :  { %v3115_v26 = vsel %vm1968_vm9, 1.0, %v5867_v38  ;;  %3549 = vmatprep.mubr.msk.f32.mxu1 %vm1968_vm9, %v5871_v29 }
 0x327   :  { %v1699_v32 = vadd.s32 %v1698_v19, %v1696_v43  ;;  %2609 = vst [vmem:[#allocation6 + $0x160] sm:$0xff] %v3115_v26  ;;  %v2938_v51 = vadd.f32 %v3115_v26, %v2937_v33  ;;  %3550 = vmatmul.mubr.msk.f32.gmra.mxu1 %vm1969_vm8, %v5871_v29 }
 0x328   :  { %v1681_v54 = vpop.xlane.xlu0 %1680 }
 0x329   :  { %v2939_v17 = vadd.f32 %v3116_v58, %v2938_v51  ;;  %v1682_v18 = vcvt.f32.s32 %v1681_v54  ;;  %vm1971_vm10 = vcmp.eq.s32.totalorder %v4099_v62, %v1699_v32  ;;  %v1795_v32 = vcvt.f32.s32 %v5146_v48 }
 0x32a   :  { %v3118_v25 = vsel %vm1971_vm10, 1.0, %v5867_v38 }
 0x32b   :  { %v1685_v6 = vadd.s32 %v1684_v47, %v1682_v18  ;;  %2612 = vst [vmem:[#allocation6 + $0x178] sm:$0xff] %v3118_v25  ;;  %v1810_v47 = vshll.u32 %v1809_v3, 16  ;;  %v1796_v18 = vshll.u32 %v1795_v32, 16 }
 0x32c   :  { %v1723_v7 = vpop.xlane.xlu1 %1722 }
 0x32d   :  { %v1724_v27 = vcvt.f32.s32 %v1723_v7  ;;  %vm1970_vm11 = vcmp.eq.s32.totalorder %v4099_v62, %v1685_v6  ;;  %v1837_v6 = vcvt.f32.s32 %v5157_v59 }
 0x32e   :  { %v3117_v21 = vsel %vm1970_vm11, 1.0, %v5867_v38  ;;  %3552 = vmatprep.mubr.msk.f32.mxu1 %vm1970_vm11, %v5871_v29 }
 0x32f   :  { %v1727_v55 = vadd.s32 %v1726_v40, %v1724_v27  ;;  %2611 = vst [vmem:[#allocation6 + $0x170] sm:$0xff] %v3117_v21  ;;  %v2940_v49 = vadd.f32 %v3117_v21, %v2939_v17  ;;  %3553 = vmatmul.mubr.msk.f32.gmra.mxu1 %vm1971_vm10, %v5871_v29  ;;  %v1823_v21 = vcvt.f32.s32 %v5168_v35 }
 0x330   :  { %v1709_v37 = vpop.xlane.xlu0 %1708 }
 0x331   :  { %v2941_v10 = vadd.f32 %v3118_v25, %v2940_v49  ;;  %v1710_v57 = vcvt.f32.s32 %v1709_v37  ;;  %vm1973_vm12 = vcmp.eq.s32.totalorder %v4099_v62, %v1727_v55  ;;  %v3620_v55 = vld [vmem:[#allocation2 + $0x8] sm:$0xff]  ;;  %v1838_v37 = vshll.u32 %v1837_v6, 16 }
 0x332   :  { %v3120_v30 = vsel %vm1973_vm12, 1.0, %v5867_v38 }
 0x333   :  { %v1713_v44 = vadd.s32 %v1712_v61, %v1710_v57  ;;  %2614 = vst [vmem:[#allocation6 + $0x188] sm:$0xff] %v3120_v30  ;;  %v3621_v57 = vld [vmem:[#allocation2] sm:$0xff] }
 0x334   :  { %v1751_v1 = vpop.xlane.xlu1 %1750 }
 0x335   :  { %v1752_v52 = vcvt.f32.s32 %v1751_v1  ;;  %vm1972_vm13 = vcmp.eq.s32.totalorder %v4099_v62, %v1713_v44  ;;  %v1824_v1 = vshll.u32 %v1823_v21, 16  ;;  %v3625_v21 = vld [vmem:[#allocation2 + $0x20] sm:$0xff] }
 0x336   :  { %v3119_v60 = vsel %vm1972_vm13, 1.0, %v5867_v38  ;;  %3555 = vmatprep.mubr.msk.f32.mxu1 %vm1972_vm13, %v5871_v29 }
 0x337   :  { %v1755_v8 = vadd.s32 %v1754_v9, %v1752_v52  ;;  %2613 = vst [vmem:[#allocation6 + $0x180] sm:$0xff] %v3119_v60  ;;  %v2942_v13 = vadd.f32 %v3119_v60, %v2941_v10  ;;  %3556 = vmatmul.mubr.msk.f32.gmra.mxu1 %vm1973_vm12, %v5871_v29  ;;  %v1865_v60 = vcvt.f32.s32 %v5179_v28 }
 0x338   :  { %v1737_v56 = vpop.xlane.xlu0 %1736 }
 0x339   :  { %v2943_v5 = vadd.f32 %v3120_v30, %v2942_v13  ;;  %v1738_v15 = vcvt.f32.s32 %v1737_v56  ;;  %vm1975_vm14 = vcmp.eq.s32.totalorder %v4099_v62, %v1755_v8 }
 0x33a   :  { %v3122_v53 = vsel %vm1975_vm14, 1.0, %v5867_v38 }
 0x33b   :  { %v1741_v24 = vadd.s32 %v1740_v4, %v1738_v15  ;;  %2616 = vst [vmem:[#allocation6 + $0x198] sm:$0xff] %v3122_v53 }
 0x33c   :  { %v1779_v31 = vpop.xlane.xlu1 %1778 }
 0x33d   :  { %v1780_v33 = vcvt.f32.s32 %v1779_v31  ;;  %vm1974_vm15 = vcmp.eq.s32.totalorder %v4099_v62, %v1741_v24  ;;  %v3622_v24 = vld [vmem:[#allocation2 + $0x18] sm:$0xff]  ;;  %v1866_v31 = vshll.u32 %v1865_v60, 16 }
 0x33e   :  { %v3121_v2 = vsel %vm1974_vm15, 1.0, %v5867_v38  ;;  %3558 = vmatprep.mubr.msk.f32.mxu1 %vm1974_vm15, %v5871_v29 }
 0x33f   :  { %v1783_v11 = vadd.s32 %v1782_v16, %v1780_v33  ;;  %2615 = vst [vmem:[#allocation6 + $0x190] sm:$0xff] %v3121_v2  ;;  %v2944_v58 = vadd.f32 %v3121_v2, %v2943_v5  ;;  %3559 = vmatmul.mubr.msk.f32.gmra.mxu1 %vm1975_vm14, %v5871_v29  ;;  %v1851_v16 = vcvt.f32.s32 %v5190_v0  ;;  %v1893_v0 = vcvt.f32.s32 %v5201_v63 }
 0x340   :  { %v1765_v12 = vpop.xlane.xlu0 %1764 }
 0x341   :  { %v2945_v19 = vadd.f32 %v3122_v53, %v2944_v58  ;;  %v1766_v23 = vcvt.f32.s32 %v1765_v12  ;;  %vm1977_vm1 = vcmp.eq.s32.totalorder %v4099_v62, %v1783_v11  ;;  %v3623_v11 = vld [vmem:[#allocation2 + $0x10] sm:$0xff] }
 0x342   :  { %v3124_v43 = vsel %vm1977_vm1, 1.0, %v5867_v38 }
 0x343   :  { %v1769_v26 = vadd.s32 %v1768_v20, %v1766_v23  ;;  %2618 = vst [vmem:[#allocation6 + $0x1a8] sm:$0xff] %v3124_v43 }
 0x344   :  { %v1807_v51 = vpop.xlane.xlu1 %1806 }
 0x345   :  { %v1808_v54 = vcvt.f32.s32 %v1807_v51  ;;  %vm1976_vm2 = vcmp.eq.s32.totalorder %v4099_v62, %v1769_v26  ;;  %v1852_v26 = vshll.u32 %v1851_v16, 16 }
 0x346   :  { %v3123_v39 = vsel %vm1976_vm2, 1.0, %v5867_v38  ;;  %3561 = vmatprep.mubr.msk.f32.mxu1 %vm1976_vm2, %v5871_v29 }
 0x347   :  { %v1811_v34 = vadd.s32 %v1810_v47, %v1808_v54  ;;  %2617 = vst [vmem:[#allocation6 + $0x1a0] sm:$0xff] %v3123_v39  ;;  %v2946_v17 = vadd.f32 %v3123_v39, %v2945_v19  ;;  %3562 = vmatmul.mubr.msk.f32.gmra.mxu1 %vm1977_vm1, %v5871_v29 }
 0x348   :  { %v1793_v25 = vpop.xlane.xlu0 %1792 }
 0x349   :  { %v2947_v41 = vadd.f32 %v3124_v43, %v2946_v17  ;;  %v1794_v48 = vcvt.f32.s32 %v1793_v25  ;;  %vm1979_vm3 = vcmp.eq.s32.totalorder %v4099_v62, %v1811_v34  ;;  %v3624_v25 = vld [vmem:[#allocation2 + $0x28] sm:$0xff] }
 0x34a   :  { %v3126_v7 = vsel %vm1979_vm3, 1.0, %v5867_v38 }
 0x34b   :  { %v1797_v40 = vadd.s32 %v1796_v18, %v1794_v48  ;;  %v3485_v27 = vpop.f32.mrf.mxu0  ;;  %2620 = vst [vmem:[#allocation6 + $0x1b8] sm:$0xff] %v3126_v7  ;;  %v1894_v18 = vshll.u32 %v1893_v0, 16  ;;  %v1879_v48 = vcvt.f32.s32 %v5212_v36  ;;  %v1907_v36 = vcvt.f32.s32 %v5223_v22 }
 0x34c   :  { %2502 = vst.msk [vmem:[#allocation5 + $0x8] sm:$0xff] %vm122_vm0, %v3485_v27  ;;  %v2630_v49 = vsub.f32 %v3485_v27, %v3620_v55  ;;  %v1835_v61 = vpop.xlane.xlu1 %1834 }
 0x34d   :  { %v1836_v59 = vcvt.f32.s32 %v1835_v61  ;;  %v2182_v14 = vpop.f32.mrf.mxu0  ;;  %vm1978_vm4 = vcmp.eq.s32.totalorder %v4099_v62, %v1797_v40  ;;  %v1908_v60 = vshll.u32 %v1907_v36, 16 }
 0x34e   :  { %v2694_v10 = vmul.f32 %v2630_v49, %v2630_v49  ;;  %2501 = vst.msk [vmem:[#allocation5] sm:$0xff] %vm122_vm0, %v2182_v14  ;;  %v2629_v30 = vsub.f32 %v2182_v14, %v3621_v57  ;;  %v3125_v44 = vsel %vm1978_vm4, 1.0, %v5867_v38  ;;  %3564 = vmatprep.mubr.msk.f32.mxu1 %vm1978_vm4, %v5871_v29  ;;  %v1880_v57 = vshll.u32 %v1879_v48, 16 }
 0x34f   :  { %v1839_v35 = vadd.s32 %v1838_v37, %v1836_v59  ;;  %2619 = vst [vmem:[#allocation6 + $0x1b0] sm:$0xff] %v3125_v44  ;;  %v2948_v46 = vadd.f32 %v3125_v44, %v2947_v41  ;;  %3565 = vmatmul.mubr.msk.f32.gmra.mxu1 %vm1979_vm3, %v5871_v29 }
 0x350   :  { %v2693_v9 = vmul.f32 %v2629_v30, %v2629_v30  ;;  %v1821_v52 = vpop.xlane.xlu0 %1820  ;;  %v2758_v4 = vsel %vm122_vm0, %v2694_v10, 0.0 }
 0x351   :  { %v2949_v8 = vadd.f32 %v3126_v7, %v2948_v46  ;;  %v1822_v13 = vcvt.f32.s32 %v1821_v52  ;;  %vm1981_vm5 = vcmp.eq.s32.totalorder %v4099_v62, %v1839_v35 }
 0x352   :  { %v2757_v56 = vsel %vm122_vm0, %v2693_v9, 0.0  ;;  %v3128_v42 = vsel %vm1981_vm5, 1.0, %v5867_v38 }
 0x353   :  { %v2759_v5 = vadd.f32 %v2758_v4, %v2757_v56  ;;  %v1825_v15 = vadd.s32 %v1824_v1, %v1822_v13  ;;  %v3488_v53 = vpop.f32.mrf.mxu0  ;;  %2622 = vst [vmem:[#allocation6 + $0x1c8] sm:$0xff] %v3128_v42  ;;  %v1921_v56 = vcvt.f32.s32 %v5233_v45 }
 0x354   :  { %2504 = vst.msk [vmem:[#allocation5 + $0x18] sm:$0xff] %vm122_vm0, %v3488_v53  ;;  %v2632_v28 = vsub.f32 %v3488_v53, %v3622_v24  ;;  %v1863_v50 = vpop.xlane.xlu1 %1862  ;;  %v3627_v53 = vld [vmem:[#allocation2 + $0x30] sm:$0xff] }
 0x355   :  { %v1864_v33 = vcvt.f32.s32 %v1863_v50  ;;  %v2192_v2 = vpop.f32.mrf.mxu0  ;;  %vm1980_vm6 = vcmp.eq.s32.totalorder %v4099_v62, %v1825_v15 }
 0x356   :  { %2503 = vst.msk [vmem:[#allocation5 + $0x10] sm:$0xff] %vm122_vm0, %v2192_v2  ;;  %v2631_v58 = vsub.f32 %v2192_v2, %v3623_v11  ;;  %v3127_v20 = vsel %vm1980_vm6, 1.0, %v5867_v38  ;;  %3567 = vmatprep.mubr.msk.f32.mxu1 %vm1980_vm6, %v5871_v29  ;;  %v2696_v19 = vmul.f32 %v2632_v28, %v2632_v28  ;;  %v1922_v2 = vshll.u32 %v1921_v56, 16 }
 0x357   :  { %v1867_v12 = vadd.s32 %v1866_v31, %v1864_v33  ;;  %2621 = vst [vmem:[#allocation6 + $0x1c0] sm:$0xff] %v3127_v20  ;;  %v2950_v3 = vadd.f32 %v3127_v20, %v2949_v8  ;;  %3568 = vmatmul.mubr.msk.f32.gmra.mxu1 %vm1981_vm5, %v5871_v29  ;;  %v3626_v8 = vld [vmem:[#allocation2 + $0x38] sm:$0xff] }
 0x358   :  { %v2695_v23 = vmul.f32 %v2631_v58, %v2631_v58  ;;  %v1849_v43 = vpop.xlane.xlu0 %1848  ;;  %v2762_v63 = vsel %vm122_vm0, %v2696_v19, 0.0 }
 0x359   :  { %v2951_v32 = vadd.f32 %v3128_v42, %v2950_v3  ;;  %v1850_v51 = vcvt.f32.s32 %v1849_v43  ;;  %vm1983_vm7 = vcmp.eq.s32.totalorder %v4099_v62, %v1867_v12 }
 0x35a   :  { %v2760_v47 = vsel %vm122_vm0, %v2695_v23, 0.0  ;;  %v3130_v54 = vsel %vm1983_vm7, 1.0, %v5867_v38 }
 0x35b   :  { %v2761_v39 = vadd.f32 %v2760_v47, %v2759_v5  ;;  %v1853_v34 = vadd.s32 %v1852_v26, %v1850_v51  ;;  %v3491_v17 = vpop.f32.mrf.mxu0  ;;  %2624 = vst [vmem:[#allocation6 + $0x1d8] sm:$0xff] %v3130_v54  ;;  %v3628_v26 = vld [vmem:[#allocation2 + $0x48] sm:$0xff] }
 0x35c   :  { %2506 = vst.msk [vmem:[#allocation5 + $0x28] sm:$0xff] %vm122_vm0, %v3491_v17  ;;  %v2634_v6 = vsub.f32 %v3491_v17, %v3624_v25  ;;  %v1891_v41 = vpop.xlane.xlu1 %1890 }
 0x35d   :  { %v1892_v7 = vcvt.f32.s32 %v1891_v41  ;;  %v2202_v40 = vpop.f32.mrf.mxu0  ;;  %v2763_v27 = vadd.f32 %v2762_v63, %v2761_v39  ;;  %vm1982_vm8 = vcmp.eq.s32.totalorder %v4099_v62, %v1853_v34 }
 0x35e   :  { %2505 = vst.msk [vmem:[#allocation5 + $0x20] sm:$0xff] %vm122_vm0, %v2202_v40  ;;  %v2633_v55 = vsub.f32 %v2202_v40, %v3625_v21  ;;  %v3129_v49 = vsel %vm1982_vm8, 1.0, %v5867_v38  ;;  %3570 = vmatprep.mubr.msk.f32.mxu1 %vm1982_vm8, %v5871_v29  ;;  %v2698_v59 = vmul.f32 %v2634_v6, %v2634_v6  ;;  %v3630_v40 = vld [vmem:[#allocation2 + $0x58] sm:$0xff] }
 0x35f   :  { %v1895_v61 = vadd.s32 %v1894_v18, %v1892_v7  ;;  %2623 = vst [vmem:[#allocation6 + $0x1d0] sm:$0xff] %v3129_v49  ;;  %v2952_v37 = vadd.f32 %v3129_v49, %v2951_v32  ;;  %3571 = vmatmul.mubr.msk.f32.gmra.mxu1 %vm1983_vm7, %v5871_v29 }
 0x360   :  { %v2697_v14 = vmul.f32 %v2633_v55, %v2633_v55  ;;  %v1877_v10 = vpop.xlane.xlu0 %1876  ;;  %v2766_v22 = vsel %vm122_vm0, %v2698_v59, 0.0 }
 0x361   :  { %v2953_v30 = vadd.f32 %v3130_v54, %v2952_v37  ;;  %v1878_v44 = vcvt.f32.s32 %v1877_v10  ;;  %vm1985_vm9 = vcmp.eq.s32.totalorder %v4099_v62, %v1895_v61  ;;  %v3629_v54 = vld [vmem:[#allocation2 + $0x40] sm:$0xff] }
 0x362   :  { %v2764_v35 = vsel %vm122_vm0, %v2697_v14, 0.0  ;;  %v3132_v46 = vsel %vm1985_vm9, 1.0, %v5867_v38 }
 0x363   :  { %v2765_v1 = vadd.f32 %v2764_v35, %v2763_v27  ;;  %v1881_v9 = vadd.s32 %v1880_v57, %v1878_v44  ;;  %v3494_v52 = vpop.f32.mrf.mxu1  ;;  %2626 = vst [vmem:[#allocation6 + $0x1e8] sm:$0xff] %v3132_v46  ;;  %v3632_v35 = vld [vmem:[#allocation2 + $0x68] sm:$0xff] }
 0x364   :  { %2508 = vst.msk [vmem:[#allocation5 + $0x38] sm:$0xff] %vm122_vm0, %v3494_v52  ;;  %v2636_v13 = vsub.f32 %v3494_v52, %v3626_v8  ;;  %v1905_v4 = vpop.xlane.xlu0 %1904  ;;  %v3633_v52 = vld [vmem:[#allocation2 + $0x60] sm:$0xff] }
 0x365   :  { %v2767_v42 = vadd.f32 %v2766_v22, %v2765_v1  ;;  %v1906_v5 = vcvt.f32.s32 %v1905_v4  ;;  %v2212_v15 = vpop.f32.mrf.mxu1  ;;  %vm1984_vm10 = vcmp.eq.s32.totalorder %v4099_v62, %v1881_v9 }
 0x366   :  { %2507 = vst.msk [vmem:[#allocation5 + $0x30] sm:$0xff] %vm122_vm0, %v2212_v15  ;;  %v2635_v24 = vsub.f32 %v2212_v15, %v3627_v53  ;;  %v3131_v28 = vsel %vm1984_vm10, 1.0, %v5867_v38  ;;  %3573 = vmatprep.mubr.msk.f32.mxu1 %vm1984_vm10, %v5871_v29  ;;  %v2700_v45 = vmul.f32 %v2636_v13, %v2636_v13 }
 0x367   :  { %v1909_v50 = vadd.s32 %v1908_v60, %v1906_v5  ;;  %2625 = vst [vmem:[#allocation6 + $0x1e0] sm:$0xff] %v3131_v28  ;;  %v2954_v31 = vadd.f32 %v3131_v28, %v2953_v30  ;;  %3574 = vmatmul.mubr.msk.f32.gmra.mxu1 %vm1985_vm9, %v5871_v29  ;;  %v3634_v5 = vld [vmem:[#allocation2 + $0x78] sm:$0xff]  ;;  %v3635_v28 = vld [vmem:[#allocation2 + $0x70] sm:$0xff] }
 0x368   :  { %v2699_v16 = vmul.f32 %v2635_v24, %v2635_v24  ;;  %v1919_v33 = vpop.xlane.xlu1 %1918  ;;  %v2770_v43 = vsel %vm122_vm0, %v2700_v45, 0.0 }
 0x369   :  { %v2955_v11 = vadd.f32 %v3132_v46, %v2954_v31  ;;  %v1920_v58 = vcvt.f32.s32 %v1919_v33  ;;  %vm1986_vm11 = vcmp.eq.s32.totalorder %v4099_v62, %v1909_v50 }
 0x36a   :  { %v2768_v20 = vsel %vm122_vm0, %v2699_v16, 0.0  ;;  %v3133_v12 = vsel %vm1986_vm11, 1.0, %v5867_v38  ;;  %3576 = vmatprep.mubr.msk.f32.mxu1 %vm1986_vm11, %v5871_v29 }
 0x36b   :  { %v2769_v3 = vadd.f32 %v2768_v20, %v2767_v42  ;;  %v1923_v0 = vadd.s32 %v1922_v2, %v1920_v58  ;;  %2627 = vst [vmem:[#allocation6 + $0x1f0] sm:$0xff] %v3133_v12  ;;  %v2956_v19 = vadd.f32 %v3133_v12, %v2955_v11  ;;  %v3497_v23 = vpop.f32.mrf.mxu1  ;;  %v3636_v58 = vld [vmem:[#allocation2 + $0x88] sm:$0xff] }
 0x36c   :  { %2510 = vst.msk [vmem:[#allocation5 + $0x48] sm:$0xff] %vm122_vm0, %v3497_v23  ;;  %v2638_v32 = vsub.f32 %v3497_v23, %v3628_v26 }
 0x36d   :  { %v2222_v51 = vpop.f32.mrf.mxu1  ;;  %v2771_v47 = vadd.f32 %v2770_v43, %v2769_v3  ;;  %vm1987_vm12 = vcmp.eq.s32.totalorder %v4099_v62, %v1923_v0  ;;  %v3637_v0 = vld [vmem:[#allocation2 + $0x80] sm:$0xff] }
 0x36e   :  { %2509 = vst.msk [vmem:[#allocation5 + $0x40] sm:$0xff] %vm122_vm0, %v2222_v51  ;;  %v2637_v39 = vsub.f32 %v2222_v51, %v3629_v54  ;;  %v3134_v34 = vsel %vm1987_vm12, 1.0, %v5867_v38  ;;  %3577 = vmatmul.mubr.msk.f32.gmra.mxu1 %vm1987_vm12, %v5871_v29  ;;  %v2702_v18 = vmul.f32 %v2638_v32, %v2638_v32  ;;  %v3631_v29 = vld [vmem:[#allocation2 + $0x50] sm:$0xff]  ;;  %v3638_v54 = vld [vmem:[#allocation2 + $0x98] sm:$0xff] }
 0x36f   :  { %2628 = vst [vmem:[#allocation6 + $0x1f8] sm:$0xff] %v3134_v34  ;;  %v2957_v17 = vadd.f32 %v3134_v34, %v2956_v19 }
 0x370   :  { %v2701_v63 = vmul.f32 %v2637_v39, %v2637_v39  ;;  %v2774_v62 = vsel %vm122_vm0, %v2702_v18, 0.0  ;;  %v3639_v18 = vld [vmem:[#allocation2 + $0x90] sm:$0xff] }
 0x371   :  { %v2958_v25 = vrot.slane %v2957_v17, 4 }
 0x372   :  { %v2772_v6 = vsel %vm122_vm0, %v2701_v63, 0.0 }
 0x373   :  { %v2773_v41 = vadd.f32 %v2772_v6, %v2771_v47  ;;  %v2959_v48 = vadd.f32 %v2958_v25, %v2957_v17  ;;  %v3500_v7 = vpop.f32.mrf.mxu1 }
 0x374   :  { %2512 = vst.msk [vmem:[#allocation5 + $0x58] sm:$0xff] %vm122_vm0, %v3500_v7  ;;  %v2640_v27 = vsub.f32 %v3500_v7, %v3630_v40  ;;  %v3640_v40 = vld [vmem:[#allocation2 + $0xa8] sm:$0xff] }
 0x375   :  { %v2960_v21 = vrot.slane %v2959_v48, 2  ;;  %v2232_v38 = vpop.f32.mrf.mxu1  ;;  %v2775_v55 = vadd.f32 %v2774_v62, %v2773_v41 }
 0x376   :  { %2511 = vst.msk [vmem:[#allocation5 + $0x50] sm:$0xff] %vm122_vm0, %v2232_v38  ;;  %v2639_v49 = vsub.f32 %v2232_v38, %v3631_v29  ;;  %v2704_v37 = vmul.f32 %v2640_v27, %v2640_v27 }
 0x377   :  { %v2961_v61 = vadd.f32 %v2960_v21, %v2959_v48 }
 0x378   :  { %v2703_v36 = vmul.f32 %v2639_v49, %v2639_v49  ;;  %v2778_v44 = vsel %vm122_vm0, %v2704_v37, 0.0 }
 0x379   :  { %v2962_v59 = vrot.slane %v2961_v61, 1 }
 0x37a   :  { %v2776_v14 = vsel %vm122_vm0, %v2703_v36, 0.0 }
 0x37b   :  { %v2963_v10 = vadd.f32 %v2962_v59, %v2961_v61  ;;  %v2777_v57 = vadd.f32 %v2776_v14, %v2775_v55  ;;  %v3503_v30 = vpop.f32.mrf.mxu1  ;;  %v3641_v55 = vld [vmem:[#allocation2 + $0xa0] sm:$0xff] }
 0x37c   :  { %2514 = vst.msk [vmem:[#allocation5 + $0x68] sm:$0xff] %vm122_vm0, %v3503_v30  ;;  %v2642_v46 = vsub.f32 %v3503_v30, %v3632_v35  ;;  %v3642_v30 = vld [vmem:[#allocation2 + $0xb0] sm:$0xff] }
 0x37d   :  { %2964 = vst [vmem:[%s5600_s7] sm:$0xff] %v2963_v10  ;;  %v2242_v1 = vpop.f32.mrf.mxu1  ;;  %v2779_v9 = vadd.f32 %v2778_v44, %v2777_v57  ;;  %s3755_s7 = smov [#allocation5]  }
 0x37e   :  { %2513 = vst.msk [vmem:[#allocation5 + $0x60] sm:$0xff] %vm122_vm0, %v2242_v1  ;;  %v2641_v60 = vsub.f32 %v2242_v1, %v3633_v52  ;;  %v2706_v22 = vmul.f32 %v2642_v46, %v2642_v46  ;;  %s2970_s24 = sshll.u32 %s3755_s7, 4  ;;  %s2971_s24 = int_to_ptr.vmem [resolvable:$true] %s2970_s24 }
 0x37f   :  { %s3704_s29 = scalar_lea.vmem %s2971_s24, 8192  ;;  %p3709_p6 = scmp.lt.s32.totalorder %s2971_s24, %s2971_s24 }
 0x380   :  { %v2705_v8 = vmul.f32 %v2641_v60, %v2641_v60  ;;  %v2782_v42 = vsel %vm122_vm0, %v2706_v22, 0.0  ;;  %v3644_v60 = vld [vmem:[#allocation2 + $0xc0] sm:$0xff]  ;;  %p3705_p5 = scmp.ne.s32.totalorder %s2971_s24, %s3704_s29  ;;  %p3710_p7 = scmp.lt.s32.totalorder %s3704_s29, %s3704_s29 }
 0x382   :  { %v2780_v13 = vsel %vm122_vm0, %v2705_v8, 0.0  ;;  %p3711_p8 = por %p3710_p7, %p3709_p6 }
 0x383   :  { %v2781_v4 = vadd.f32 %v2780_v13, %v2779_v9  ;;  %v3506_v56 = vpop.f32.mrf.mxu1  ;;  %v3643_v9 = vld [vmem:[#allocation2 + $0xb8] sm:$0xff] }
 0x384   :  { %2516 = vst.msk [vmem:[#allocation5 + $0x78] sm:$0xff] %vm122_vm0, %v3506_v56  ;;  %v2644_v15 = vsub.f32 %v3506_v56, %v3634_v5  ;;  %v3645_v5 = vld [vmem:[#allocation2 + $0xc8] sm:$0xff]  ;;  %p3712_p9 = pnand %p3711_p8, %p3705_p5 }
 0x385   :  { %v2252_v53 = vpop.f32.mrf.mxu1  ;;  %v2783_v24 = vadd.f32 %v2782_v42, %v2781_v4 }
 0x386   :  { %2515 = vst.msk [vmem:[#allocation5 + $0x70] sm:$0xff] %vm122_vm0, %v2252_v53  ;;  %v2643_v50 = vsub.f32 %v2252_v53, %v3635_v28  ;;  %v2708_v31 = vmul.f32 %v2644_v15, %v2644_v15 }
 0x388   :  { %v2707_v45 = vmul.f32 %v2643_v50, %v2643_v50  ;;  %v2786_v11 = vsel %vm122_vm0, %v2708_v31, 0.0 }
 0x38a   :  { %v2784_v16 = vsel %vm122_vm0, %v2707_v45, 0.0 }
 0x38b   :  { %v2785_v33 = vadd.f32 %v2784_v16, %v2783_v24  ;;  %v3509_v2 = vpop.f32.mrf.mxu1  ;;  %v3646_v24 = vld [vmem:[#allocation2 + $0xd0] sm:$0xff] }
 0x38c   :  { %2518 = vst.msk [vmem:[#allocation5 + $0x88] sm:$0xff] %vm122_vm0, %v3509_v2  ;;  %v2646_v20 = vsub.f32 %v3509_v2, %v3636_v58 }
 0x38d   :  { %v2262_v12 = vpop.f32.mrf.mxu1  ;;  %v2787_v3 = vadd.f32 %v2786_v11, %v2785_v33 }
 0x38e   :  { %2517 = vst.msk [vmem:[#allocation5 + $0x80] sm:$0xff] %vm122_vm0, %v2262_v12  ;;  %v2645_v19 = vsub.f32 %v2262_v12, %v3637_v0  ;;  %v2710_v23 = vmul.f32 %v2646_v20, %v2646_v20  ;;  %v3647_v20 = vld [vmem:[#allocation2 + $0xd8] sm:$0xff] }
 0x390   :  { %v2709_v43 = vmul.f32 %v2645_v19, %v2645_v19  ;;  %v2790_v47 = vsel %vm122_vm0, %v2710_v23, 0.0  ;;  %v3648_v23 = vld [vmem:[#allocation2 + $0xe0] sm:$0xff] }
 0x392   :  { %v2788_v26 = vsel %vm122_vm0, %v2709_v43, 0.0 }
 0x393   :  { %v2789_v32 = vadd.f32 %v2788_v26, %v2787_v3  ;;  %v3512_v51 = vpop.f32.mrf.mxu1 }
 0x394   :  { %2520 = vst.msk [vmem:[#allocation5 + $0x98] sm:$0xff] %vm122_vm0, %v3512_v51  ;;  %v2648_v39 = vsub.f32 %v3512_v51, %v3638_v54 }
 0x395   :  { %v2272_v34 = vpop.f32.mrf.mxu1  ;;  %v2791_v17 = vadd.f32 %v2790_v47, %v2789_v32 }
 0x396   :  { %2519 = vst.msk [vmem:[#allocation5 + $0x90] sm:$0xff] %vm122_vm0, %v2272_v34  ;;  %v2647_v63 = vsub.f32 %v2272_v34, %v3639_v18  ;;  %v2712_v25 = vmul.f32 %v2648_v39, %v2648_v39  ;;  %v3649_v18 = vld [vmem:[#allocation2 + $0xe8] sm:$0xff] }
 0x398   :  { %v2711_v6 = vmul.f32 %v2647_v63, %v2647_v63  ;;  %v2794_v62 = vsel %vm122_vm0, %v2712_v25, 0.0 }
 0x39a   :  { %v2792_v41 = vsel %vm122_vm0, %v2711_v6, 0.0 }
 0x39b   :  { %v2793_v48 = vadd.f32 %v2792_v41, %v2791_v17  ;;  %v3515_v7 = vpop.f32.mrf.mxu1 }
 0x39c   :  { %2522 = vst.msk [vmem:[#allocation5 + $0xa8] sm:$0xff] %vm122_vm0, %v3515_v7  ;;  %v2650_v27 = vsub.f32 %v3515_v7, %v3640_v40 }
 0x39d   :  { %v2282_v21 = vpop.f32.mrf.mxu1  ;;  %v2795_v38 = vadd.f32 %v2794_v62, %v2793_v48  ;;  %v3650_v48 = vld [vmem:[#allocation2 + $0xf0] sm:$0xff] }
 0x39e   :  { %2521 = vst.msk [vmem:[#allocation5 + $0xa0] sm:$0xff] %vm122_vm0, %v2282_v21  ;;  %v2649_v29 = vsub.f32 %v2282_v21, %v3641_v55  ;;  %v2714_v49 = vmul.f32 %v2650_v27, %v2650_v27 }
 0x3a0   :  { %v2713_v61 = vmul.f32 %v2649_v29, %v2649_v29  ;;  %v2798_v14 = vsel %vm122_vm0, %v2714_v49, 0.0  ;;  %v3651_v49 = vld [vmem:[#allocation2 + $0xf8] sm:$0xff] }
 0x3a2   :  { %v2796_v37 = vsel %vm122_vm0, %v2713_v61, 0.0 }
 0x3a3   :  { %v2797_v36 = vadd.f32 %v2796_v37, %v2795_v38  ;;  %v3518_v59 = vpop.f32.mrf.mxu1 }
 0x3a4   :  { %2524 = vst.msk [vmem:[#allocation5 + $0xb8] sm:$0xff] %vm122_vm0, %v3518_v59  ;;  %v2652_v52 = vsub.f32 %v3518_v59, %v3643_v9  ;;  %v3652_v59 = vld [vmem:[#allocation2 + $0x100] sm:$0xff] }
 0x3a5   :  { %v2292_v10 = vpop.f32.mrf.mxu1  ;;  %v2799_v57 = vadd.f32 %v2798_v14, %v2797_v36 }
 0x3a6   :  { %2523 = vst.msk [vmem:[#allocation5 + $0xb0] sm:$0xff] %vm122_vm0, %v2292_v10  ;;  %v2651_v44 = vsub.f32 %v2292_v10, %v3642_v30  ;;  %v2716_v13 = vmul.f32 %v2652_v52, %v2652_v52 }
 0x3a8   :  { %v2715_v46 = vmul.f32 %v2651_v44, %v2651_v44  ;;  %v2802_v50 = vsel %vm122_vm0, %v2716_v13, 0.0 }
 0x3aa   :  { %v2800_v8 = vsel %vm122_vm0, %v2715_v46, 0.0 }
 0x3ab   :  { %v3521_v35 = vpop.f32.mrf.mxu1  ;;  %v2801_v42 = vadd.f32 %v2800_v8, %v2799_v57 }
 0x3ac   :  { %2526 = vst.msk [vmem:[#allocation5 + $0xc8] sm:$0xff] %vm122_vm0, %v3521_v35  ;;  %v2654_v15 = vsub.f32 %v3521_v35, %v3645_v5 }
 0x3ad   :  { %v2302_v1 = vpop.f32.mrf.mxu1  ;;  %v2803_v16 = vadd.f32 %v2802_v50, %v2801_v42 }
 0x3ae   :  { %2525 = vst.msk [vmem:[#allocation5 + $0xc0] sm:$0xff] %vm122_vm0, %v2302_v1  ;;  %v2653_v22 = vsub.f32 %v2302_v1, %v3644_v60  ;;  %v2718_v33 = vmul.f32 %v2654_v15, %v2654_v15  ;;  %v3653_v1 = vld [vmem:[#allocation2 + $0x108] sm:$0xff] }
 0x3b0   :  { %v2717_v4 = vmul.f32 %v2653_v22, %v2653_v22  ;;  %v2806_v0 = vsel %vm122_vm0, %v2718_v33, 0.0  ;;  %v3654_v22 = vld [vmem:[#allocation2 + $0x110] sm:$0xff] }
 0x3b2   :  { %v2804_v31 = vsel %vm122_vm0, %v2717_v4, 0.0 }
 0x3b3   :  { %v3524_v56 = vpop.f32.mrf.mxu1  ;;  %v2805_v58 = vadd.f32 %v2804_v31, %v2803_v16  ;;  %v3656_v31 = vld [vmem:[#allocation2 + $0x120] sm:$0xff] }
 0x3b4   :  { %2528 = vst.msk [vmem:[#allocation5 + $0xd8] sm:$0xff] %vm122_vm0, %v3524_v56  ;;  %v2656_v12 = vsub.f32 %v3524_v56, %v3647_v20 }
 0x3b5   :  { %v2312_v53 = vpop.f32.mrf.mxu1  ;;  %v2807_v32 = vadd.f32 %v2806_v0, %v2805_v58  ;;  %v3658_v0 = vld [vmem:[#allocation2 + $0x130] sm:$0xff] }
 0x3b6   :  { %2527 = vst.msk [vmem:[#allocation5 + $0xd0] sm:$0xff] %vm122_vm0, %v2312_v53  ;;  %v2655_v28 = vsub.f32 %v2312_v53, %v3646_v24  ;;  %v2720_v51 = vmul.f32 %v2656_v12, %v2656_v12  ;;  %v3655_v53 = vld [vmem:[#allocation2 + $0x118] sm:$0xff]  ;;  %v3657_v12 = vld [vmem:[#allocation2 + $0x128] sm:$0xff] }
 0x3b7   :  { %v3527_v45 = vpop.f32.mrf.mxu1 }
 0x3b8   :  { %2530 = vst.msk [vmem:[#allocation5 + $0xe8] sm:$0xff] %vm122_vm0, %v3527_v45  ;;  %v2719_v2 = vmul.f32 %v2655_v28, %v2655_v28  ;;  %v2810_v17 = vsel %vm122_vm0, %v2720_v51, 0.0  ;;  %v2658_v63 = vsub.f32 %v3527_v45, %v3649_v18 }
 0x3b9   :  { %v2322_v11 = vpop.f32.mrf.mxu1 }
 0x3ba   :  { %2529 = vst.msk [vmem:[#allocation5 + $0xe0] sm:$0xff] %vm122_vm0, %v2322_v11  ;;  %v2808_v19 = vsel %vm122_vm0, %v2719_v2, 0.0  ;;  %v2657_v43 = vsub.f32 %v2322_v11, %v3648_v23  ;;  %v2722_v40 = vmul.f32 %v2658_v63, %v2658_v63 }
 0x3bb   :  { %v3530_v3 = vpop.f32.mrf.mxu1  ;;  %v2809_v54 = vadd.f32 %v2808_v19, %v2807_v32 }
 0x3bc   :  { %2532 = vst.msk [vmem:[#allocation5 + $0xf8] sm:$0xff] %vm122_vm0, %v3530_v3  ;;  %v2721_v39 = vmul.f32 %v2657_v43, %v2657_v43  ;;  %v2814_v29 = vsel %vm122_vm0, %v2722_v40, 0.0  ;;  %v2660_v61 = vsub.f32 %v3530_v3, %v3651_v49 }
 0x3bd   :  { %v2332_v26 = vpop.f32.mrf.mxu1  ;;  %v2811_v6 = vadd.f32 %v2810_v17, %v2809_v54  ;;  %v3659_v54 = vld [vmem:[#allocation2 + $0x138] sm:$0xff] }
 0x3be   :  { %2531 = vst.msk [vmem:[#allocation5 + $0xf0] sm:$0xff] %vm122_vm0, %v2332_v26  ;;  %v2812_v41 = vsel %vm122_vm0, %v2721_v39, 0.0  ;;  %v2659_v7 = vsub.f32 %v2332_v26, %v3650_v48  ;;  %v2724_v10 = vmul.f32 %v2660_v61, %v2660_v61 }
 0x3bf   :  { %v3533_v47 = vpop.f32.mrf.mxu1  ;;  %v2813_v21 = vadd.f32 %v2812_v41, %v2811_v6 }
 0x3c0   :  { %2534 = vst.msk [vmem:[#allocation5 + $0x108] sm:$0xff] %vm122_vm0, %v3533_v47  ;;  %v2723_v38 = vmul.f32 %v2659_v7, %v2659_v7  ;;  %v2818_v46 = vsel %vm122_vm0, %v2724_v10, 0.0  ;;  %v2662_v9 = vsub.f32 %v3533_v47, %v3653_v1 }
 0x3c1   :  { %v2342_v34 = vpop.f32.mrf.mxu1  ;;  %v2815_v37 = vadd.f32 %v2814_v29, %v2813_v21 }
 0x3c2   :  { %2533 = vst.msk [vmem:[#allocation5 + $0x100] sm:$0xff] %vm122_vm0, %v2342_v34  ;;  %v2816_v36 = vsel %vm122_vm0, %v2723_v38, 0.0  ;;  %v2661_v14 = vsub.f32 %v2342_v34, %v3652_v59  ;;  %v2726_v13 = vmul.f32 %v2662_v9, %v2662_v9  ;;  %v3660_v34 = vld [vmem:[#allocation2 + $0x140] sm:$0xff] }
 0x3c3   :  { %v3536_v25 = vpop.f32.mrf.mxu1  ;;  %v2817_v30 = vadd.f32 %v2816_v36, %v2815_v37 }
 0x3c4   :  { %2536 = vst.msk [vmem:[#allocation5 + $0x118] sm:$0xff] %vm122_vm0, %v3536_v25  ;;  %v2725_v44 = vmul.f32 %v2661_v14, %v2661_v14  ;;  %v2822_v15 = vsel %vm122_vm0, %v2726_v13, 0.0  ;;  %v2664_v24 = vsub.f32 %v3536_v25, %v3655_v53  ;;  %v3663_v14 = vld [vmem:[#allocation2 + $0x158] sm:$0xff] }
 0x3c5   :  { %v2352_v62 = vpop.f32.mrf.mxu1  ;;  %v2819_v52 = vadd.f32 %v2818_v46, %v2817_v30 }
 0x3c6   :  { %2535 = vst.msk [vmem:[#allocation5 + $0x110] sm:$0xff] %vm122_vm0, %v2352_v62  ;;  %v2820_v60 = vsel %vm122_vm0, %v2725_v44, 0.0  ;;  %v2663_v8 = vsub.f32 %v2352_v62, %v3654_v22  ;;  %v2728_v16 = vmul.f32 %v2664_v24, %v2664_v24  ;;  %v3661_v62 = vld [vmem:[#allocation2 + $0x148] sm:$0xff] }
 0x3c7   :  { %v3539_v27 = vpop.f32.mrf.mxu1  ;;  %v2821_v56 = vadd.f32 %v2820_v60, %v2819_v52 }
 0x3c8   :  { %2538 = vst.msk [vmem:[#allocation5 + $0x128] sm:$0xff] %vm122_vm0, %v3539_v27  ;;  %v2727_v42 = vmul.f32 %v2663_v8, %v2663_v8  ;;  %v2826_v20 = vsel %vm122_vm0, %v2728_v16, 0.0  ;;  %v2666_v3 = vsub.f32 %v3539_v27, %v3657_v12  ;;  %v3662_v27 = vld [vmem:[#allocation2 + $0x150] sm:$0xff]  ;;  %v3665_v8 = vld [vmem:[#allocation2 + $0x168] sm:$0xff]  ;;  %v3668_v16 = vld [vmem:[#allocation2 + $0x180] sm:$0xff] }
 0x3c9   :  { %v2362_v55 = vpop.f32.mrf.mxu1  ;;  %v2823_v28 = vadd.f32 %v2822_v15, %v2821_v56 }
 0x3ca   :  { %2537 = vst.msk [vmem:[#allocation5 + $0x120] sm:$0xff] %vm122_vm0, %v2362_v55  ;;  %v2824_v50 = vsel %vm122_vm0, %v2727_v42, 0.0  ;;  %v2665_v45 = vsub.f32 %v2362_v55, %v3656_v31  ;;  %v2730_v26 = vmul.f32 %v2666_v3, %v2666_v3  ;;  %v3667_v31 = vld [vmem:[#allocation2 + $0x178] sm:$0xff] }
 0x3cb   :  { %v2825_v2 = vadd.f32 %v2824_v50, %v2823_v28 }
 0x3cc   :  { %v2729_v11 = vmul.f32 %v2665_v45, %v2665_v45  ;;  %v2830_v63 = vsel %vm122_vm0, %v2730_v26, 0.0 }
 0x3cd   :  { %v2827_v23 = vadd.f32 %v2826_v20, %v2825_v2 }
 0x3ce   :  { %v2828_v43 = vsel %vm122_vm0, %v2729_v11, 0.0 }
 0x3cf   :  { %v3542_v57 = vpop.f32.mrf.mxu1  ;;  %v2829_v47 = vadd.f32 %v2828_v43, %v2827_v23  ;;  %v3670_v43 = vld [vmem:[#allocation2 + $0x190] sm:$0xff] }
 0x3d0   :  { %2540 = vst.msk [vmem:[#allocation5 + $0x138] sm:$0xff] %vm122_vm0, %v3542_v57  ;;  %v2668_v39 = vsub.f32 %v3542_v57, %v3659_v54  ;;  %v3664_v57 = vld [vmem:[#allocation2 + $0x160] sm:$0xff] }
 0x3d1   :  { %v2372_v35 = vpop.f32.mrf.mxu1  ;;  %v2831_v6 = vadd.f32 %v2830_v63, %v2829_v47  ;;  %v3671_v63 = vld [vmem:[#allocation2 + $0x198] sm:$0xff] }
 0x3d2   :  { %2539 = vst.msk [vmem:[#allocation5 + $0x130] sm:$0xff] %vm122_vm0, %v2372_v35  ;;  %v2667_v19 = vsub.f32 %v2372_v35, %v3658_v0  ;;  %v2732_v41 = vmul.f32 %v2668_v39, %v2668_v39 }
 0x3d4   :  { %v2731_v32 = vmul.f32 %v2667_v19, %v2667_v19  ;;  %v2834_v55 = vsel %vm122_vm0, %v2732_v41, 0.0  ;;  %v3669_v19 = vld [vmem:[#allocation2 + $0x188] sm:$0xff] }
 0x3d6   :  { %v2832_v25 = vsel %vm122_vm0, %v2731_v32, 0.0 }
 0x3d7   :  { %v3545_v4 = vpop.f32.mrf.mxu1  ;;  %v2833_v7 = vadd.f32 %v2832_v25, %v2831_v6  ;;  %v3672_v6 = vld [vmem:[#allocation2 + $0x1a0] sm:$0xff] }
 0x3d8   :  { %2542 = vst.msk [vmem:[#allocation5 + $0x148] sm:$0xff] %vm122_vm0, %v3545_v4  ;;  %v2670_v40 = vsub.f32 %v3545_v4, %v3661_v62  ;;  %v3666_v4 = vld [vmem:[#allocation2 + $0x170] sm:$0xff] }
 0x3d9   :  { %v2382_v5 = vpop.f32.mrf.mxu1  ;;  %v2835_v61 = vadd.f32 %v2834_v55, %v2833_v7 }
 0x3da   :  { %2541 = vst.msk [vmem:[#allocation5 + $0x140] sm:$0xff] %vm122_vm0, %v2382_v5  ;;  %v2669_v17 = vsub.f32 %v2382_v5, %v3660_v34  ;;  %v2734_v37 = vmul.f32 %v2670_v40, %v2670_v40 }
 0x3dc   :  { %v2733_v48 = vmul.f32 %v2669_v17, %v2669_v17  ;;  %v2838_v44 = vsel %vm122_vm0, %v2734_v37, 0.0 }
 0x3de   :  { %v2836_v29 = vsel %vm122_vm0, %v2733_v48, 0.0 }
 0x3df   :  { %v3548_v33 = vpop.f32.mrf.mxu1  ;;  %v2837_v59 = vadd.f32 %v2836_v29, %v2835_v61  ;;  %v3673_v29 = vld [vmem:[#allocation2 + $0x1a8] sm:$0xff]  ;;  %v3674_v61 = vld [vmem:[#allocation2 + $0x1b0] sm:$0xff] }
 0x3e0   :  { %2544 = vst.msk [vmem:[#allocation5 + $0x158] sm:$0xff] %vm122_vm0, %v3548_v33  ;;  %v2672_v10 = vsub.f32 %v3548_v33, %v3663_v14 }
 0x3e1   :  { %v2392_v58 = vpop.f32.mrf.mxu1  ;;  %v2839_v1 = vadd.f32 %v2838_v44, %v2837_v59 }
 0x3e2   :  { %2543 = vst.msk [vmem:[#allocation5 + $0x150] sm:$0xff] %vm122_vm0, %v2392_v58  ;;  %v2671_v21 = vsub.f32 %v2392_v58, %v3662_v27  ;;  %v2736_v9 = vmul.f32 %v2672_v10, %v2672_v10 }
 0x3e4   :  { %v2735_v36 = vmul.f32 %v2671_v21, %v2671_v21  ;;  %v2842_v42 = vsel %vm122_vm0, %v2736_v9, 0.0  ;;  %v3676_v9 = vld [vmem:[#allocation2 + $0x1c0] sm:$0xff] }
 0x3e6   :  { %v2840_v35 = vsel %vm122_vm0, %v2735_v36, 0.0 }
 0x3e7   :  { %v3551_v51 = vpop.f32.mrf.mxu1  ;;  %v2841_v22 = vadd.f32 %v2840_v35, %v2839_v1  ;;  %v3675_v35 = vld [vmem:[#allocation2 + $0x1b8] sm:$0xff] }
 0x3e8   :  { %2546 = vst.msk [vmem:[#allocation5 + $0x168] sm:$0xff] %vm122_vm0, %v3551_v51  ;;  %v2674_v13 = vsub.f32 %v3551_v51, %v3665_v8 }
 0x3e9   :  { %v2402_v18 = vpop.f32.mrf.mxu1  ;;  %v2843_v15 = vadd.f32 %v2842_v42, %v2841_v22  ;;  %v3677_v42 = vld [vmem:[#allocation2 + $0x1c8] sm:$0xff] }
 0x3ea   :  { %2545 = vst.msk [vmem:[#allocation5 + $0x160] sm:$0xff] %vm122_vm0, %v2402_v18  ;;  %v2673_v30 = vsub.f32 %v2402_v18, %v3664_v57  ;;  %v2738_v53 = vmul.f32 %v2674_v13, %v2674_v13 }
 0x3ec   :  { %v2737_v52 = vmul.f32 %v2673_v30, %v2673_v30  ;;  %v2846_v11 = vsel %vm122_vm0, %v2738_v53, 0.0 }
 0x3ee   :  { %v2844_v5 = vsel %vm122_vm0, %v2737_v52, 0.0 }
 0x3ef   :  { %v3554_v38 = vpop.f32.mrf.mxu1  ;;  %v2845_v50 = vadd.f32 %v2844_v5, %v2843_v15 }
 0x3f0   :  { %2548 = vst.msk [vmem:[#allocation5 + $0x178] sm:$0xff] %vm122_vm0, %v3554_v38  ;;  %v2676_v45 = vsub.f32 %v3554_v38, %v3667_v31  ;;  %v3678_v31 = vld [vmem:[#allocation2 + $0x1d0] sm:$0xff] }
 0x3f1   :  { %v2412_v49 = vpop.f32.mrf.mxu1  ;;  %v2847_v20 = vadd.f32 %v2846_v11, %v2845_v50  ;;  %v3679_v11 = vld [vmem:[#allocation2 + $0x1d8] sm:$0xff] }
 0x3f2   :  { %2547 = vst.msk [vmem:[#allocation5 + $0x170] sm:$0xff] %vm122_vm0, %v2412_v49  ;;  %v2675_v56 = vsub.f32 %v2412_v49, %v3666_v4  ;;  %v2740_v12 = vmul.f32 %v2676_v45, %v2676_v45 }
 0x3f4   :  { %v2739_v24 = vmul.f32 %v2675_v56, %v2675_v56  ;;  %v2850_v51 = vsel %vm122_vm0, %v2740_v12, 0.0 }
 0x3f6   :  { %v2848_v58 = vsel %vm122_vm0, %v2739_v24, 0.0 }
 0x3f7   :  { %v3557_v46 = vpop.f32.mrf.mxu1  ;;  %v2849_v0 = vadd.f32 %v2848_v58, %v2847_v20 }
 0x3f8   :  { %2550 = vst.msk [vmem:[#allocation5 + $0x188] sm:$0xff] %vm122_vm0, %v3557_v46  ;;  %v2678_v23 = vsub.f32 %v3557_v46, %v3669_v19 }
 0x3f9   :  { %v2422_v60 = vpop.f32.mrf.mxu1  ;;  %v2851_v39 = vadd.f32 %v2850_v51, %v2849_v0  ;;  %v3681_v51 = vld [vmem:[#allocation2 + $0x1e8] sm:$0xff] }
 0x3fa   :  { %2549 = vst.msk [vmem:[#allocation5 + $0x180] sm:$0xff] %vm122_vm0, %v2422_v60  ;;  %v2677_v33 = vsub.f32 %v2422_v60, %v3668_v16  ;;  %v2742_v34 = vmul.f32 %v2678_v23, %v2678_v23 }
 0x3fc   :  { %v2741_v3 = vmul.f32 %v2677_v33, %v2677_v33  ;;  %v2854_v48 = vsel %vm122_vm0, %v2742_v34, 0.0 }
 0x3fe   :  { %v2852_v47 = vsel %vm122_vm0, %v2741_v3, 0.0 }
 0x3ff   :  { %v3560_v28 = vpop.f32.mrf.mxu1  ;;  %v2853_v18 = vadd.f32 %v2852_v47, %v2851_v39 }
 0x400   :  { %2552 = vst.msk [vmem:[#allocation5 + $0x198] sm:$0xff] %vm122_vm0, %v3560_v28  ;;  %v2680_v25 = vsub.f32 %v3560_v28, %v3671_v63 }
 0x401   :  { %v2432_v2 = vpop.f32.mrf.mxu1  ;;  %v2855_v40 = vadd.f32 %v2854_v48, %v2853_v18 }
 0x402   :  { %2551 = vst.msk [vmem:[#allocation5 + $0x190] sm:$0xff] %vm122_vm0, %v2432_v2  ;;  %v2679_v26 = vsub.f32 %v2432_v2, %v3670_v43  ;;  %v2744_v27 = vmul.f32 %v2680_v25, %v2680_v25  ;;  %v3682_v25 = vld [vmem:[#allocation2 + $0x1f8] sm:$0xff] }
 0x404   :  { %v2743_v17 = vmul.f32 %v2679_v26, %v2679_v26  ;;  %v2858_v36 = vsel %vm122_vm0, %v2744_v27, 0.0  ;;  %v3680_v26 = vld [vmem:[#allocation2 + $0x1e0] sm:$0xff] }
 0x406   :  { %v2856_v7 = vsel %vm122_vm0, %v2743_v17, 0.0 }
 0x407   :  { %v3563_v32 = vpop.f32.mrf.mxu1  ;;  %v2857_v55 = vadd.f32 %v2856_v7, %v2855_v40  ;;  %v3683_v7 = vld [vmem:[#allocation2 + $0x1f0] sm:$0xff] }
 0x408   :  { %2554 = vst.msk [vmem:[#allocation5 + $0x1a8] sm:$0xff] %vm122_vm0, %v3563_v32  ;;  %v2682_v49 = vsub.f32 %v3563_v32, %v3673_v29 }
 0x409   :  { %v2442_v54 = vpop.f32.mrf.mxu1  ;;  %v2859_v14 = vadd.f32 %v2858_v36, %v2857_v55 }
 0x40a   :  { %2553 = vst.msk [vmem:[#allocation5 + $0x1a0] sm:$0xff] %vm122_vm0, %v2442_v54  ;;  %v2681_v41 = vsub.f32 %v2442_v54, %v3672_v6  ;;  %v2746_v10 = vmul.f32 %v2682_v49, %v2682_v49 }
 0x40c   :  { %v2745_v21 = vmul.f32 %v2681_v41, %v2681_v41  ;;  %v2862_v60 = vsel %vm122_vm0, %v2746_v10, 0.0 }
 0x40e   :  { %v2860_v59 = vsel %vm122_vm0, %v2745_v21, 0.0 }
 0x40f   :  { %v3566_v62 = vpop.f32.mrf.mxu1  ;;  %v2861_v44 = vadd.f32 %v2860_v59, %v2859_v14 }
 0x410   :  { %2556 = vst.msk [vmem:[#allocation5 + $0x1b8] sm:$0xff] %vm122_vm0, %v3566_v62  ;;  %v2684_v46 = vsub.f32 %v3566_v62, %v3675_v35 }
 0x411   :  { %v2452_v38 = vpop.f32.mrf.mxu1  ;;  %v2863_v8 = vadd.f32 %v2862_v60, %v2861_v44 }
 0x412   :  { %2555 = vst.msk [vmem:[#allocation5 + $0x1b0] sm:$0xff] %vm122_vm0, %v2452_v38  ;;  %v2683_v37 = vsub.f32 %v2452_v38, %v3674_v61  ;;  %v2748_v13 = vmul.f32 %v2684_v46, %v2684_v46 }
 0x414   :  { %v2747_v57 = vmul.f32 %v2683_v37, %v2683_v37  ;;  %v2866_v53 = vsel %vm122_vm0, %v2748_v13, 0.0 }
 0x416   :  { %v2864_v22 = vsel %vm122_vm0, %v2747_v57, 0.0 }
 0x417   :  { %v3569_v30 = vpop.f32.mrf.mxu1  ;;  %v2865_v56 = vadd.f32 %v2864_v22, %v2863_v8 }
 0x418   :  { %2558 = vst.msk [vmem:[#allocation5 + $0x1c8] sm:$0xff] %vm122_vm0, %v3569_v30  ;;  %v2686_v5 = vsub.f32 %v3569_v30, %v3677_v42 }
 0x419   :  { %v2462_v1 = vpop.f32.mrf.mxu1  ;;  %v2867_v50 = vadd.f32 %v2866_v53, %v2865_v56 }
 0x41a   :  { %2557 = vst.msk [vmem:[#allocation5 + $0x1c0] sm:$0xff] %vm122_vm0, %v2462_v1  ;;  %v2685_v52 = vsub.f32 %v2462_v1, %v3676_v9  ;;  %v2750_v16 = vmul.f32 %v2686_v5, %v2686_v5 }
 0x41c   :  { %v2749_v4 = vmul.f32 %v2685_v52, %v2685_v52  ;;  %v2870_v20 = vsel %vm122_vm0, %v2750_v16, 0.0 }
 0x41e   :  { %v2868_v24 = vsel %vm122_vm0, %v2749_v4, 0.0 }
 0x41f   :  { %v3572_v15 = vpop.f32.mrf.mxu1  ;;  %v2869_v33 = vadd.f32 %v2868_v24, %v2867_v50 }
 0x420   :  { %2560 = vst.msk [vmem:[#allocation5 + $0x1d8] sm:$0xff] %vm122_vm0, %v3572_v15  ;;  %v2688_v58 = vsub.f32 %v3572_v15, %v3679_v11 }
 0x421   :  { %v2472_v28 = vpop.f32.mrf.mxu1  ;;  %v2871_v0 = vadd.f32 %v2870_v20, %v2869_v33 }
 0x422   :  { %2559 = vst.msk [vmem:[#allocation5 + $0x1d0] sm:$0xff] %vm122_vm0, %v2472_v28  ;;  %v2687_v45 = vsub.f32 %v2472_v28, %v3678_v31  ;;  %v2752_v19 = vmul.f32 %v2688_v58, %v2688_v58 }
 0x424   :  { %v2751_v2 = vmul.f32 %v2687_v45, %v2687_v45  ;;  %v2874_v39 = vsel %vm122_vm0, %v2752_v19, 0.0 }
 0x426   :  { %v2872_v12 = vsel %vm122_vm0, %v2751_v2, 0.0 }
 0x427   :  { %v3575_v3 = vpop.f32.mrf.mxu1  ;;  %v2873_v43 = vadd.f32 %v2872_v12, %v2871_v0 }
 0x428   :  { %2562 = vst.msk [vmem:[#allocation5 + $0x1e8] sm:$0xff] %vm122_vm0, %v3575_v3  ;;  %v2690_v47 = vsub.f32 %v3575_v3, %v3681_v51 }
 0x429   :  { %v2482_v23 = vpop.f32.mrf.mxu1  ;;  %v2875_v34 = vadd.f32 %v2874_v39, %v2873_v43 }
 0x42a   :  { %2561 = vst.msk [vmem:[#allocation5 + $0x1e0] sm:$0xff] %vm122_vm0, %v2482_v23  ;;  %v2689_v32 = vsub.f32 %v2482_v23, %v3680_v26  ;;  %v2754_v63 = vmul.f32 %v2690_v47, %v2690_v47 }
 0x42c   :  { %v2753_v54 = vmul.f32 %v2689_v32, %v2689_v32  ;;  %v2878_v40 = vsel %vm122_vm0, %v2754_v63, 0.0 }
 0x42e   :  { %v2876_v17 = vsel %vm122_vm0, %v2753_v54, 0.0  ;;  %v3578_v18 = vpop.f32.mrf.mxu1 }
 0x42f   :  { %2564 = vst.msk [vmem:[#allocation5 + $0x1f8] sm:$0xff] %vm122_vm0, %v3578_v18  ;;  %v2692_v6 = vsub.f32 %v3578_v18, %v3682_v25  ;;  %v2877_v41 = vadd.f32 %v2876_v17, %v2875_v34 }
 0x430   :  { %v2492_v48 = vpop.f32.mrf.mxu1 }
 0x431   :  { %2563 = vst.msk [vmem:[#allocation5 + $0x1f0] sm:$0xff] %vm122_vm0, %v2492_v48  ;;  %v2691_v62 = vsub.f32 %v2492_v48, %v3683_v7  ;;  %v2756_v27 = vmul.f32 %v2692_v6, %v2692_v6  ;;  %v2879_v38 = vadd.f32 %v2878_v40, %v2877_v41 }
 0x433   :  { %v2755_v21 = vmul.f32 %v2691_v62, %v2691_v62  ;;  %v2882_v49 = vsel %vm122_vm0, %v2756_v27, 0.0 }
 0x435   :  { %v2880_v55 = vsel %vm122_vm0, %v2755_v21, 0.0 }
 0x436   :  { %v2881_v29 = vadd.f32 %v2880_v55, %v2879_v38 }
 0x438   :  { %v2883_v61 = vadd.f32 %v2882_v49, %v2881_v29 }
 0x43a   :  { %2884 = vadd.xlane.f32.xlu0 %v2883_v61 }
 0x43b   :  { %3715 = shalt.err (!%p3712_p9)
}
 0x43c   :  { %2976 = dma.vmem_to_hbm [thread:$0]  %s2971_s24, 8192, %s5597_s4, [#allocation4], %s3751_s27, %s3751_s27, %s3752_s28  }
 0x43d   :  { %s3724_s9 = scalar_lea.vmem %s2983_s26, 8192  ;;  %p3729_p11 = scmp.lt.s32.totalorder %s2983_s26, %s2983_s26 }
 0x43e   :  { %p3725_p10 = scmp.ne.s32.totalorder %s2983_s26, %s3724_s9  ;;  %p3730_p12 = scmp.lt.s32.totalorder %s3724_s9, %s3724_s9 }
 0x440   :  { %p3731_p13 = por %p3730_p12, %p3729_p11 }
 0x442   :  { %p3732_p0 = pnand %p3731_p13, %p3725_p10 }
 0x444   :  { %3735 = shalt.err (!%p3732_p0)
}
 0x445   :  { %2988 = dma.vmem_to_hbm [thread:$0]  %s2983_s26, 8192, %s5598_s5, [#allocation7], %s3751_s27, %s3751_s27, %s3752_s28  }
 0x4c3   :  { %v2885_v37 = vpop.xlane.xlu0 %2884 }
 0x4c4   :  { %v2886_v36 = vrot.slane %v2885_v37, 4 }
 0x4c6   :  { %v2887_v59 = vadd.f32 %v2886_v36, %v2885_v37 }
 0x4c8   :  { %v2888_v14 = vrot.slane %v2887_v59, 2 }
 0x4ca   :  { %v2889_v10 = vadd.f32 %v2888_v14, %v2887_v59 }
 0x4cc   :  { %v2890_v57 = vrot.slane %v2889_v10, 1 }
 0x4ce   :  { %v2891_v30 = vadd.f32 %v2890_v57, %v2889_v10 }
 0x4d0   :  { %3611 = vpush %v2891_v30 }
 0x501   :  { %s3612_s4 = spop %3611 }
 0x502   :  { %v2893_v44 = vstv %s3612_s4 }
 0x503   :  { %2894 = vst [vmem:[%s5599_s6] sm:$0xff] %v2893_v44 }
 0x504   :  { %3746 = dma.done.wait [#allocation4], 8192  }
 0x505   :  { %3747 = vsyncadd [#allocation4], 4294959104 }
 0x506   :  { %3748 = dma.done.wait [#allocation7], 8192  }
 0x507   :  { %3749 = vsyncadd [#allocation7], 4294959104 }
 0x508   :  { %3003 = vsyncpa [#allocation3], 1 }
 0x509   :  { %3004 = vsyncpa [#allocation4], 1 }
 0x50a   :  { %3005 = vsyncpa [#allocation7], 1 }

</bundles_post_ra>
